<compile_context>
chip_gen: v5e
topology: v5e:2x2
jax: 0.10.0
libtpu: 0.0.40
codegen_flags: <defaults>
</compile_context>

<pallas_src>
import jax
import jax.numpy as jnp
from jax import lax
from jax.experimental import pallas as pl
from jax.experimental.pallas import tpu as pltpu

HP = 128  # lane-aligned per-gate width (hidden H=32 padded to one vreg lane span)


def bigru_kernel(x_ref, h0_ref, w_ih_ref, b_i_ref,
                 whh_f_ref, whh_b_ref, bhn_f_ref, bhn_b_ref,
                 out_ref, hn_ref, gi_ref, bwd_ref):
    T, B, hp = out_ref.shape
    G3 = 3 * hp

    # ---- input projection for ALL timesteps, BOTH directions, in one matmul.
    # b_ih (plus b_hh for the r/z gates) is already folded into b_i.
    gi_ref[...] = (jnp.dot(x_ref[...], w_ih_ref[...],
                           preferred_element_type=jnp.float32)
                   + b_i_ref[...])

    # ---- hoist recurrent weights / biases out of the unrolled loop.
    whh_f = whh_f_ref[...]          # (H, 3*HP), gates at lane offsets 0/HP/2HP
    whh_b = whh_b_ref[...]
    bhn_f = bhn_f_ref[...]          # (B, HP), pre-broadcast b_hn
    bhn_b = bhn_b_ref[...]
    Hc = whh_f.shape[0]             # true hidden width (contraction dim)

    def gru_step(gi, h, whh, bhn):
        # PyTorch GRU cell (gate order r, z, n); gi already contains b_ih
        # (+ b_hh for r/z), so only b_hn remains on the recurrent side.
        gh = jnp.dot(h[:, :Hc], whh, preferred_element_type=jnp.float32)  # (B, 3HP)
        r = jax.nn.sigmoid(gi[:, 0:hp] + gh[:, 0:hp])
        z = jax.nn.sigmoid(gi[:, hp:2 * hp] + gh[:, hp:2 * hp])
        n = jnp.tanh(gi[:, 2 * hp:3 * hp] + r * (gh[:, 2 * hp:3 * hp] + bhn))
        return (1.0 - z) * n + z * h

    h_f = h0_ref[0]                 # (B, HP), pad lanes zero
    h_b = h0_ref[1]

    # ---- fused fwd/bwd recurrence, fully unrolled (T static & small).
    for i in range(T):
        j = T - 1 - i
        gi_f = gi_ref[i * B:(i + 1) * B, 0:G3]          # (B, 3HP), lane-aligned
        gi_b = gi_ref[j * B:(j + 1) * B, G3:2 * G3]
        h_f = gru_step(gi_f, h_f, whh_f, bhn_f)
        h_b = gru_step(gi_b, h_b, whh_b, bhn_b)
        out_ref[i] = h_f                                 # 128-lane dense store
        bwd_ref[j] = h_b

    # ---- sum the two direction halves once (lane-dense, whole array).
    out_ref[...] = out_ref[...] + bwd_ref[...]

    # ---- final hidden = tanh(h_n)
    hn_ref[0] = jnp.tanh(h_f)
    hn_ref[1] = jnp.tanh(h_b)


def context_encoder_forward(inpt, hidden, params):
    """inpt: (T, B, input_size) f32; hidden: (2, B, H) f32 -> (output, hidden)."""
    T, B, I = inpt.shape
    H = params["whh_f"].shape[0]
    G3 = 3 * HP

    # --- pack gates so each gate starts on a 128-lane boundary ---------------
    def pack_gate_cols(w):                       # (rows, 3H) -> (rows, 3HP)
        rows = w.shape[0]
        out = jnp.zeros((rows, G3), jnp.float32)
        for g in range(3):
            out = out.at[:, g * HP:g * HP + H].set(w[:, g * H:(g + 1) * H])
        return out

    # input-projection weights, fwd & bwd concatenated along lanes: (I, 6HP)
    w_ih = jnp.concatenate([pack_gate_cols(params["wih_f"]),
                            pack_gate_cols(params["wih_b"])], axis=1)

    def pack_bias_i(bih, bhh):                   # fold b_hh into r/z gates only
        b = jnp.zeros((1, G3), jnp.float32)
        b = b.at[:, 0 * HP:0 * HP + H].set(bih[:, 0:H] + bhh[:, 0:H])
        b = b.at[:, 1 * HP:1 * HP + H].set(bih[:, H:2 * H] + bhh[:, H:2 * H])
        b = b.at[:, 2 * HP:2 * HP + H].set(bih[:, 2 * H:3 * H])
        return b

    b_i = jnp.concatenate([pack_bias_i(params["bih_f"], params["bhh_f"]),
                           pack_bias_i(params["bih_b"], params["bhh_b"])],
                          axis=1)                # (1, 6HP)

    whh_f = pack_gate_cols(params["whh_f"])      # (H, 3HP)
    whh_b = pack_gate_cols(params["whh_b"])

    def pack_bhn(bhh):                           # (1, 3H) -> pre-broadcast (B, HP)
        b = jnp.zeros((1, HP), jnp.float32).at[:, :H].set(bhh[:, 2 * H:3 * H])
        return jnp.broadcast_to(b, (B, HP))

    bhn_f = pack_bhn(params["bhh_f"])
    bhn_b = pack_bhn(params["bhh_b"])

    h0 = jnp.zeros((2, B, HP), jnp.float32).at[:, :, :H].set(hidden)
    x2d = inpt.reshape(T * B, I)                 # (T*B, I) for the batched proj

    vmem = pl.BlockSpec(memory_space=pltpu.MemorySpace.VMEM)
    out_pad, hn_pad = pl.pallas_call(
        bigru_kernel,
        out_shape=(jax.ShapeDtypeStruct((T, B, HP), jnp.float32),
                   jax.ShapeDtypeStruct((2, B, HP), jnp.float32)),
        in_specs=[vmem] * 8,
        out_specs=(vmem, vmem),
        scratch_shapes=[pltpu.VMEM((T * B, 2 * G3), jnp.float32),   # gi (both dirs)
                        pltpu.VMEM((T, B, HP), jnp.float32)],       # bwd outputs
    )(x2d, h0, w_ih, b_i, whh_f, whh_b, bhn_f, bhn_b)

    # un-pad the lane dimension (cheap XLA slices outside the kernel)
    return out_pad[:, :, :H], hn_pad[:, :, :H]


# ---------------- pure-JAX reference (for correctness check) ----------------
def _ref_forward(inpt, hidden, params):
    H = params["whh_f"].shape[0]

    def step(h, x_t, wih, whh, bih, bhh):
        gi = x_t @ wih + bih
        gh = h @ whh + bhh
        r = jax.nn.sigmoid(gi[:, :H] + gh[:, :H])
        z = jax.nn.sigmoid(gi[:, H:2 * H] + gh[:, H:2 * H])
        n = jnp.tanh(gi[:, 2 * H:] + r * gh[:, 2 * H:])
        return (1.0 - z) * n + z * h

    def scan_dir(h0, xs, wih, whh, bih, bhh):
        def body(h, x_t):
            h_new = step(h, x_t, wih, whh, bih, bhh)
            return h_new, h_new
        return lax.scan(body, h0, xs)

    h_f, ys_f = scan_dir(hidden[0], inpt,
                         params["wih_f"], params["whh_f"],
                         params["bih_f"], params["bhh_f"])
    h_b, ys_b = scan_dir(hidden[1], inpt[::-1],
                         params["wih_b"], params["whh_b"],
                         params["bih_b"], params["bhh_b"])
    out = ys_f + ys_b[::-1]
    hn = jnp.tanh(jnp.stack([h_f, h_b]))
    return out, hn


if __name__ == "__main__":
    # Small shapes: seq=8, batch=2, input_size=64 (== 2*utterance_hidden), hidden=32
    T, B, I, H = 8, 2, 64, 32
    key = jax.random.PRNGKey(0)
    ks = jax.random.split(key, 12)

    def xavier(k, shape):
        fan_in, fan_out = shape
        std = (2.0 / (fan_in + fan_out)) ** 0.5
        return std * jax.random.normal(k, shape, dtype=jnp.float32)

    # Deterministic synthetic parameters (shapes follow nn.GRU(I, H, bidirectional=True)).
    # Stored pre-transposed as (in_dim, 3H); gate order [r, z, n]. Biases kept
    # separate (b_ih, b_hh) because the n-gate applies r only to the hh part.
    params = {
        "wih_f": xavier(ks[0], (I, 3 * H)),
        "whh_f": xavier(ks[1], (H, 3 * H)),
        "bih_f": jnp.zeros((1, 3 * H), jnp.float32),   # module zero-inits fwd biases
        "bhh_f": jnp.zeros((1, 3 * H), jnp.float32),
        "wih_b": xavier(ks[2], (I, 3 * H)),
        "whh_b": xavier(ks[3], (H, 3 * H)),
        "bih_b": 0.1 * jax.random.normal(ks[4], (1, 3 * H), dtype=jnp.float32),
        "bhh_b": 0.1 * jax.random.normal(ks[5], (1, 3 * H), dtype=jnp.float32),
    }

    inpt = jax.random.normal(ks[6], (T, B, I), dtype=jnp.float32)
    # Module draws hidden ~ randn when not given; we pass it explicitly (deterministic).
    hidden0 = jax.random.normal(ks[7], (2, B, H), dtype=jnp.float32)

    out, hn = context_encoder_forward(inpt, hidden0, params)
    jax.block_until_ready((out, hn))

    out_ref, hn_ref = _ref_forward(inpt, hidden0, params)
    assert out.shape == (T, B, H) and hn.shape == (2, B, H)
    assert jnp.allclose(out, out_ref, atol=1e-4, rtol=1e-4)
    assert jnp.allclose(hn, hn_ref, atol=1e-4, rtol=1e-4)

    print("KERNEL_OK")
</pallas_src>

<mosaic_0001>
module attributes {stable_mosaic.version = 11 : i64} {
  func.func @bigru_kernel(%arg0: memref<16x64xf32, #tpu.memory_space<vmem>>, %arg1: memref<2x2x128xf32, #tpu.memory_space<vmem>>, %arg2: memref<64x768xf32, #tpu.memory_space<vmem>>, %arg3: memref<1x768xf32, #tpu.memory_space<vmem>>, %arg4: memref<32x384xf32, #tpu.memory_space<vmem>>, %arg5: memref<32x384xf32, #tpu.memory_space<vmem>>, %arg6: memref<2x128xf32, #tpu.memory_space<vmem>>, %arg7: memref<2x128xf32, #tpu.memory_space<vmem>>, %arg8: memref<8x2x128xf32, #tpu.memory_space<vmem>>, %arg9: memref<2x2x128xf32, #tpu.memory_space<vmem>>, %arg10: memref<16x768xf32, #tpu.memory_space<vmem>>, %arg11: memref<8x2x128xf32, #tpu.memory_space<vmem>>) attributes {dimension_semantics = [], scalar_prefetch = 0 : i64, scratch_operands = 2 : i64, tpu.core_type = #tpu.core_type<tc>} {
    %c0 = arith.constant 0 : index
    %c0_0 = arith.constant 0 : index
    %0 = vector.load %arg0[%c0, %c0_0] : memref<16x64xf32, #tpu.memory_space<vmem>>, vector<16x64xf32>
    %c0_1 = arith.constant 0 : index
    %c0_2 = arith.constant 0 : index
    %1 = vector.load %arg2[%c0_1, %c0_2] : memref<64x768xf32, #tpu.memory_space<vmem>>, vector<64x768xf32>
    %cst = arith.constant dense<0.000000e+00> : vector<16x768xf32>
    %2 = tpu.matmul %0, %1, %cst {dimension_numbers = #tpu.dot_dimension_numbers<[1], [0], [0], [1], [0, 0, 1, 1], [], []>} : vector<16x64xf32>, vector<64x768xf32>, vector<16x768xf32> -> vector<16x768xf32>
    %c0_3 = arith.constant 0 : index
    %c0_4 = arith.constant 0 : index
    %3 = vector.load %arg3[%c0_3, %c0_4] : memref<1x768xf32, #tpu.memory_space<vmem>>, vector<1x768xf32>
    %4 = vector.broadcast %3 : vector<1x768xf32> to vector<16x768xf32>
    %5 = arith.addf %2, %4 : vector<16x768xf32>
    %c0_5 = arith.constant 0 : index
    %c0_6 = arith.constant 0 : index
    %6 = vector.load %arg10[%c0_5, %c0_6] : memref<16x768xf32, #tpu.memory_space<vmem>>, vector<16x768xf32>
    tpu.vector_store %arg10[%c0_5, %c0_6], %5 {strides = array<i32>} : memref<16x768xf32, #tpu.memory_space<vmem>>, vector<16x768xf32>,
    %c0_7 = arith.constant 0 : index
    %c0_8 = arith.constant 0 : index
    %7 = vector.load %arg4[%c0_7, %c0_8] : memref<32x384xf32, #tpu.memory_space<vmem>>, vector<32x384xf32>
    %c0_9 = arith.constant 0 : index
    %c0_10 = arith.constant 0 : index
    %8 = vector.load %arg5[%c0_9, %c0_10] : memref<32x384xf32, #tpu.memory_space<vmem>>, vector<32x384xf32>
    %c0_11 = arith.constant 0 : index
    %c0_12 = arith.constant 0 : index
    %9 = vector.load %arg6[%c0_11, %c0_12] : memref<2x128xf32, #tpu.memory_space<vmem>>, vector<2x128xf32>
    %c0_13 = arith.constant 0 : index
    %c0_14 = arith.constant 0 : index
    %10 = vector.load %arg7[%c0_13, %c0_14] : memref<2x128xf32, #tpu.memory_space<vmem>>, vector<2x128xf32>
    %c0_15 = arith.constant 0 : index
    %c0_16 = arith.constant 0 : index
    %c0_17 = arith.constant 0 : index
    %11 = vector.load %arg1[%c0_15, %c0_16, %c0_17] : memref<2x2x128xf32, #tpu.memory_space<vmem>>, vector<1x2x128xf32>
    %12 = vector.shape_cast %11 : vector<1x2x128xf32> to vector<2x128xf32>
    %c1 = arith.constant 1 : index
    %c0_18 = arith.constant 0 : index
    %c0_19 = arith.constant 0 : index
    %13 = vector.load %arg1[%c1, %c0_18, %c0_19] : memref<2x2x128xf32, #tpu.memory_space<vmem>>, vector<1x2x128xf32>
    %14 = vector.shape_cast %13 : vector<1x2x128xf32> to vector<2x128xf32>
    %c0_20 = arith.constant 0 : index
    %c0_21 = arith.constant 0 : index
    %15 = vector.load %arg10[%c0_20, %c0_21] : memref<16x768xf32, #tpu.memory_space<vmem>>, vector<2x384xf32>
    %c14 = arith.constant 14 : index
    %c384 = arith.constant 384 : index
    %16 = vector.load %arg10[%c14, %c384] : memref<16x768xf32, #tpu.memory_space<vmem>>, vector<2x384xf32>
    %17 = vector.extract_strided_slice %12 {offsets = [0, 0], sizes = [2, 32], strides = [1, 1]} : vector<2x128xf32> to vector<2x32xf32>
    %cst_22 = arith.constant dense<0.000000e+00> : vector<2x384xf32>
    %18 = tpu.matmul %17, %7, %cst_22 {dimension_numbers = #tpu.dot_dimension_numbers<[1], [0], [0], [1], [0, 0, 1, 1], [], []>} : vector<2x32xf32>, vector<32x384xf32>, vector<2x384xf32> -> vector<2x384xf32>
    %19 = vector.extract_strided_slice %15 {offsets = [0, 0], sizes = [2, 128], strides = [1, 1]} : vector<2x384xf32> to vector<2x128xf32>
    %20 = vector.extract_strided_slice %18 {offsets = [0, 0], sizes = [2, 128], strides = [1, 1]} : vector<2x384xf32> to vector<2x128xf32>
    %21 = arith.addf %19, %20 : vector<2x128xf32>
    %22 = arith.negf %21 : vector<2x128xf32>
    %23 = math.exp %22 : vector<2x128xf32>
    %cst_23 = arith.constant 1.000000e+00 : f32
    %24 = vector.broadcast %cst_23 : f32 to vector<2x128xf32>
    %25 = arith.addf %24, %23 : vector<2x128xf32>
    %26 = arith.divf %24, %25 : vector<2x128xf32>
    %27 = vector.extract_strided_slice %15 {offsets = [0, 128], sizes = [2, 128], strides = [1, 1]} : vector<2x384xf32> to vector<2x128xf32>
    %28 = vector.extract_strided_slice %18 {offsets = [0, 128], sizes = [2, 128], strides = [1, 1]} : vector<2x384xf32> to vector<2x128xf32>
    %29 = arith.addf %27, %28 : vector<2x128xf32>
    %30 = arith.negf %29 : vector<2x128xf32>
    %31 = math.exp %30 : vector<2x128xf32>
    %cst_24 = arith.constant 1.000000e+00 : f32
    %32 = vector.broadcast %cst_24 : f32 to vector<2x128xf32>
    %33 = arith.addf %32, %31 : vector<2x128xf32>
    %34 = arith.divf %32, %33 : vector<2x128xf32>
    %35 = vector.extract_strided_slice %15 {offsets = [0, 256], sizes = [2, 128], strides = [1, 1]} : vector<2x384xf32> to vector<2x128xf32>
    %36 = vector.extract_strided_slice %18 {offsets = [0, 256], sizes = [2, 128], strides = [1, 1]} : vector<2x384xf32> to vector<2x128xf32>
    %37 = arith.addf %36, %9 : vector<2x128xf32>
    %38 = arith.mulf %26, %37 : vector<2x128xf32>
    %39 = arith.addf %35, %38 : vector<2x128xf32>
    %40 = math.tanh %39 : vector<2x128xf32>
    %cst_25 = arith.constant 1.000000e+00 : f32
    %41 = vector.broadcast %cst_25 : f32 to vector<2x128xf32>
    %42 = arith.subf %41, %34 : vector<2x128xf32>
    %43 = arith.mulf %42, %40 : vector<2x128xf32>
    %44 = arith.mulf %34, %12 : vector<2x128xf32>
    %45 = arith.addf %43, %44 : vector<2x128xf32>
    %46 = vector.extract_strided_slice %14 {offsets = [0, 0], sizes = [2, 32], strides = [1, 1]} : vector<2x128xf32> to vector<2x32xf32>
    %cst_26 = arith.constant dense<0.000000e+00> : vector<2x384xf32>
    %47 = tpu.matmul %46, %8, %cst_26 {dimension_numbers = #tpu.dot_dimension_numbers<[1], [0], [0], [1], [0, 0, 1, 1], [], []>} : vector<2x32xf32>, vector<32x384xf32>, vector<2x384xf32> -> vector<2x384xf32>
    %48 = vector.extract_strided_slice %16 {offsets = [0, 0], sizes = [2, 128], strides = [1, 1]} : vector<2x384xf32> to vector<2x128xf32>
    %49 = vector.extract_strided_slice %47 {offsets = [0, 0], sizes = [2, 128], strides = [1, 1]} : vector<2x384xf32> to vector<2x128xf32>
    %50 = arith.addf %48, %49 : vector<2x128xf32>
    %51 = arith.negf %50 : vector<2x128xf32>
    %52 = math.exp %51 : vector<2x128xf32>
    %cst_27 = arith.constant 1.000000e+00 : f32
    %53 = vector.broadcast %cst_27 : f32 to vector<2x128xf32>
    %54 = arith.addf %53, %52 : vector<2x128xf32>
    %55 = arith.divf %53, %54 : vector<2x128xf32>
    %56 = vector.extract_strided_slice %16 {offsets = [0, 128], sizes = [2, 128], strides = [1, 1]} : vector<2x384xf32> to vector<2x128xf32>
    %57 = vector.extract_strided_slice %47 {offsets = [0, 128], sizes = [2, 128], strides = [1, 1]} : vector<2x384xf32> to vector<2x128xf32>
    %58 = arith.addf %56, %57 : vector<2x128xf32>
    %59 = arith.negf %58 : vector<2x128xf32>
    %60 = math.exp %59 : vector<2x128xf32>
    %cst_28 = arith.constant 1.000000e+00 : f32
    %61 = vector.broadcast %cst_28 : f32 to vector<2x128xf32>
    %62 = arith.addf %61, %60 : vector<2x128xf32>
    %63 = arith.divf %61, %62 : vector<2x128xf32>
    %64 = vector.extract_strided_slice %16 {offsets = [0, 256], sizes = [2, 128], strides = [1, 1]} : vector<2x384xf32> to vector<2x128xf32>
    %65 = vector.extract_strided_slice %47 {offsets = [0, 256], sizes = [2, 128], strides = [1, 1]} : vector<2x384xf32> to vector<2x128xf32>
    %66 = arith.addf %65, %10 : vector<2x128xf32>
    %67 = arith.mulf %55, %66 : vector<2x128xf32>
    %68 = arith.addf %64, %67 : vector<2x128xf32>
    %69 = math.tanh %68 : vector<2x128xf32>
    %cst_29 = arith.constant 1.000000e+00 : f32
    %70 = vector.broadcast %cst_29 : f32 to vector<2x128xf32>
    %71 = arith.subf %70, %63 : vector<2x128xf32>
    %72 = arith.mulf %71, %69 : vector<2x128xf32>
    %73 = arith.mulf %63, %14 : vector<2x128xf32>
    %74 = arith.addf %72, %73 : vector<2x128xf32>
    %c0_30 = arith.constant 0 : index
    %c0_31 = arith.constant 0 : index
    %c0_32 = arith.constant 0 : index
    %75 = vector.load %arg8[%c0_30, %c0_31, %c0_32] : memref<8x2x128xf32, #tpu.memory_space<vmem>>, vector<1x2x128xf32>
    %76 = vector.shape_cast %75 : vector<1x2x128xf32> to vector<2x128xf32>
    %77 = vector.shape_cast %45 : vector<2x128xf32> to vector<1x2x128xf32>
    tpu.vector_store %arg8[%c0_30, %c0_31, %c0_32], %77 {strides = array<i32>} : memref<8x2x128xf32, #tpu.memory_space<vmem>>, vector<1x2x128xf32>,
    %c7 = arith.constant 7 : index
    %c0_33 = arith.constant 0 : index
    %c0_34 = arith.constant 0 : index
    %78 = vector.load %arg11[%c7, %c0_33, %c0_34] : memref<8x2x128xf32, #tpu.memory_space<vmem>>, vector<1x2x128xf32>
    %79 = vector.shape_cast %78 : vector<1x2x128xf32> to vector<2x128xf32>
    %80 = vector.shape_cast %74 : vector<2x128xf32> to vector<1x2x128xf32>
    tpu.vector_store %arg11[%c7, %c0_33, %c0_34], %80 {strides = array<i32>} : memref<8x2x128xf32, #tpu.memory_space<vmem>>, vector<1x2x128xf32>,
    %c2 = arith.constant 2 : index
    %c0_35 = arith.constant 0 : index
    %81 = vector.load %arg10[%c2, %c0_35] : memref<16x768xf32, #tpu.memory_space<vmem>>, vector<2x384xf32>
    %c12 = arith.constant 12 : index
    %c384_36 = arith.constant 384 : index
    %82 = vector.load %arg10[%c12, %c384_36] : memref<16x768xf32, #tpu.memory_space<vmem>>, vector<2x384xf32>
    %83 = vector.extract_strided_slice %45 {offsets = [0, 0], sizes = [2, 32], strides = [1, 1]} : vector<2x128xf32> to vector<2x32xf32>
    %cst_37 = arith.constant dense<0.000000e+00> : vector<2x384xf32>
    %84 = tpu.matmul %83, %7, %cst_37 {dimension_numbers = #tpu.dot_dimension_numbers<[1], [0], [0], [1], [0, 0, 1, 1], [], []>} : vector<2x32xf32>, vector<32x384xf32>, vector<2x384xf32> -> vector<2x384xf32>
    %85 = vector.extract_strided_slice %81 {offsets = [0, 0], sizes = [2, 128], strides = [1, 1]} : vector<2x384xf32> to vector<2x128xf32>
    %86 = vector.extract_strided_slice %84 {offsets = [0, 0], sizes = [2, 128], strides = [1, 1]} : vector<2x384xf32> to vector<2x128xf32>
    %87 = arith.addf %85, %86 : vector<2x128xf32>
    %88 = arith.negf %87 : vector<2x128xf32>
    %89 = math.exp %88 : vector<2x128xf32>
    %cst_38 = arith.constant 1.000000e+00 : f32
    %90 = vector.broadcast %cst_38 : f32 to vector<2x128xf32>
    %91 = arith.addf %90, %89 : vector<2x128xf32>
    %92 = arith.divf %90, %91 : vector<2x128xf32>
    %93 = vector.extract_strided_slice %81 {offsets = [0, 128], sizes = [2, 128], strides = [1, 1]} : vector<2x384xf32> to vector<2x128xf32>
    %94 = vector.extract_strided_slice %84 {offsets = [0, 128], sizes = [2, 128], strides = [1, 1]} : vector<2x384xf32> to vector<2x128xf32>
    %95 = arith.addf %93, %94 : vector<2x128xf32>
    %96 = arith.negf %95 : vector<2x128xf32>
    %97 = math.exp %96 : vector<2x128xf32>
    %cst_39 = arith.constant 1.000000e+00 : f32
    %98 = vector.broadcast %cst_39 : f32 to vector<2x128xf32>
    %99 = arith.addf %98, %97 : vector<2x128xf32>
    %100 = arith.divf %98, %99 : vector<2x128xf32>
    %101 = vector.extract_strided_slice %81 {offsets = [0, 256], sizes = [2, 128], strides = [1, 1]} : vector<2x384xf32> to vector<2x128xf32>
    %102 = vector.extract_strided_slice %84 {offsets = [0, 256], sizes = [2, 128], strides = [1, 1]} : vector<2x384xf32> to vector<2x128xf32>
    %103 = arith.addf %102, %9 : vector<2x128xf32>
    %104 = arith.mulf %92, %103 : vector<2x128xf32>
    %105 = arith.addf %101, %104 : vector<2x128xf32>
    %106 = math.tanh %105 : vector<2x128xf32>
    %cst_40 = arith.constant 1.000000e+00 : f32
    %107 = vector.broadcast %cst_40 : f32 to vector<2x128xf32>
    %108 = arith.subf %107, %100 : vector<2x128xf32>
    %109 = arith.mulf %108, %106 : vector<2x128xf32>
    %110 = arith.mulf %100, %45 : vector<2x128xf32>
    %111 = arith.addf %109, %110 : vector<2x128xf32>
    %112 = vector.extract_strided_slice %74 {offsets = [0, 0], sizes = [2, 32], strides = [1, 1]} : vector<2x128xf32> to vector<2x32xf32>
    %cst_41 = arith.constant dense<0.000000e+00> : vector<2x384xf32>
    %113 = tpu.matmul %112, %8, %cst_41 {dimension_numbers = #tpu.dot_dimension_numbers<[1], [0], [0], [1], [0, 0, 1, 1], [], []>} : vector<2x32xf32>, vector<32x384xf32>, vector<2x384xf32> -> vector<2x384xf32>
    %114 = vector.extract_strided_slice %82 {offsets = [0, 0], sizes = [2, 128], strides = [1, 1]} : vector<2x384xf32> to vector<2x128xf32>
    %115 = vector.extract_strided_slice %113 {offsets = [0, 0], sizes = [2, 128], strides = [1, 1]} : vector<2x384xf32> to vector<2x128xf32>
    %116 = arith.addf %114, %115 : vector<2x128xf32>
    %117 = arith.negf %116 : vector<2x128xf32>
    %118 = math.exp %117 : vector<2x128xf32>
    %cst_42 = arith.constant 1.000000e+00 : f32
    %119 = vector.broadcast %cst_42 : f32 to vector<2x128xf32>
    %120 = arith.addf %119, %118 : vector<2x128xf32>
    %121 = arith.divf %119, %120 : vector<2x128xf32>
    %122 = vector.extract_strided_slice %82 {offsets = [0, 128], sizes = [2, 128], strides = [1, 1]} : vector<2x384xf32> to vector<2x128xf32>
    %123 = vector.extract_strided_slice %113 {offsets = [0, 128], sizes = [2, 128], strides = [1, 1]} : vector<2x384xf32> to vector<2x128xf32>
    %124 = arith.addf %122, %123 : vector<2x128xf32>
    %125 = arith.negf %124 : vector<2x128xf32>
    %126 = math.exp %125 : vector<2x128xf32>
    %cst_43 = arith.constant 1.000000e+00 : f32
    %127 = vector.broadcast %cst_43 : f32 to vector<2x128xf32>
    %128 = arith.addf %127, %126 : vector<2x128xf32>
    %129 = arith.divf %127, %128 : vector<2x128xf32>
    %130 = vector.extract_strided_slice %82 {offsets = [0, 256], sizes = [2, 128], strides = [1, 1]} : vector<2x384xf32> to vector<2x128xf32>
    %131 = vector.extract_strided_slice %113 {offsets = [0, 256], sizes = [2, 128], strides = [1, 1]} : vector<2x384xf32> to vector<2x128xf32>
    %132 = arith.addf %131, %10 : vector<2x128xf32>
    %133 = arith.mulf %121, %132 : vector<2x128xf32>
    %134 = arith.addf %130, %133 : vector<2x128xf32>
    %135 = math.tanh %134 : vector<2x128xf32>
    %cst_44 = arith.constant 1.000000e+00 : f32
    %136 = vector.broadcast %cst_44 : f32 to vector<2x128xf32>
    %137 = arith.subf %136, %129 : vector<2x128xf32>
    %138 = arith.mulf %137, %135 : vector<2x128xf32>
    %139 = arith.mulf %129, %74 : vector<2x128xf32>
    %140 = arith.addf %138, %139 : vector<2x128xf32>
    %c1_45 = arith.constant 1 : index
    %c0_46 = arith.constant 0 : index
    %c0_47 = arith.constant 0 : index
    %141 = vector.load %arg8[%c1_45, %c0_46, %c0_47] : memref<8x2x128xf32, #tpu.memory_space<vmem>>, vector<1x2x128xf32>
    %142 = vector.shape_cast %141 : vector<1x2x128xf32> to vector<2x128xf32>
    %143 = vector.shape_cast %111 : vector<2x128xf32> to vector<1x2x128xf32>
    tpu.vector_store %arg8[%c1_45, %c0_46, %c0_47], %143 {strides = array<i32>} : memref<8x2x128xf32, #tpu.memory_space<vmem>>, vector<1x2x128xf32>,
    %c6 = arith.constant 6 : index
    %c0_48 = arith.constant 0 : index
    %c0_49 = arith.constant 0 : index
    %144 = vector.load %arg11[%c6, %c0_48, %c0_49] : memref<8x2x128xf32, #tpu.memory_space<vmem>>, vector<1x2x128xf32>
    %145 = vector.shape_cast %144 : vector<1x2x128xf32> to vector<2x128xf32>
    %146 = vector.shape_cast %140 : vector<2x128xf32> to vector<1x2x128xf32>
    tpu.vector_store %arg11[%c6, %c0_48, %c0_49], %146 {strides = array<i32>} : memref<8x2x128xf32, #tpu.memory_space<vmem>>, vector<1x2x128xf32>,
    %c4 = arith.constant 4 : index
    %c0_50 = arith.constant 0 : index
    %147 = vector.load %arg10[%c4, %c0_50] : memref<16x768xf32, #tpu.memory_space<vmem>>, vector<2x384xf32>
    %c10 = arith.constant 10 : index
    %c384_51 = arith.constant 384 : index
    %148 = vector.load %arg10[%c10, %c384_51] : memref<16x768xf32, #tpu.memory_space<vmem>>, vector<2x384xf32>
    %149 = vector.extract_strided_slice %111 {offsets = [0, 0], sizes = [2, 32], strides = [1, 1]} : vector<2x128xf32> to vector<2x32xf32>
    %cst_52 = arith.constant dense<0.000000e+00> : vector<2x384xf32>
    %150 = tpu.matmul %149, %7, %cst_52 {dimension_numbers = #tpu.dot_dimension_numbers<[1], [0], [0], [1], [0, 0, 1, 1], [], []>} : vector<2x32xf32>, vector<32x384xf32>, vector<2x384xf32> -> vector<2x384xf32>
    %151 = vector.extract_strided_slice %147 {offsets = [0, 0], sizes = [2, 128], strides = [1, 1]} : vector<2x384xf32> to vector<2x128xf32>
    %152 = vector.extract_strided_slice %150 {offsets = [0, 0], sizes = [2, 128], strides = [1, 1]} : vector<2x384xf32> to vector<2x128xf32>
    %153 = arith.addf %151, %152 : vector<2x128xf32>
    %154 = arith.negf %153 : vector<2x128xf32>
    %155 = math.exp %154 : vector<2x128xf32>
    %cst_53 = arith.constant 1.000000e+00 : f32
    %156 = vector.broadcast %cst_53 : f32 to vector<2x128xf32>
    %157 = arith.addf %156, %155 : vector<2x128xf32>
    %158 = arith.divf %156, %157 : vector<2x128xf32>
    %159 = vector.extract_strided_slice %147 {offsets = [0, 128], sizes = [2, 128], strides = [1, 1]} : vector<2x384xf32> to vector<2x128xf32>
    %160 = vector.extract_strided_slice %150 {offsets = [0, 128], sizes = [2, 128], strides = [1, 1]} : vector<2x384xf32> to vector<2x128xf32>
    %161 = arith.addf %159, %160 : vector<2x128xf32>
    %162 = arith.negf %161 : vector<2x128xf32>
    %163 = math.exp %162 : vector<2x128xf32>
    %cst_54 = arith.constant 1.000000e+00 : f32
    %164 = vector.broadcast %cst_54 : f32 to vector<2x128xf32>
    %165 = arith.addf %164, %163 : vector<2x128xf32>
    %166 = arith.divf %164, %165 : vector<2x128xf32>
    %167 = vector.extract_strided_slice %147 {offsets = [0, 256], sizes = [2, 128], strides = [1, 1]} : vector<2x384xf32> to vector<2x128xf32>
    %168 = vector.extract_strided_slice %150 {offsets = [0, 256], sizes = [2, 128], strides = [1, 1]} : vector<2x384xf32> to vector<2x128xf32>
    %169 = arith.addf %168, %9 : vector<2x128xf32>
    %170 = arith.mulf %158, %169 : vector<2x128xf32>
    %171 = arith.addf %167, %170 : vector<2x128xf32>
    %172 = math.tanh %171 : vector<2x128xf32>
    %cst_55 = arith.constant 1.000000e+00 : f32
    %173 = vector.broadcast %cst_55 : f32 to vector<2x128xf32>
    %174 = arith.subf %173, %166 : vector<2x128xf32>
    %175 = arith.mulf %174, %172 : vector<2x128xf32>
    %176 = arith.mulf %166, %111 : vector<2x128xf32>
    %177 = arith.addf %175, %176 : vector<2x128xf32>
    %178 = vector.extract_strided_slice %140 {offsets = [0, 0], sizes = [2, 32], strides = [1, 1]} : vector<2x128xf32> to vector<2x32xf32>
    %cst_56 = arith.constant dense<0.000000e+00> : vector<2x384xf32>
    %179 = tpu.matmul %178, %8, %cst_56 {dimension_numbers = #tpu.dot_dimension_numbers<[1], [0], [0], [1], [0, 0, 1, 1], [], []>} : vector<2x32xf32>, vector<32x384xf32>, vector<2x384xf32> -> vector<2x384xf32>
    %180 = vector.extract_strided_slice %148 {offsets = [0, 0], sizes = [2, 128], strides = [1, 1]} : vector<2x384xf32> to vector<2x128xf32>
    %181 = vector.extract_strided_slice %179 {offsets = [0, 0], sizes = [2, 128], strides = [1, 1]} : vector<2x384xf32> to vector<2x128xf32>
    %182 = arith.addf %180, %181 : vector<2x128xf32>
    %183 = arith.negf %182 : vector<2x128xf32>
    %184 = math.exp %183 : vector<2x128xf32>
    %cst_57 = arith.constant 1.000000e+00 : f32
    %185 = vector.broadcast %cst_57 : f32 to vector<2x128xf32>
    %186 = arith.addf %185, %184 : vector<2x128xf32>
    %187 = arith.divf %185, %186 : vector<2x128xf32>
    %188 = vector.extract_strided_slice %148 {offsets = [0, 128], sizes = [2, 128], strides = [1, 1]} : vector<2x384xf32> to vector<2x128xf32>
    %189 = vector.extract_strided_slice %179 {offsets = [0, 128], sizes = [2, 128], strides = [1, 1]} : vector<2x384xf32> to vector<2x128xf32>
    %190 = arith.addf %188, %189 : vector<2x128xf32>
    %191 = arith.negf %190 : vector<2x128xf32>
    %192 = math.exp %191 : vector<2x128xf32>
    %cst_58 = arith.constant 1.000000e+00 : f32
    %193 = vector.broadcast %cst_58 : f32 to vector<2x128xf32>
    %194 = arith.addf %193, %192 : vector<2x128xf32>
    %195 = arith.divf %193, %194 : vector<2x128xf32>
    %196 = vector.extract_strided_slice %148 {offsets = [0, 256], sizes = [2, 128], strides = [1, 1]} : vector<2x384xf32> to vector<2x128xf32>
    %197 = vector.extract_strided_slice %179 {offsets = [0, 256], sizes = [2, 128], strides = [1, 1]} : vector<2x384xf32> to vector<2x128xf32>
    %198 = arith.addf %197, %10 : vector<2x128xf32>
    %199 = arith.mulf %187, %198 : vector<2x128xf32>
    %200 = arith.addf %196, %199 : vector<2x128xf32>
    %201 = math.tanh %200 : vector<2x128xf32>
    %cst_59 = arith.constant 1.000000e+00 : f32
    %202 = vector.broadcast %cst_59 : f32 to vector<2x128xf32>
    %203 = arith.subf %202, %195 : vector<2x128xf32>
    %204 = arith.mulf %203, %201 : vector<2x128xf32>
    %205 = arith.mulf %195, %140 : vector<2x128xf32>
    %206 = arith.addf %204, %205 : vector<2x128xf32>
    %c2_60 = arith.constant 2 : index
    %c0_61 = arith.constant 0 : index
    %c0_62 = arith.constant 0 : index
    %207 = vector.load %arg8[%c2_60, %c0_61, %c0_62] : memref<8x2x128xf32, #tpu.memory_space<vmem>>, vector<1x2x128xf32>
    %208 = vector.shape_cast %207 : vector<1x2x128xf32> to vector<2x128xf32>
    %209 = vector.shape_cast %177 : vector<2x128xf32> to vector<1x2x128xf32>
    tpu.vector_store %arg8[%c2_60, %c0_61, %c0_62], %209 {strides = array<i32>} : memref<8x2x128xf32, #tpu.memory_space<vmem>>, vector<1x2x128xf32>,
    %c5 = arith.constant 5 : index
    %c0_63 = arith.constant 0 : index
    %c0_64 = arith.constant 0 : index
    %210 = vector.load %arg11[%c5, %c0_63, %c0_64] : memref<8x2x128xf32, #tpu.memory_space<vmem>>, vector<1x2x128xf32>
    %211 = vector.shape_cast %210 : vector<1x2x128xf32> to vector<2x128xf32>
    %212 = vector.shape_cast %206 : vector<2x128xf32> to vector<1x2x128xf32>
    tpu.vector_store %arg11[%c5, %c0_63, %c0_64], %212 {strides = array<i32>} : memref<8x2x128xf32, #tpu.memory_space<vmem>>, vector<1x2x128xf32>,
    %c6_65 = arith.constant 6 : index
    %c0_66 = arith.constant 0 : index
    %213 = vector.load %arg10[%c6_65, %c0_66] : memref<16x768xf32, #tpu.memory_space<vmem>>, vector<2x384xf32>
    %c8 = arith.constant 8 : index
    %c384_67 = arith.constant 384 : index
    %214 = vector.load %arg10[%c8, %c384_67] : memref<16x768xf32, #tpu.memory_space<vmem>>, vector<2x384xf32>
    %215 = vector.extract_strided_slice %177 {offsets = [0, 0], sizes = [2, 32], strides = [1, 1]} : vector<2x128xf32> to vector<2x32xf32>
    %cst_68 = arith.constant dense<0.000000e+00> : vector<2x384xf32>
    %216 = tpu.matmul %215, %7, %cst_68 {dimension_numbers = #tpu.dot_dimension_numbers<[1], [0], [0], [1], [0, 0, 1, 1], [], []>} : vector<2x32xf32>, vector<32x384xf32>, vector<2x384xf32> -> vector<2x384xf32>
    %217 = vector.extract_strided_slice %213 {offsets = [0, 0], sizes = [2, 128], strides = [1, 1]} : vector<2x384xf32> to vector<2x128xf32>
    %218 = vector.extract_strided_slice %216 {offsets = [0, 0], sizes = [2, 128], strides = [1, 1]} : vector<2x384xf32> to vector<2x128xf32>
    %219 = arith.addf %217, %218 : vector<2x128xf32>
    %220 = arith.negf %219 : vector<2x128xf32>
    %221 = math.exp %220 : vector<2x128xf32>
    %cst_69 = arith.constant 1.000000e+00 : f32
    %222 = vector.broadcast %cst_69 : f32 to vector<2x128xf32>
    %223 = arith.addf %222, %221 : vector<2x128xf32>
    %224 = arith.divf %222, %223 : vector<2x128xf32>
    %225 = vector.extract_strided_slice %213 {offsets = [0, 128], sizes = [2, 128], strides = [1, 1]} : vector<2x384xf32> to vector<2x128xf32>
    %226 = vector.extract_strided_slice %216 {offsets = [0, 128], sizes = [2, 128], strides = [1, 1]} : vector<2x384xf32> to vector<2x128xf32>
    %227 = arith.addf %225, %226 : vector<2x128xf32>
    %228 = arith.negf %227 : vector<2x128xf32>
    %229 = math.exp %228 : vector<2x128xf32>
    %cst_70 = arith.constant 1.000000e+00 : f32
    %230 = vector.broadcast %cst_70 : f32 to vector<2x128xf32>
    %231 = arith.addf %230, %229 : vector<2x128xf32>
    %232 = arith.divf %230, %231 : vector<2x128xf32>
    %233 = vector.extract_strided_slice %213 {offsets = [0, 256], sizes = [2, 128], strides = [1, 1]} : vector<2x384xf32> to vector<2x128xf32>
    %234 = vector.extract_strided_slice %216 {offsets = [0, 256], sizes = [2, 128], strides = [1, 1]} : vector<2x384xf32> to vector<2x128xf32>
    %235 = arith.addf %234, %9 : vector<2x128xf32>
    %236 = arith.mulf %224, %235 : vector<2x128xf32>
    %237 = arith.addf %233, %236 : vector<2x128xf32>
    %238 = math.tanh %237 : vector<2x128xf32>
    %cst_71 = arith.constant 1.000000e+00 : f32
    %239 = vector.broadcast %cst_71 : f32 to vector<2x128xf32>
    %240 = arith.subf %239, %232 : vector<2x128xf32>
    %241 = arith.mulf %240, %238 : vector<2x128xf32>
    %242 = arith.mulf %232, %177 : vector<2x128xf32>
    %243 = arith.addf %241, %242 : vector<2x128xf32>
    %244 = vector.extract_strided_slice %206 {offsets = [0, 0], sizes = [2, 32], strides = [1, 1]} : vector<2x128xf32> to vector<2x32xf32>
    %cst_72 = arith.constant dense<0.000000e+00> : vector<2x384xf32>
    %245 = tpu.matmul %244, %8, %cst_72 {dimension_numbers = #tpu.dot_dimension_numbers<[1], [0], [0], [1], [0, 0, 1, 1], [], []>} : vector<2x32xf32>, vector<32x384xf32>, vector<2x384xf32> -> vector<2x384xf32>
    %246 = vector.extract_strided_slice %214 {offsets = [0, 0], sizes = [2, 128], strides = [1, 1]} : vector<2x384xf32> to vector<2x128xf32>
    %247 = vector.extract_strided_slice %245 {offsets = [0, 0], sizes = [2, 128], strides = [1, 1]} : vector<2x384xf32> to vector<2x128xf32>
    %248 = arith.addf %246, %247 : vector<2x128xf32>
    %249 = arith.negf %248 : vector<2x128xf32>
    %250 = math.exp %249 : vector<2x128xf32>
    %cst_73 = arith.constant 1.000000e+00 : f32
    %251 = vector.broadcast %cst_73 : f32 to vector<2x128xf32>
    %252 = arith.addf %251, %250 : vector<2x128xf32>
    %253 = arith.divf %251, %252 : vector<2x128xf32>
    %254 = vector.extract_strided_slice %214 {offsets = [0, 128], sizes = [2, 128], strides = [1, 1]} : vector<2x384xf32> to vector<2x128xf32>
    %255 = vector.extract_strided_slice %245 {offsets = [0, 128], sizes = [2, 128], strides = [1, 1]} : vector<2x384xf32> to vector<2x128xf32>
    %256 = arith.addf %254, %255 : vector<2x128xf32>
    %257 = arith.negf %256 : vector<2x128xf32>
    %258 = math.exp %257 : vector<2x128xf32>
    %cst_74 = arith.constant 1.000000e+00 : f32
    %259 = vector.broadcast %cst_74 : f32 to vector<2x128xf32>
    %260 = arith.addf %259, %258 : vector<2x128xf32>
    %261 = arith.divf %259, %260 : vector<2x128xf32>
    %262 = vector.extract_strided_slice %214 {offsets = [0, 256], sizes = [2, 128], strides = [1, 1]} : vector<2x384xf32> to vector<2x128xf32>
    %263 = vector.extract_strided_slice %245 {offsets = [0, 256], sizes = [2, 128], strides = [1, 1]} : vector<2x384xf32> to vector<2x128xf32>
    %264 = arith.addf %263, %10 : vector<2x128xf32>
    %265 = arith.mulf %253, %264 : vector<2x128xf32>
    %266 = arith.addf %262, %265 : vector<2x128xf32>
    %267 = math.tanh %266 : vector<2x128xf32>
    %cst_75 = arith.constant 1.000000e+00 : f32
    %268 = vector.broadcast %cst_75 : f32 to vector<2x128xf32>
    %269 = arith.subf %268, %261 : vector<2x128xf32>
    %270 = arith.mulf %269, %267 : vector<2x128xf32>
    %271 = arith.mulf %261, %206 : vector<2x128xf32>
    %272 = arith.addf %270, %271 : vector<2x128xf32>
    %c3 = arith.constant 3 : index
    %c0_76 = arith.constant 0 : index
    %c0_77 = arith.constant 0 : index
    %273 = vector.load %arg8[%c3, %c0_76, %c0_77] : memref<8x2x128xf32, #tpu.memory_space<vmem>>, vector<1x2x128xf32>
    %274 = vector.shape_cast %273 : vector<1x2x128xf32> to vector<2x128xf32>
    %275 = vector.shape_cast %243 : vector<2x128xf32> to vector<1x2x128xf32>
    tpu.vector_store %arg8[%c3, %c0_76, %c0_77], %275 {strides = array<i32>} : memref<8x2x128xf32, #tpu.memory_space<vmem>>, vector<1x2x128xf32>,
    %c4_78 = arith.constant 4 : index
    %c0_79 = arith.constant 0 : index
    %c0_80 = arith.constant 0 : index
    %276 = vector.load %arg11[%c4_78, %c0_79, %c0_80] : memref<8x2x128xf32, #tpu.memory_space<vmem>>, vector<1x2x128xf32>
    %277 = vector.shape_cast %276 : vector<1x2x128xf32> to vector<2x128xf32>
    %278 = vector.shape_cast %272 : vector<2x128xf32> to vector<1x2x128xf32>
    tpu.vector_store %arg11[%c4_78, %c0_79, %c0_80], %278 {strides = array<i32>} : memref<8x2x128xf32, #tpu.memory_space<vmem>>, vector<1x2x128xf32>,
    %c8_81 = arith.constant 8 : index
    %c0_82 = arith.constant 0 : index
    %279 = vector.load %arg10[%c8_81, %c0_82] : memref<16x768xf32, #tpu.memory_space<vmem>>, vector<2x384xf32>
    %c6_83 = arith.constant 6 : index
    %c384_84 = arith.constant 384 : index
    %280 = vector.load %arg10[%c6_83, %c384_84] : memref<16x768xf32, #tpu.memory_space<vmem>>, vector<2x384xf32>
    %281 = vector.extract_strided_slice %243 {offsets = [0, 0], sizes = [2, 32], strides = [1, 1]} : vector<2x128xf32> to vector<2x32xf32>
    %cst_85 = arith.constant dense<0.000000e+00> : vector<2x384xf32>
    %282 = tpu.matmul %281, %7, %cst_85 {dimension_numbers = #tpu.dot_dimension_numbers<[1], [0], [0], [1], [0, 0, 1, 1], [], []>} : vector<2x32xf32>, vector<32x384xf32>, vector<2x384xf32> -> vector<2x384xf32>
    %283 = vector.extract_strided_slice %279 {offsets = [0, 0], sizes = [2, 128], strides = [1, 1]} : vector<2x384xf32> to vector<2x128xf32>
    %284 = vector.extract_strided_slice %282 {offsets = [0, 0], sizes = [2, 128], strides = [1, 1]} : vector<2x384xf32> to vector<2x128xf32>
    %285 = arith.addf %283, %284 : vector<2x128xf32>
    %286 = arith.negf %285 : vector<2x128xf32>
    %287 = math.exp %286 : vector<2x128xf32>
    %cst_86 = arith.constant 1.000000e+00 : f32
    %288 = vector.broadcast %cst_86 : f32 to vector<2x128xf32>
    %289 = arith.addf %288, %287 : vector<2x128xf32>
    %290 = arith.divf %288, %289 : vector<2x128xf32>
    %291 = vector.extract_strided_slice %279 {offsets = [0, 128], sizes = [2, 128], strides = [1, 1]} : vector<2x384xf32> to vector<2x128xf32>
    %292 = vector.extract_strided_slice %282 {offsets = [0, 128], sizes = [2, 128], strides = [1, 1]} : vector<2x384xf32> to vector<2x128xf32>
    %293 = arith.addf %291, %292 : vector<2x128xf32>
    %294 = arith.negf %293 : vector<2x128xf32>
    %295 = math.exp %294 : vector<2x128xf32>
    %cst_87 = arith.constant 1.000000e+00 : f32
    %296 = vector.broadcast %cst_87 : f32 to vector<2x128xf32>
    %297 = arith.addf %296, %295 : vector<2x128xf32>
    %298 = arith.divf %296, %297 : vector<2x128xf32>
    %299 = vector.extract_strided_slice %279 {offsets = [0, 256], sizes = [2, 128], strides = [1, 1]} : vector<2x384xf32> to vector<2x128xf32>
    %300 = vector.extract_strided_slice %282 {offsets = [0, 256], sizes = [2, 128], strides = [1, 1]} : vector<2x384xf32> to vector<2x128xf32>
    %301 = arith.addf %300, %9 : vector<2x128xf32>
    %302 = arith.mulf %290, %301 : vector<2x128xf32>
    %303 = arith.addf %299, %302 : vector<2x128xf32>
    %304 = math.tanh %303 : vector<2x128xf32>
    %cst_88 = arith.constant 1.000000e+00 : f32
    %305 = vector.broadcast %cst_88 : f32 to vector<2x128xf32>
    %306 = arith.subf %305, %298 : vector<2x128xf32>
    %307 = arith.mulf %306, %304 : vector<2x128xf32>
    %308 = arith.mulf %298, %243 : vector<2x128xf32>
    %309 = arith.addf %307, %308 : vector<2x128xf32>
    %310 = vector.extract_strided_slice %272 {offsets = [0, 0], sizes = [2, 32], strides = [1, 1]} : vector<2x128xf32> to vector<2x32xf32>
    %cst_89 = arith.constant dense<0.000000e+00> : vector<2x384xf32>
    %311 = tpu.matmul %310, %8, %cst_89 {dimension_numbers = #tpu.dot_dimension_numbers<[1], [0], [0], [1], [0, 0, 1, 1], [], []>} : vector<2x32xf32>, vector<32x384xf32>, vector<2x384xf32> -> vector<2x384xf32>
    %312 = vector.extract_strided_slice %280 {offsets = [0, 0], sizes = [2, 128], strides = [1, 1]} : vector<2x384xf32> to vector<2x128xf32>
    %313 = vector.extract_strided_slice %311 {offsets = [0, 0], sizes = [2, 128], strides = [1, 1]} : vector<2x384xf32> to vector<2x128xf32>
    %314 = arith.addf %312, %313 : vector<2x128xf32>
    %315 = arith.negf %314 : vector<2x128xf32>
    %316 = math.exp %315 : vector<2x128xf32>
    %cst_90 = arith.constant 1.000000e+00 : f32
    %317 = vector.broadcast %cst_90 : f32 to vector<2x128xf32>
    %318 = arith.addf %317, %316 : vector<2x128xf32>
    %319 = arith.divf %317, %318 : vector<2x128xf32>
    %320 = vector.extract_strided_slice %280 {offsets = [0, 128], sizes = [2, 128], strides = [1, 1]} : vector<2x384xf32> to vector<2x128xf32>
    %321 = vector.extract_strided_slice %311 {offsets = [0, 128], sizes = [2, 128], strides = [1, 1]} : vector<2x384xf32> to vector<2x128xf32>
    %322 = arith.addf %320, %321 : vector<2x128xf32>
    %323 = arith.negf %322 : vector<2x128xf32>
    %324 = math.exp %323 : vector<2x128xf32>
    %cst_91 = arith.constant 1.000000e+00 : f32
    %325 = vector.broadcast %cst_91 : f32 to vector<2x128xf32>
    %326 = arith.addf %325, %324 : vector<2x128xf32>
    %327 = arith.divf %325, %326 : vector<2x128xf32>
    %328 = vector.extract_strided_slice %280 {offsets = [0, 256], sizes = [2, 128], strides = [1, 1]} : vector<2x384xf32> to vector<2x128xf32>
    %329 = vector.extract_strided_slice %311 {offsets = [0, 256], sizes = [2, 128], strides = [1, 1]} : vector<2x384xf32> to vector<2x128xf32>
    %330 = arith.addf %329, %10 : vector<2x128xf32>
    %331 = arith.mulf %319, %330 : vector<2x128xf32>
    %332 = arith.addf %328, %331 : vector<2x128xf32>
    %333 = math.tanh %332 : vector<2x128xf32>
    %cst_92 = arith.constant 1.000000e+00 : f32
    %334 = vector.broadcast %cst_92 : f32 to vector<2x128xf32>
    %335 = arith.subf %334, %327 : vector<2x128xf32>
    %336 = arith.mulf %335, %333 : vector<2x128xf32>
    %337 = arith.mulf %327, %272 : vector<2x128xf32>
    %338 = arith.addf %336, %337 : vector<2x128xf32>
    %c4_93 = arith.constant 4 : index
    %c0_94 = arith.constant 0 : index
    %c0_95 = arith.constant 0 : index
    %339 = vector.load %arg8[%c4_93, %c0_94, %c0_95] : memref<8x2x128xf32, #tpu.memory_space<vmem>>, vector<1x2x128xf32>
    %340 = vector.shape_cast %339 : vector<1x2x128xf32> to vector<2x128xf32>
    %341 = vector.shape_cast %309 : vector<2x128xf32> to vector<1x2x128xf32>
    tpu.vector_store %arg8[%c4_93, %c0_94, %c0_95], %341 {strides = array<i32>} : memref<8x2x128xf32, #tpu.memory_space<vmem>>, vector<1x2x128xf32>,
    %c3_96 = arith.constant 3 : index
    %c0_97 = arith.constant 0 : index
    %c0_98 = arith.constant 0 : index
    %342 = vector.load %arg11[%c3_96, %c0_97, %c0_98] : memref<8x2x128xf32, #tpu.memory_space<vmem>>, vector<1x2x128xf32>
    %343 = vector.shape_cast %342 : vector<1x2x128xf32> to vector<2x128xf32>
    %344 = vector.shape_cast %338 : vector<2x128xf32> to vector<1x2x128xf32>
    tpu.vector_store %arg11[%c3_96, %c0_97, %c0_98], %344 {strides = array<i32>} : memref<8x2x128xf32, #tpu.memory_space<vmem>>, vector<1x2x128xf32>,
    %c10_99 = arith.constant 10 : index
    %c0_100 = arith.constant 0 : index
    %345 = vector.load %arg10[%c10_99, %c0_100] : memref<16x768xf32, #tpu.memory_space<vmem>>, vector<2x384xf32>
    %c4_101 = arith.constant 4 : index
    %c384_102 = arith.constant 384 : index
    %346 = vector.load %arg10[%c4_101, %c384_102] : memref<16x768xf32, #tpu.memory_space<vmem>>, vector<2x384xf32>
    %347 = vector.extract_strided_slice %309 {offsets = [0, 0], sizes = [2, 32], strides = [1, 1]} : vector<2x128xf32> to vector<2x32xf32>
    %cst_103 = arith.constant dense<0.000000e+00> : vector<2x384xf32>
    %348 = tpu.matmul %347, %7, %cst_103 {dimension_numbers = #tpu.dot_dimension_numbers<[1], [0], [0], [1], [0, 0, 1, 1], [], []>} : vector<2x32xf32>, vector<32x384xf32>, vector<2x384xf32> -> vector<2x384xf32>
    %349 = vector.extract_strided_slice %345 {offsets = [0, 0], sizes = [2, 128], strides = [1, 1]} : vector<2x384xf32> to vector<2x128xf32>
    %350 = vector.extract_strided_slice %348 {offsets = [0, 0], sizes = [2, 128], strides = [1, 1]} : vector<2x384xf32> to vector<2x128xf32>
    %351 = arith.addf %349, %350 : vector<2x128xf32>
    %352 = arith.negf %351 : vector<2x128xf32>
    %353 = math.exp %352 : vector<2x128xf32>
    %cst_104 = arith.constant 1.000000e+00 : f32
    %354 = vector.broadcast %cst_104 : f32 to vector<2x128xf32>
    %355 = arith.addf %354, %353 : vector<2x128xf32>
    %356 = arith.divf %354, %355 : vector<2x128xf32>
    %357 = vector.extract_strided_slice %345 {offsets = [0, 128], sizes = [2, 128], strides = [1, 1]} : vector<2x384xf32> to vector<2x128xf32>
    %358 = vector.extract_strided_slice %348 {offsets = [0, 128], sizes = [2, 128], strides = [1, 1]} : vector<2x384xf32> to vector<2x128xf32>
    %359 = arith.addf %357, %358 : vector<2x128xf32>
    %360 = arith.negf %359 : vector<2x128xf32>
    %361 = math.exp %360 : vector<2x128xf32>
    %cst_105 = arith.constant 1.000000e+00 : f32
    %362 = vector.broadcast %cst_105 : f32 to vector<2x128xf32>
    %363 = arith.addf %362, %361 : vector<2x128xf32>
    %364 = arith.divf %362, %363 : vector<2x128xf32>
    %365 = vector.extract_strided_slice %345 {offsets = [0, 256], sizes = [2, 128], strides = [1, 1]} : vector<2x384xf32> to vector<2x128xf32>
    %366 = vector.extract_strided_slice %348 {offsets = [0, 256], sizes = [2, 128], strides = [1, 1]} : vector<2x384xf32> to vector<2x128xf32>
    %367 = arith.addf %366, %9 : vector<2x128xf32>
    %368 = arith.mulf %356, %367 : vector<2x128xf32>
    %369 = arith.addf %365, %368 : vector<2x128xf32>
    %370 = math.tanh %369 : vector<2x128xf32>
    %cst_106 = arith.constant 1.000000e+00 : f32
    %371 = vector.broadcast %cst_106 : f32 to vector<2x128xf32>
    %372 = arith.subf %371, %364 : vector<2x128xf32>
    %373 = arith.mulf %372, %370 : vector<2x128xf32>
    %374 = arith.mulf %364, %309 : vector<2x128xf32>
    %375 = arith.addf %373, %374 : vector<2x128xf32>
    %376 = vector.extract_strided_slice %338 {offsets = [0, 0], sizes = [2, 32], strides = [1, 1]} : vector<2x128xf32> to vector<2x32xf32>
    %cst_107 = arith.constant dense<0.000000e+00> : vector<2x384xf32>
    %377 = tpu.matmul %376, %8, %cst_107 {dimension_numbers = #tpu.dot_dimension_numbers<[1], [0], [0], [1], [0, 0, 1, 1], [], []>} : vector<2x32xf32>, vector<32x384xf32>, vector<2x384xf32> -> vector<2x384xf32>
    %378 = vector.extract_strided_slice %346 {offsets = [0, 0], sizes = [2, 128], strides = [1, 1]} : vector<2x384xf32> to vector<2x128xf32>
    %379 = vector.extract_strided_slice %377 {offsets = [0, 0], sizes = [2, 128], strides = [1, 1]} : vector<2x384xf32> to vector<2x128xf32>
    %380 = arith.addf %378, %379 : vector<2x128xf32>
    %381 = arith.negf %380 : vector<2x128xf32>
    %382 = math.exp %381 : vector<2x128xf32>
    %cst_108 = arith.constant 1.000000e+00 : f32
    %383 = vector.broadcast %cst_108 : f32 to vector<2x128xf32>
    %384 = arith.addf %383, %382 : vector<2x128xf32>
    %385 = arith.divf %383, %384 : vector<2x128xf32>
    %386 = vector.extract_strided_slice %346 {offsets = [0, 128], sizes = [2, 128], strides = [1, 1]} : vector<2x384xf32> to vector<2x128xf32>
    %387 = vector.extract_strided_slice %377 {offsets = [0, 128], sizes = [2, 128], strides = [1, 1]} : vector<2x384xf32> to vector<2x128xf32>
    %388 = arith.addf %386, %387 : vector<2x128xf32>
    %389 = arith.negf %388 : vector<2x128xf32>
    %390 = math.exp %389 : vector<2x128xf32>
    %cst_109 = arith.constant 1.000000e+00 : f32
    %391 = vector.broadcast %cst_109 : f32 to vector<2x128xf32>
    %392 = arith.addf %391, %390 : vector<2x128xf32>
    %393 = arith.divf %391, %392 : vector<2x128xf32>
    %394 = vector.extract_strided_slice %346 {offsets = [0, 256], sizes = [2, 128], strides = [1, 1]} : vector<2x384xf32> to vector<2x128xf32>
    %395 = vector.extract_strided_slice %377 {offsets = [0, 256], sizes = [2, 128], strides = [1, 1]} : vector<2x384xf32> to vector<2x128xf32>
    %396 = arith.addf %395, %10 : vector<2x128xf32>
    %397 = arith.mulf %385, %396 : vector<2x128xf32>
    %398 = arith.addf %394, %397 : vector<2x128xf32>
    %399 = math.tanh %398 : vector<2x128xf32>
    %cst_110 = arith.constant 1.000000e+00 : f32
    %400 = vector.broadcast %cst_110 : f32 to vector<2x128xf32>
    %401 = arith.subf %400, %393 : vector<2x128xf32>
    %402 = arith.mulf %401, %399 : vector<2x128xf32>
    %403 = arith.mulf %393, %338 : vector<2x128xf32>
    %404 = arith.addf %402, %403 : vector<2x128xf32>
    %c5_111 = arith.constant 5 : index
    %c0_112 = arith.constant 0 : index
    %c0_113 = arith.constant 0 : index
    %405 = vector.load %arg8[%c5_111, %c0_112, %c0_113] : memref<8x2x128xf32, #tpu.memory_space<vmem>>, vector<1x2x128xf32>
    %406 = vector.shape_cast %405 : vector<1x2x128xf32> to vector<2x128xf32>
    %407 = vector.shape_cast %375 : vector<2x128xf32> to vector<1x2x128xf32>
    tpu.vector_store %arg8[%c5_111, %c0_112, %c0_113], %407 {strides = array<i32>} : memref<8x2x128xf32, #tpu.memory_space<vmem>>, vector<1x2x128xf32>,
    %c2_114 = arith.constant 2 : index
    %c0_115 = arith.constant 0 : index
    %c0_116 = arith.constant 0 : index
    %408 = vector.load %arg11[%c2_114, %c0_115, %c0_116] : memref<8x2x128xf32, #tpu.memory_space<vmem>>, vector<1x2x128xf32>
    %409 = vector.shape_cast %408 : vector<1x2x128xf32> to vector<2x128xf32>
    %410 = vector.shape_cast %404 : vector<2x128xf32> to vector<1x2x128xf32>
    tpu.vector_store %arg11[%c2_114, %c0_115, %c0_116], %410 {strides = array<i32>} : memref<8x2x128xf32, #tpu.memory_space<vmem>>, vector<1x2x128xf32>,
    %c12_117 = arith.constant 12 : index
    %c0_118 = arith.constant 0 : index
    %411 = vector.load %arg10[%c12_117, %c0_118] : memref<16x768xf32, #tpu.memory_space<vmem>>, vector<2x384xf32>
    %c2_119 = arith.constant 2 : index
    %c384_120 = arith.constant 384 : index
    %412 = vector.load %arg10[%c2_119, %c384_120] : memref<16x768xf32, #tpu.memory_space<vmem>>, vector<2x384xf32>
    %413 = vector.extract_strided_slice %375 {offsets = [0, 0], sizes = [2, 32], strides = [1, 1]} : vector<2x128xf32> to vector<2x32xf32>
    %cst_121 = arith.constant dense<0.000000e+00> : vector<2x384xf32>
    %414 = tpu.matmul %413, %7, %cst_121 {dimension_numbers = #tpu.dot_dimension_numbers<[1], [0], [0], [1], [0, 0, 1, 1], [], []>} : vector<2x32xf32>, vector<32x384xf32>, vector<2x384xf32> -> vector<2x384xf32>
    %415 = vector.extract_strided_slice %411 {offsets = [0, 0], sizes = [2, 128], strides = [1, 1]} : vector<2x384xf32> to vector<2x128xf32>
    %416 = vector.extract_strided_slice %414 {offsets = [0, 0], sizes = [2, 128], strides = [1, 1]} : vector<2x384xf32> to vector<2x128xf32>
    %417 = arith.addf %415, %416 : vector<2x128xf32>
    %418 = arith.negf %417 : vector<2x128xf32>
    %419 = math.exp %418 : vector<2x128xf32>
    %cst_122 = arith.constant 1.000000e+00 : f32
    %420 = vector.broadcast %cst_122 : f32 to vector<2x128xf32>
    %421 = arith.addf %420, %419 : vector<2x128xf32>
    %422 = arith.divf %420, %421 : vector<2x128xf32>
    %423 = vector.extract_strided_slice %411 {offsets = [0, 128], sizes = [2, 128], strides = [1, 1]} : vector<2x384xf32> to vector<2x128xf32>
    %424 = vector.extract_strided_slice %414 {offsets = [0, 128], sizes = [2, 128], strides = [1, 1]} : vector<2x384xf32> to vector<2x128xf32>
    %425 = arith.addf %423, %424 : vector<2x128xf32>
    %426 = arith.negf %425 : vector<2x128xf32>
    %427 = math.exp %426 : vector<2x128xf32>
    %cst_123 = arith.constant 1.000000e+00 : f32
    %428 = vector.broadcast %cst_123 : f32 to vector<2x128xf32>
    %429 = arith.addf %428, %427 : vector<2x128xf32>
    %430 = arith.divf %428, %429 : vector<2x128xf32>
    %431 = vector.extract_strided_slice %411 {offsets = [0, 256], sizes = [2, 128], strides = [1, 1]} : vector<2x384xf32> to vector<2x128xf32>
    %432 = vector.extract_strided_slice %414 {offsets = [0, 256], sizes = [2, 128], strides = [1, 1]} : vector<2x384xf32> to vector<2x128xf32>
    %433 = arith.addf %432, %9 : vector<2x128xf32>
    %434 = arith.mulf %422, %433 : vector<2x128xf32>
    %435 = arith.addf %431, %434 : vector<2x128xf32>
    %436 = math.tanh %435 : vector<2x128xf32>
    %cst_124 = arith.constant 1.000000e+00 : f32
    %437 = vector.broadcast %cst_124 : f32 to vector<2x128xf32>
    %438 = arith.subf %437, %430 : vector<2x128xf32>
    %439 = arith.mulf %438, %436 : vector<2x128xf32>
    %440 = arith.mulf %430, %375 : vector<2x128xf32>
    %441 = arith.addf %439, %440 : vector<2x128xf32>
    %442 = vector.extract_strided_slice %404 {offsets = [0, 0], sizes = [2, 32], strides = [1, 1]} : vector<2x128xf32> to vector<2x32xf32>
    %cst_125 = arith.constant dense<0.000000e+00> : vector<2x384xf32>
    %443 = tpu.matmul %442, %8, %cst_125 {dimension_numbers = #tpu.dot_dimension_numbers<[1], [0], [0], [1], [0, 0, 1, 1], [], []>} : vector<2x32xf32>, vector<32x384xf32>, vector<2x384xf32> -> vector<2x384xf32>
    %444 = vector.extract_strided_slice %412 {offsets = [0, 0], sizes = [2, 128], strides = [1, 1]} : vector<2x384xf32> to vector<2x128xf32>
    %445 = vector.extract_strided_slice %443 {offsets = [0, 0], sizes = [2, 128], strides = [1, 1]} : vector<2x384xf32> to vector<2x128xf32>
    %446 = arith.addf %444, %445 : vector<2x128xf32>
    %447 = arith.negf %446 : vector<2x128xf32>
    %448 = math.exp %447 : vector<2x128xf32>
    %cst_126 = arith.constant 1.000000e+00 : f32
    %449 = vector.broadcast %cst_126 : f32 to vector<2x128xf32>
    %450 = arith.addf %449, %448 : vector<2x128xf32>
    %451 = arith.divf %449, %450 : vector<2x128xf32>
    %452 = vector.extract_strided_slice %412 {offsets = [0, 128], sizes = [2, 128], strides = [1, 1]} : vector<2x384xf32> to vector<2x128xf32>
    %453 = vector.extract_strided_slice %443 {offsets = [0, 128], sizes = [2, 128], strides = [1, 1]} : vector<2x384xf32> to vector<2x128xf32>
    %454 = arith.addf %452, %453 : vector<2x128xf32>
    %455 = arith.negf %454 : vector<2x128xf32>
    %456 = math.exp %455 : vector<2x128xf32>
    %cst_127 = arith.constant 1.000000e+00 : f32
    %457 = vector.broadcast %cst_127 : f32 to vector<2x128xf32>
    %458 = arith.addf %457, %456 : vector<2x128xf32>
    %459 = arith.divf %457, %458 : vector<2x128xf32>
    %460 = vector.extract_strided_slice %412 {offsets = [0, 256], sizes = [2, 128], strides = [1, 1]} : vector<2x384xf32> to vector<2x128xf32>
    %461 = vector.extract_strided_slice %443 {offsets = [0, 256], sizes = [2, 128], strides = [1, 1]} : vector<2x384xf32> to vector<2x128xf32>
    %462 = arith.addf %461, %10 : vector<2x128xf32>
    %463 = arith.mulf %451, %462 : vector<2x128xf32>
    %464 = arith.addf %460, %463 : vector<2x128xf32>
    %465 = math.tanh %464 : vector<2x128xf32>
    %cst_128 = arith.constant 1.000000e+00 : f32
    %466 = vector.broadcast %cst_128 : f32 to vector<2x128xf32>
    %467 = arith.subf %466, %459 : vector<2x128xf32>
    %468 = arith.mulf %467, %465 : vector<2x128xf32>
    %469 = arith.mulf %459, %404 : vector<2x128xf32>
    %470 = arith.addf %468, %469 : vector<2x128xf32>
    %c6_129 = arith.constant 6 : index
    %c0_130 = arith.constant 0 : index
    %c0_131 = arith.constant 0 : index
    %471 = vector.load %arg8[%c6_129, %c0_130, %c0_131] : memref<8x2x128xf32, #tpu.memory_space<vmem>>, vector<1x2x128xf32>
    %472 = vector.shape_cast %471 : vector<1x2x128xf32> to vector<2x128xf32>
    %473 = vector.shape_cast %441 : vector<2x128xf32> to vector<1x2x128xf32>
    tpu.vector_store %arg8[%c6_129, %c0_130, %c0_131], %473 {strides = array<i32>} : memref<8x2x128xf32, #tpu.memory_space<vmem>>, vector<1x2x128xf32>,
    %c1_132 = arith.constant 1 : index
    %c0_133 = arith.constant 0 : index
    %c0_134 = arith.constant 0 : index
    %474 = vector.load %arg11[%c1_132, %c0_133, %c0_134] : memref<8x2x128xf32, #tpu.memory_space<vmem>>, vector<1x2x128xf32>
    %475 = vector.shape_cast %474 : vector<1x2x128xf32> to vector<2x128xf32>
    %476 = vector.shape_cast %470 : vector<2x128xf32> to vector<1x2x128xf32>
    tpu.vector_store %arg11[%c1_132, %c0_133, %c0_134], %476 {strides = array<i32>} : memref<8x2x128xf32, #tpu.memory_space<vmem>>, vector<1x2x128xf32>,
    %c14_135 = arith.constant 14 : index
    %c0_136 = arith.constant 0 : index
    %477 = vector.load %arg10[%c14_135, %c0_136] : memref<16x768xf32, #tpu.memory_space<vmem>>, vector<2x384xf32>
    %c0_137 = arith.constant 0 : index
    %c384_138 = arith.constant 384 : index
    %478 = vector.load %arg10[%c0_137, %c384_138] : memref<16x768xf32, #tpu.memory_space<vmem>>, vector<2x384xf32>
    %479 = vector.extract_strided_slice %441 {offsets = [0, 0], sizes = [2, 32], strides = [1, 1]} : vector<2x128xf32> to vector<2x32xf32>
    %cst_139 = arith.constant dense<0.000000e+00> : vector<2x384xf32>
    %480 = tpu.matmul %479, %7, %cst_139 {dimension_numbers = #tpu.dot_dimension_numbers<[1], [0], [0], [1], [0, 0, 1, 1], [], []>} : vector<2x32xf32>, vector<32x384xf32>, vector<2x384xf32> -> vector<2x384xf32>
    %481 = vector.extract_strided_slice %477 {offsets = [0, 0], sizes = [2, 128], strides = [1, 1]} : vector<2x384xf32> to vector<2x128xf32>
    %482 = vector.extract_strided_slice %480 {offsets = [0, 0], sizes = [2, 128], strides = [1, 1]} : vector<2x384xf32> to vector<2x128xf32>
    %483 = arith.addf %481, %482 : vector<2x128xf32>
    %484 = arith.negf %483 : vector<2x128xf32>
    %485 = math.exp %484 : vector<2x128xf32>
    %cst_140 = arith.constant 1.000000e+00 : f32
    %486 = vector.broadcast %cst_140 : f32 to vector<2x128xf32>
    %487 = arith.addf %486, %485 : vector<2x128xf32>
    %488 = arith.divf %486, %487 : vector<2x128xf32>
    %489 = vector.extract_strided_slice %477 {offsets = [0, 128], sizes = [2, 128], strides = [1, 1]} : vector<2x384xf32> to vector<2x128xf32>
    %490 = vector.extract_strided_slice %480 {offsets = [0, 128], sizes = [2, 128], strides = [1, 1]} : vector<2x384xf32> to vector<2x128xf32>
    %491 = arith.addf %489, %490 : vector<2x128xf32>
    %492 = arith.negf %491 : vector<2x128xf32>
    %493 = math.exp %492 : vector<2x128xf32>
    %cst_141 = arith.constant 1.000000e+00 : f32
    %494 = vector.broadcast %cst_141 : f32 to vector<2x128xf32>
    %495 = arith.addf %494, %493 : vector<2x128xf32>
    %496 = arith.divf %494, %495 : vector<2x128xf32>
    %497 = vector.extract_strided_slice %477 {offsets = [0, 256], sizes = [2, 128], strides = [1, 1]} : vector<2x384xf32> to vector<2x128xf32>
    %498 = vector.extract_strided_slice %480 {offsets = [0, 256], sizes = [2, 128], strides = [1, 1]} : vector<2x384xf32> to vector<2x128xf32>
    %499 = arith.addf %498, %9 : vector<2x128xf32>
    %500 = arith.mulf %488, %499 : vector<2x128xf32>
    %501 = arith.addf %497, %500 : vector<2x128xf32>
    %502 = math.tanh %501 : vector<2x128xf32>
    %cst_142 = arith.constant 1.000000e+00 : f32
    %503 = vector.broadcast %cst_142 : f32 to vector<2x128xf32>
    %504 = arith.subf %503, %496 : vector<2x128xf32>
    %505 = arith.mulf %504, %502 : vector<2x128xf32>
    %506 = arith.mulf %496, %441 : vector<2x128xf32>
    %507 = arith.addf %505, %506 : vector<2x128xf32>
    %508 = vector.extract_strided_slice %470 {offsets = [0, 0], sizes = [2, 32], strides = [1, 1]} : vector<2x128xf32> to vector<2x32xf32>
    %cst_143 = arith.constant dense<0.000000e+00> : vector<2x384xf32>
    %509 = tpu.matmul %508, %8, %cst_143 {dimension_numbers = #tpu.dot_dimension_numbers<[1], [0], [0], [1], [0, 0, 1, 1], [], []>} : vector<2x32xf32>, vector<32x384xf32>, vector<2x384xf32> -> vector<2x384xf32>
    %510 = vector.extract_strided_slice %478 {offsets = [0, 0], sizes = [2, 128], strides = [1, 1]} : vector<2x384xf32> to vector<2x128xf32>
    %511 = vector.extract_strided_slice %509 {offsets = [0, 0], sizes = [2, 128], strides = [1, 1]} : vector<2x384xf32> to vector<2x128xf32>
    %512 = arith.addf %510, %511 : vector<2x128xf32>
    %513 = arith.negf %512 : vector<2x128xf32>
    %514 = math.exp %513 : vector<2x128xf32>
    %cst_144 = arith.constant 1.000000e+00 : f32
    %515 = vector.broadcast %cst_144 : f32 to vector<2x128xf32>
    %516 = arith.addf %515, %514 : vector<2x128xf32>
    %517 = arith.divf %515, %516 : vector<2x128xf32>
    %518 = vector.extract_strided_slice %478 {offsets = [0, 128], sizes = [2, 128], strides = [1, 1]} : vector<2x384xf32> to vector<2x128xf32>
    %519 = vector.extract_strided_slice %509 {offsets = [0, 128], sizes = [2, 128], strides = [1, 1]} : vector<2x384xf32> to vector<2x128xf32>
    %520 = arith.addf %518, %519 : vector<2x128xf32>
    %521 = arith.negf %520 : vector<2x128xf32>
    %522 = math.exp %521 : vector<2x128xf32>
    %cst_145 = arith.constant 1.000000e+00 : f32
    %523 = vector.broadcast %cst_145 : f32 to vector<2x128xf32>
    %524 = arith.addf %523, %522 : vector<2x128xf32>
    %525 = arith.divf %523, %524 : vector<2x128xf32>
    %526 = vector.extract_strided_slice %478 {offsets = [0, 256], sizes = [2, 128], strides = [1, 1]} : vector<2x384xf32> to vector<2x128xf32>
    %527 = vector.extract_strided_slice %509 {offsets = [0, 256], sizes = [2, 128], strides = [1, 1]} : vector<2x384xf32> to vector<2x128xf32>
    %528 = arith.addf %527, %10 : vector<2x128xf32>
    %529 = arith.mulf %517, %528 : vector<2x128xf32>
    %530 = arith.addf %526, %529 : vector<2x128xf32>
    %531 = math.tanh %530 : vector<2x128xf32>
    %cst_146 = arith.constant 1.000000e+00 : f32
    %532 = vector.broadcast %cst_146 : f32 to vector<2x128xf32>
    %533 = arith.subf %532, %525 : vector<2x128xf32>
    %534 = arith.mulf %533, %531 : vector<2x128xf32>
    %535 = arith.mulf %525, %470 : vector<2x128xf32>
    %536 = arith.addf %534, %535 : vector<2x128xf32>
    %c7_147 = arith.constant 7 : index
    %c0_148 = arith.constant 0 : index
    %c0_149 = arith.constant 0 : index
    %537 = vector.load %arg8[%c7_147, %c0_148, %c0_149] : memref<8x2x128xf32, #tpu.memory_space<vmem>>, vector<1x2x128xf32>
    %538 = vector.shape_cast %537 : vector<1x2x128xf32> to vector<2x128xf32>
    %539 = vector.shape_cast %507 : vector<2x128xf32> to vector<1x2x128xf32>
    tpu.vector_store %arg8[%c7_147, %c0_148, %c0_149], %539 {strides = array<i32>} : memref<8x2x128xf32, #tpu.memory_space<vmem>>, vector<1x2x128xf32>,
    %c0_150 = arith.constant 0 : index
    %c0_151 = arith.constant 0 : index
    %c0_152 = arith.constant 0 : index
    %540 = vector.load %arg11[%c0_150, %c0_151, %c0_152] : memref<8x2x128xf32, #tpu.memory_space<vmem>>, vector<1x2x128xf32>
    %541 = vector.shape_cast %540 : vector<1x2x128xf32> to vector<2x128xf32>
    %542 = vector.shape_cast %536 : vector<2x128xf32> to vector<1x2x128xf32>
    tpu.vector_store %arg11[%c0_150, %c0_151, %c0_152], %542 {strides = array<i32>} : memref<8x2x128xf32, #tpu.memory_space<vmem>>, vector<1x2x128xf32>,
    %c0_153 = arith.constant 0 : index
    %c0_154 = arith.constant 0 : index
    %c0_155 = arith.constant 0 : index
    %543 = vector.load %arg8[%c0_153, %c0_154, %c0_155] : memref<8x2x128xf32, #tpu.memory_space<vmem>>, vector<8x2x128xf32>
    %c0_156 = arith.constant 0 : index
    %c0_157 = arith.constant 0 : index
    %c0_158 = arith.constant 0 : index
    %544 = vector.load %arg11[%c0_156, %c0_157, %c0_158] : memref<8x2x128xf32, #tpu.memory_space<vmem>>, vector<8x2x128xf32>
    %545 = arith.addf %543, %544 : vector<8x2x128xf32>
    %c0_159 = arith.constant 0 : index
    %c0_160 = arith.constant 0 : index
    %c0_161 = arith.constant 0 : index
    %546 = vector.load %arg8[%c0_159, %c0_160, %c0_161] : memref<8x2x128xf32, #tpu.memory_space<vmem>>, vector<8x2x128xf32>
    tpu.vector_store %arg8[%c0_159, %c0_160, %c0_161], %545 {strides = array<i32>} : memref<8x2x128xf32, #tpu.memory_space<vmem>>, vector<8x2x128xf32>,
    %547 = math.tanh %507 : vector<2x128xf32>
    %c0_162 = arith.constant 0 : index
    %c0_163 = arith.constant 0 : index
    %c0_164 = arith.constant 0 : index
    %548 = vector.load %arg9[%c0_162, %c0_163, %c0_164] : memref<2x2x128xf32, #tpu.memory_space<vmem>>, vector<1x2x128xf32>
    %549 = vector.shape_cast %548 : vector<1x2x128xf32> to vector<2x128xf32>
    %550 = vector.shape_cast %547 : vector<2x128xf32> to vector<1x2x128xf32>
    tpu.vector_store %arg9[%c0_162, %c0_163, %c0_164], %550 {strides = array<i32>} : memref<2x2x128xf32, #tpu.memory_space<vmem>>, vector<1x2x128xf32>,
    %551 = math.tanh %536 : vector<2x128xf32>
    %c1_165 = arith.constant 1 : index
    %c0_166 = arith.constant 0 : index
    %c0_167 = arith.constant 0 : index
    %552 = vector.load %arg9[%c1_165, %c0_166, %c0_167] : memref<2x2x128xf32, #tpu.memory_space<vmem>>, vector<1x2x128xf32>
    %553 = vector.shape_cast %552 : vector<1x2x128xf32> to vector<2x128xf32>
    %554 = vector.shape_cast %551 : vector<2x128xf32> to vector<1x2x128xf32>
    tpu.vector_store %arg9[%c1_165, %c0_166, %c0_167], %554 {strides = array<i32>} : memref<2x2x128xf32, #tpu.memory_space<vmem>>, vector<1x2x128xf32>,
    return
  }
}

</mosaic_0001>

<bundles_post_ra>
// kernel: tpu_custom_call.1
= control target key start
LH: loop header
LB: loop body
LE: loop exit
PB: predicated region body
PF: predicated region fallthrough
CT: control target
= control target key end

     0   :  { %15 = vsyncpa [#allocation5], 0  ;;  %s3633_s0 = inlined_call_operand.hbm [shape: f32[16,64], index: 0, kind: input, shape index: {}]   ;;  %s3634_s1 = inlined_call_operand.hbm [shape: f32[2,2,128], index: 1, kind: input, shape index: {}]   ;;  %s3635_s2 = inlined_call_operand.hbm [shape: f32[64,768], index: 2, kind: input, shape index: {}]   ;;  %s3636_s3 = inlined_call_operand.hbm [shape: f32[1,768], index: 3, kind: input, shape index: {}]   ;;  %s3637_s4 = inlined_call_operand.hbm [shape: f32[32,384], index: 4, kind: input, shape index: {}]   ;;  %s3638_s5 = inlined_call_operand.hbm [shape: f32[32,384], index: 5, kind: input, shape index: {}]   ;;  %s3639_s6 = inlined_call_operand.vmem [shape: f32[2,128], index: 6, kind: input, shape index: {}]   ;;  %s3640_s7 = inlined_call_operand.vmem [shape: f32[2,128], index: 7, kind: input, shape index: {}]   ;;  %s3641_s8 = inlined_call_operand.hbm [shape: f32[8,2,128], index: 8, kind: output, shape index: {0}]   ;;  %s3642_s9 = inlined_call_operand.hbm [shape: f32[2,2,128], index: 9, kind: output, shape index: {1}]  }
   0x1   :  { %16 = vsyncpa [#allocation8], 0 }
   0x2   :  { %17 = vsyncpa [#allocation11], 0 }
   0x3   :  { %18 = vsyncpa [#allocation14], 0 }
   0x4   :  { %19 = vsyncpa [#allocation6], 0  ;;  %s38_s11 = sshll.u32 %s3634_s1, 4  ;;  %s39_s11 = int_to_ptr.hbm [resolvable:$true] %s38_s11 }
   0x5   :  { %20 = vsyncpa [#allocation17], 0  ;;  %s2955_s12 = smov [#allocation7]   ;;  %s65_s16 = sshll.u32 %s3636_s3, 4  ;;  %s66_s16 = int_to_ptr.hbm [resolvable:$true] %s65_s16 }
   0x6   :  { %s40_s13 = sshll.u32 %s2955_s12, 4  ;;  %s2956_s17 = smov 32   ;;  %s41_s13 = int_to_ptr.vmem [resolvable:$true] %s40_s13 }
   0x7   :  { %s2957_s18 = smov 2   ;;  %s2958_s19 = smov [#allocation10]  }
   0x8   :  { %46 = dma.hbm_to_vmem [thread:$0]  %s39_s11, 64, %s41_s13, [#allocation8], %s2956_s17, %s2956_s17, %s2957_s18  }
   0x9   :  { %s67_s20 = sshll.u32 %s2958_s19, 4  ;;  %s25_s22 = sshll.u32 %s3633_s0, 4  ;;  %s68_s20 = int_to_ptr.vmem [resolvable:$true] %s67_s20  ;;  %s26_s22 = int_to_ptr.hbm [resolvable:$true] %s25_s22 }
   0xa   :  { %70 = dma.hbm_to_vmem [thread:$0]  %s66_s16, 96, %s68_s20, [#allocation11]  }
   0xb   :  { %s2959_s23 = smov [#allocation4]   ;;  %s51_s26 = sshll.u32 %s3635_s2, 4  ;;  %s52_s26 = int_to_ptr.hbm [resolvable:$true] %s51_s26 }
   0xc   :  { %s27_s24 = sshll.u32 %s2959_s23, 4  ;;  %s2960_s27 = smov 128   ;;  %s28_s24 = int_to_ptr.vmem [resolvable:$true] %s27_s24 }
   0xd   :  { %s2961_s28 = smov 8   ;;  %s2962_s29 = smov [#allocation9]  }
   0xe   :  { %33 = dma.hbm_to_vmem [thread:$0]  %s26_s22, 256, %s28_s24, [#allocation5], %s2960_s27, %s2960_s27, %s2961_s28  }
   0xf   :  { %s53_s30 = sshll.u32 %s2962_s29, 4  ;;  %s2963_s10 = smov 768   ;;  %s54_s30 = int_to_ptr.vmem [resolvable:$true] %s53_s30 }
  0x10   :  { %s2964_s11 = smov 48   ;;  %s75_s13 = sshll.u32 %s3637_s4, 4  ;;  %s76_s13 = int_to_ptr.hbm [resolvable:$true] %s75_s13 }
  0x11   :  { %59 = dma.hbm_to_vmem [thread:$0]  %s52_s26, 6144, %s54_s30, [#allocation8], %s2963_s10, %s2963_s10, %s2964_s11  }
  0x12   :  { %s2965_s14 = smov [#allocation12]   ;;  %s88_s19 = sshll.u32 %s3638_s5, 4  ;;  %s89_s19 = int_to_ptr.hbm [resolvable:$true] %s88_s19 }
  0x13   :  { %s77_s15 = sshll.u32 %s2965_s14, 4  ;;  %s2966_s20 = smov 384   ;;  %s78_s15 = int_to_ptr.vmem [resolvable:$true] %s77_s15 }
  0x14   :  { %s2967_s21 = smov 24   ;;  %s2968_s1 = smov [#allocation13]  }
  0x15   :  { %83 = dma.hbm_to_vmem [thread:$0]  %s76_s13, 1536, %s78_s15, [#allocation11], %s2966_s20, %s2966_s20, %s2967_s21  }
  0x16   :  { %s90_s22 = sshll.u32 %s2968_s1, 4  ;;  %s91_s22 = int_to_ptr.vmem [resolvable:$true] %s90_s22 }
  0x17   :  { %96 = dma.hbm_to_vmem [thread:$0]  %s89_s19, 1536, %s91_s22, [#allocation14], %s2966_s20, %s2966_s20, %s2967_s21  }
  0x18   :  { %2943 = dma.done.wait [#allocation5], 256  }
  0x19   :  { %2944 = vsyncadd [#allocation5], 4294967040 }
  0x1a   :  { %2945 = dma.done.wait [#allocation8], 6208  }
  0x1b   :  { %2946 = vsyncadd [#allocation8], 4294961088 }
  0x1c   :  { %2947 = dma.done.wait [#allocation11], 1632  }
  0x1d   :  { %2948 = vsyncadd [#allocation11], 4294965664 }
  0x1e   :  { %2949 = dma.done.wait [#allocation14], 1536  }
  0x1f   :  { %2950 = vsyncadd [#allocation14], 4294965760  ;;  %v169_v0 = vld [vmem:[#allocation9 + $0x150] sm:$0xff]  ;;  %v171_v1 = vld [vmem:[#allocation9 + $0x160] sm:$0xff]  ;;  %vm189_vm0 = vcmask 523264   ;;  %vm381_vm1 = vcmask 261120  }
  0x20   :  { %v172_v2 = vld [vmem:[#allocation9 + $0x168] sm:$0xff]  ;;  %204 = vmatpush.msra.mxu0 %v169_v0  ;;  %250 = vmatpush.msra.mxu2 %v171_v1  ;;  %v163_v3 = vld [vmem:[#allocation9 + $0x120] sm:$0xff]  ;;  %v165_v4 = vld [vmem:[#allocation9 + $0x130] sm:$0xff]  ;;  %s2432_s30 = sshll.u32 %s3642_s9, 4  ;;  %s2970_s10 = smov [#allocation15]   ;;  %s2433_s30 = int_to_ptr.hbm [resolvable:$true] %s2432_s30 }
  0x21   :  { %v166_v5 = vld [vmem:[#allocation9 + $0x138] sm:$0xff]  ;;  %273 = vmatpush.msra.mxu3 %v172_v2  ;;  %v157_v6 = vld [vmem:[#allocation9 + $0xf0] sm:$0xff]  ;;  %v159_v7 = vld [vmem:[#allocation9 + $0x100] sm:$0xff]  ;;  %s2417_s11 = sshll.u32 %s2970_s10, 4  ;;  %s2419_s13 = sshll.u32 %s3641_s8, 4  ;;  %s2418_s11 = int_to_ptr.vmem [resolvable:$true] %s2417_s11  ;;  %s2420_s13 = int_to_ptr.hbm [resolvable:$true] %s2419_s13 }
  0x22   :  { %205 = vmatpush.msra.mxu0 %v163_v3  ;;  %251 = vmatpush.msra.mxu2 %v165_v4  ;;  %v160_v8 = vld [vmem:[#allocation9 + $0x108] sm:$0xff]  ;;  %v151_v9 = vld [vmem:[#allocation9 + $0xc0] sm:$0xff]  ;;  %v153_v10 = vld [vmem:[#allocation9 + $0xd0] sm:$0xff] }
  0x23   :  { %274 = vmatpush.msra.mxu3 %v166_v5  ;;  %v154_v11 = vld [vmem:[#allocation9 + $0xd8] sm:$0xff]  ;;  %v145_v12 = vld [vmem:[#allocation9 + $0x90] sm:$0xff]  ;;  %v147_v13 = vld [vmem:[#allocation9 + $0xa0] sm:$0xff] }
  0x24   :  { %206 = vmatpush.msra.mxu0 %v157_v6  ;;  %252 = vmatpush.msra.mxu2 %v159_v7  ;;  %v170_v14 = vld [vmem:[#allocation9 + $0x158] sm:$0xff]  ;;  %v148_v15 = vld [vmem:[#allocation9 + $0xa8] sm:$0xff]  ;;  %v139_v17 = vld [vmem:[#allocation9 + $0x60] sm:$0xff] }
  0x25   :  { %275 = vmatpush.msra.mxu3 %v160_v8  ;;  %v164_v16 = vld [vmem:[#allocation9 + $0x128] sm:$0xff]  ;;  %v141_v18 = vld [vmem:[#allocation9 + $0x70] sm:$0xff]  ;;  %227 = vmatpush.msra.mxu1 %v170_v14  ;;  %v142_v19 = vld [vmem:[#allocation9 + $0x78] sm:$0xff] }
  0x26   :  { %207 = vmatpush.msra.mxu0 %v151_v9  ;;  %253 = vmatpush.msra.mxu2 %v153_v10  ;;  %v158_v20 = vld [vmem:[#allocation9 + $0xf8] sm:$0xff]  ;;  %v133_v21 = vld [vmem:[#allocation9 + $0x30] sm:$0xff]  ;;  %v135_v22 = vld [vmem:[#allocation9 + $0x40] sm:$0xff] }
  0x27   :  { %276 = vmatpush.msra.mxu3 %v154_v11  ;;  %228 = vmatpush.msra.mxu1 %v164_v16  ;;  %v136_v23 = vld [vmem:[#allocation9 + $0x48] sm:$0xff]  ;;  %v127_v25 = vld [vmem:[#allocation9] sm:$0xff]  ;;  %v129_v26 = vld [vmem:[#allocation9 + $0x10] sm:$0xff] }
  0x28   :  { %208 = vmatpush.msra.mxu0 %v145_v12  ;;  %254 = vmatpush.msra.mxu2 %v147_v13  ;;  %v152_v24 = vld [vmem:[#allocation9 + $0xc8] sm:$0xff]  ;;  %v130_v27 = vld [vmem:[#allocation9 + $0x18] sm:$0xff]  ;;  %v173_v30 = vld [vmem:[#allocation9 + $0x170] sm:$0xff] }
  0x29   :  { %277 = vmatpush.msra.mxu3 %v148_v15  ;;  %229 = vmatpush.msra.mxu1 %v158_v20  ;;  %v3042_v28 = vld [vmem:[#allocation4] sm:$0xff]  ;;  %v3044_v29 = vld [vmem:[#allocation12 + $0x50] sm:$0xff]  ;;  %v167_v33 = vld [vmem:[#allocation9 + $0x140] sm:$0xff] }
  0x2a   :  { %209 = vmatpush.msra.mxu0 %v139_v17  ;;  %255 = vmatpush.msra.mxu2 %v141_v18  ;;  %v3048_v31 = vld [vmem:[#allocation12 + $0x48] sm:$0xff]  ;;  %v146_v32 = vld [vmem:[#allocation9 + $0x98] sm:$0xff]  ;;  %v3060_v38 = vld [vmem:[#allocation12 + $0x20] sm:$0xff] }
  0x2b   :  { %278 = vmatpush.msra.mxu3 %v142_v19  ;;  %230 = vmatpush.msra.mxu1 %v152_v24  ;;  %v3054_v34 = vld [vmem:[#allocation12 + $0x38] sm:$0xff]  ;;  %v140_v35 = vld [vmem:[#allocation9 + $0x68] sm:$0xff]  ;;  %v3057_v36 = vld [vmem:[#allocation12 + $0x30] sm:$0xff] }
  0x2c   :  { %210 = vmatpush.msra.mxu0 %v133_v21  ;;  %256 = vmatpush.msra.mxu2 %v135_v22  ;;  %v161_v37 = vld [vmem:[#allocation9 + $0x110] sm:$0xff]  ;;  %v134_v39 = vld [vmem:[#allocation9 + $0x38] sm:$0xff]  ;;  %v155_v41 = vld [vmem:[#allocation9 + $0xe0] sm:$0xff] }
  0x2d   :  { %279 = vmatpush.msra.mxu3 %v136_v23  ;;  %231 = vmatpush.msra.mxu1 %v146_v32  ;;  %v3063_v40 = vld [vmem:[#allocation12 + $0x18] sm:$0xff]  ;;  %v3066_v42 = vld [vmem:[#allocation12 + $0x8] sm:$0xff]  ;;  %v3073_v46 = vld [vmem:[#allocation12] sm:$0xff] }
  0x2e   :  { %211 = vmatpush.msra.mxu0 %v127_v25  ;;  %257 = vmatpush.msra.mxu2 %v129_v26  ;;  %v3068_v43 = vld [vmem:[#allocation4 + $0x8] sm:$0xff]  ;;  %v128_v45 = vld [vmem:[#allocation9 + $0x8] sm:$0xff]  ;;  %v143_v47 = vld [vmem:[#allocation9 + $0x80] sm:$0xff] }
  0x2f   :  { %280 = vmatpush.msra.mxu3 %v130_v27  ;;  %2453 = vmatmul.msk.f32.vlgmr.msra.gmra.mxu0 %vm189_vm0, %v3042_v28  ;;  %v149_v44 = vld [vmem:[#allocation9 + $0xb0] sm:$0xff]  ;;  %v174_v49 = vld [vmem:[#allocation9 + $0x178] sm:$0xff]  ;;  %v168_v53 = vld [vmem:[#allocation9 + $0x148] sm:$0xff] }
  0x30   :  { %2457 = vmatmul.msk.f32.vlgmr.msra.gmra.mxu2 %vm189_vm0, %v3042_v28  ;;  %2459 = vmatmul.msk.f32.vlgmr.msra.gmra.mxu3 %vm189_vm0, %v3042_v28  ;;  %v3081_v48 = vld [vmem:[#allocation13 + $0x48] sm:$0xff]  ;;  %v3084_v51 = vld [vmem:[#allocation12 + $0x58] sm:$0xff]  ;;  %v3088_v52 = vld [vmem:[#allocation13 + $0x30] sm:$0xff] }
  0x31   :  { %417 = vmatpush.msrb.mxu3 %v3044_v29  ;;  %296 = vmatpush.msrb.mxu0 %v173_v30  ;;  %v137_v50 = vld [vmem:[#allocation9 + $0x50] sm:$0xff]  ;;  %v131_v54 = vld [vmem:[#allocation9 + $0x20] sm:$0xff]  ;;  %v3093_v56 = vld [vmem:[#allocation7] sm:$0x3] }
  0x32   :  { %397 = vmatpush.msrb.mxu2 %v3048_v31  ;;  %232 = vmatpush.msra.mxu1 %v140_v35  ;;  %v3091_v55 = vld [vmem:[#allocation12 + $0x40] sm:$0xff]  ;;  %v3097_v57 = vld [vmem:[#allocation13 + $0x50] sm:$0xff]  ;;  %v3099_v58 = vld [vmem:[#allocation13 + $0x18] sm:$0xff] }
  0x33   :  { %297 = vmatpush.msrb.mxu0 %v167_v33  ;;  %418 = vmatpush.msrb.mxu3 %v3054_v34  ;;  %v162_v59 = vld [vmem:[#allocation9 + $0x118] sm:$0xff]  ;;  %v3110_v61 = vld [vmem:[#allocation13] sm:$0xff]  ;;  %v3116_v0 = vld [vmem:[#allocation12 + $0x28] sm:$0xff] }
  0x34   :  { %398 = vmatpush.msrb.mxu2 %v3057_v36  ;;  %233 = vmatpush.msra.mxu1 %v134_v39  ;;  %v3106_v60 = vld [vmem:[#allocation13 + $0x38] sm:$0xff]  ;;  %v156_v62 = vld [vmem:[#allocation9 + $0xe8] sm:$0xff]  ;;  %v3124_v3 = vld [vmem:[#allocation12 + $0x10] sm:$0xff] }
  0x35   :  { %298 = vmatpush.msrb.mxu0 %v161_v37  ;;  %419 = vmatpush.msrb.mxu3 %v3060_v38  ;;  %v3114_v63 = vld [vmem:[#allocation13 + $0x20] sm:$0xff]  ;;  %v150_v1 = vld [vmem:[#allocation9 + $0xb8] sm:$0xff]  ;;  %v3122_v2 = vld [vmem:[#allocation13 + $0x8] sm:$0xff] }
  0x36   :  { %399 = vmatpush.msrb.mxu2 %v3063_v40  ;;  %234 = vmatpush.msra.mxu1 %v128_v45  ;;  %v144_v4 = vld [vmem:[#allocation9 + $0x88] sm:$0xff]  ;;  %v3128_v5 = vld [vmem:[#allocation7 + $0x2] sm:$0x3]  ;;  %v3159_v11 = vld [vmem:[#allocation13 + $0x10] sm:$0xff] }
  0x37   :  { %299 = vmatpush.msrb.mxu0 %v155_v41  ;;  %420 = vmatpush.msrb.mxu3 %v3066_v42  ;;  %v138_v6 = vld [vmem:[#allocation9 + $0x58] sm:$0xff]  ;;  %v132_v7 = vld [vmem:[#allocation9 + $0x28] sm:$0xff]  ;;  %v3190_v12 = vld [vmem:[#allocation10] sm:$0x3f] }
  0x38   :  { %2454 = vmatmul.msk.f32.gmra.mxu0 %vm189_vm0, %v3068_v43  ;;  %2458 = vmatmul.msk.f32.gmra.mxu2 %vm189_vm0, %v3068_v43  ;;  %v3140_v8 = vld [vmem:[#allocation13 + $0x58] sm:$0xff]  ;;  %v3147_v9 = vld [vmem:[#allocation13 + $0x40] sm:$0xff]  ;;  %v3152_v10 = vld [vmem:[#allocation13 + $0x28] sm:$0xff]  ;;  %v177_v13 = vperm.slane %v3190_v12, 0  ;;  %v179_v16 = vperm.slane %v3190_v12, 2  ;;  %v180_v17 = vperm.slane %v3190_v12, 3 }
  0x39   :  { %2460 = vmatmul.msk.f32.gmra.mxu3 %vm189_vm0, %v3068_v43  ;;  %300 = vmatpush.msrb.mxu0 %v149_v44  ;;  %v178_v23 = vperm.slane %v3190_v12, 1  ;;  %v181_v27 = vperm.slane %v3190_v12, 4 }
  0x3a   :  { %400 = vmatpush.msrb.mxu2 %v3073_v46  ;;  %2455 = vmatmul.msk.f32.vlgmr.msra.gmra.mxu1 %vm189_vm0, %v3042_v28 }
  0x3b   :  { %301 = vmatpush.msrb.mxu0 %v143_v47  ;;  %508 = vmatpush.msra.mxu3 %v3081_v48 }
  0x3c   :  { %319 = vmatpush.msrb.mxu1 %v174_v49  ;;  %437 = vmatpush.msra.mxu2 %v3084_v51 }
  0x3d   :  { %302 = vmatpush.msrb.mxu0 %v137_v50  ;;  %509 = vmatpush.msra.mxu3 %v3088_v52 }
  0x3e   :  { %320 = vmatpush.msrb.mxu1 %v168_v53  ;;  %438 = vmatpush.msra.mxu2 %v3091_v55 }
  0x3f   :  { %303 = vmatpush.msrb.mxu0 %v131_v54  ;;  %510 = vmatpush.msra.mxu3 %v3099_v58 }
  0x40   :  { %2461 = vmatmul.msk.f32.vlgmr.msrb.gmra.mxu0 %vm189_vm0, %v3042_v28  ;;  %2465 = vmatmul.msk.f32.vlgmr.msrb.gmra.mxu2 %vm381_vm1, %v3093_v56 }
  0x41   :  { %2466 = vmatmul.msk.f32.vlgmr.msrb.gmra.mxu3 %vm381_vm1, %v3093_v56  ;;  %528 = vmatpush.msra.mxu0 %v3097_v57 }
  0x42   :  { %321 = vmatpush.msrb.mxu1 %v162_v59  ;;  %511 = vmatpush.msra.mxu3 %v3110_v61 }
  0x43   :  { %529 = vmatpush.msra.mxu0 %v3106_v60  ;;  %2456 = vmatmul.msk.f32.gmra.mxu1 %vm189_vm0, %v3068_v43 }
  0x44   :  { %322 = vmatpush.msrb.mxu1 %v156_v62  ;;  %439 = vmatpush.msra.mxu2 %v3116_v0 }
  0x45   :  { %530 = vmatpush.msra.mxu0 %v3114_v63  ;;  %659 = vmatpush.msrb.mxu3 %v3044_v29 }
  0x46   :  { %323 = vmatpush.msrb.mxu1 %v150_v1  ;;  %440 = vmatpush.msra.mxu2 %v3124_v3  ;;  %v182_v1 = vperm.slane %v3190_v12, 5 }
  0x47   :  { %531 = vmatpush.msra.mxu0 %v3122_v2  ;;  %660 = vmatpush.msrb.mxu3 %v3054_v34 }
  0x48   :  { %2462 = vmatmul.msk.f32.gmra.mxu0 %vm189_vm0, %v3068_v43  ;;  %324 = vmatpush.msrb.mxu1 %v144_v4 }
  0x49   :  { %2470 = vmatmul.msk.f32.vlgmr.msra.gmra.mxu3 %vm381_vm1, %v3128_v5  ;;  %2467 = vmatmul.msk.f32.vlgmr.msra.gmra.mxu2 %vm381_vm1, %v3093_v56 }
  0x4a   :  { %325 = vmatpush.msrb.mxu1 %v138_v6  ;;  %639 = vmatpush.msrb.mxu2 %v3048_v31 }
  0x4b   :  { %679 = vmatpush.msrb.mxu0 %v3084_v51  ;;  %661 = vmatpush.msrb.mxu3 %v3060_v38 }
  0x4c   :  { %326 = vmatpush.msrb.mxu1 %v132_v7  ;;  %640 = vmatpush.msrb.mxu2 %v3057_v36 }
  0x4d   :  { %2463 = vmatmul.msk.f32.vlgmr.msrb.gmra.mxu1 %vm189_vm0, %v3042_v28  ;;  %680 = vmatpush.msrb.mxu0 %v3091_v55 }
  0x4e   :  { %548 = vmatpush.msra.mxu1 %v3140_v8  ;;  %641 = vmatpush.msrb.mxu2 %v3063_v40 }
  0x4f   :  { %681 = vmatpush.msrb.mxu0 %v3116_v0  ;;  %662 = vmatpush.msrb.mxu3 %v3066_v42 }
  0x50   :  { %2471 = vmatmul.msk.f32.vlgmr.msra.gmra.mxu0 %vm381_vm1, %v3128_v5  ;;  %549 = vmatpush.msra.mxu1 %v3147_v9 }
  0x51   :  { %642 = vmatpush.msrb.mxu2 %v3073_v46  ;;  %682 = vmatpush.msrb.mxu0 %v3124_v3 }
  0x52   :  { %550 = vmatpush.msra.mxu1 %v3152_v10  ;;  %802 = vmatpush.msra.mxu3 %v3140_v8 }
  0x53   :  { %782 = vmatpush.msra.mxu2 %v3097_v57  ;;  %895 = vmatpush.msra.mxu0 %v3048_v31 }
  0x54   :  { %551 = vmatpush.msra.mxu1 %v3159_v11  ;;  %803 = vmatpush.msra.mxu3 %v3147_v9 }
  0x55   :  { %2464 = vmatmul.msk.f32.gmra.mxu1 %vm189_vm0, %v3068_v43  ;;  %783 = vmatpush.msra.mxu2 %v3106_v60 }
  0x56   :  { %762 = vmatpush.msrb.mxu1 %v3081_v48  ;;  %896 = vmatpush.msra.mxu0 %v3057_v36 }
  0x57   :  { %784 = vmatpush.msra.mxu2 %v3114_v63  ;;  %804 = vmatpush.msra.mxu3 %v3152_v10 }
  0x58   :  { %763 = vmatpush.msrb.mxu1 %v3088_v52  ;;  %897 = vmatpush.msra.mxu0 %v3063_v40 }
  0x59   :  { %785 = vmatpush.msra.mxu2 %v3122_v2  ;;  %805 = vmatpush.msra.mxu3 %v3159_v11 }
  0x5a   :  { %764 = vmatpush.msrb.mxu1 %v3099_v58  ;;  %898 = vmatpush.msra.mxu0 %v3073_v46 }
  0x5c   :  { %765 = vmatpush.msrb.mxu1 %v3110_v61 }
  0x5d   :  { %2472 = vmatmul.msk.f32.vlgmr.msra.gmra.mxu1 %vm381_vm1, %v3128_v5 }
  0x5e   :  { %915 = vmatpush.msra.mxu1 %v3044_v29 }
  0x60   :  { %916 = vmatpush.msra.mxu1 %v3054_v34 }
  0x62   :  { %917 = vmatpush.msra.mxu1 %v3060_v38 }
  0x64   :  { %918 = vmatpush.msra.mxu1 %v3066_v42 }
  0xac   :  { %v213_v14 = vpop.f32.mrf.mxu0 }
  0xad   :  { %v214_v15 = vadd.f32 %v213_v14, %v177_v13 }
  0xaf   :  { %334 = vst [vmem:[#allocation2 + $0x30] sm:$0xff] %v214_v15 }
  0xb3   :  { %v259_v18 = vpop.f32.mrf.mxu2  ;;  %v282_v19 = vpop.f32.mrf.mxu3 }
  0xb4   :  { %v260_v20 = vadd.f32 %v259_v18, %v179_v16  ;;  %v283_v21 = vadd.f32 %v282_v19, %v180_v17 }
  0xb5   :  { %v216_v22 = vpop.f32.mrf.mxu0 }
  0xb6   :  { %336 = vst [vmem:[#allocation2 + $0x58] sm:$0xff] %v260_v20  ;;  %v217_v24 = vadd.f32 %v216_v22, %v177_v13  ;;  %v375_v44 = vld [vmem:[#allocation2 + $0x30] sm:$0x3] }
  0xb7   :  { %337 = vst [vmem:[#allocation2 + $0x18] sm:$0xff] %v283_v21  ;;  %v236_v25 = vpop.f32.mrf.mxu1 }
  0xb8   :  { %340 = vst [vmem:[#allocation2 + $0x8] sm:$0xff] %v217_v24  ;;  %v237_v26 = vadd.f32 %v236_v25, %v178_v23 }
  0xba   :  { %335 = vst [vmem:[#allocation2] sm:$0xff] %v237_v26 }
  0xbb   :  { %v262_v28 = vpop.f32.mrf.mxu2 }
  0xbc   :  { %v263_v30 = vadd.f32 %v262_v28, %v179_v16  ;;  %v285_v32 = vpop.f32.mrf.mxu3 }
  0xbd   :  { %v286_v33 = vadd.f32 %v285_v32, %v180_v17  ;;  %v305_v35 = vpop.f32.mrf.mxu0 }
  0xbe   :  { %342 = vst [vmem:[#allocation2 + $0x28] sm:$0xff] %v263_v30  ;;  %v306_v37 = vadd.f32 %v305_v35, %v181_v27 }
  0xbf   :  { %343 = vst [vmem:[#allocation2 + $0x48] sm:$0xff] %v286_v33 }
  0xc0   :  { %338 = vst [vmem:[#allocation2 + $0x50] sm:$0xff] %v306_v37  ;;  %v239_v39 = vpop.f32.mrf.mxu1 }
  0xc1   :  { %v240_v41 = vadd.f32 %v239_v39, %v178_v23  ;;  %v376_v43 = vld [vmem:[#allocation2] sm:$0x3] }
  0xc3   :  { %v402_v45 = vpop.f32.mrf.mxu2  ;;  %341 = vst [vmem:[#allocation2 + $0x38] sm:$0xff] %v240_v41 }
  0xc4   :  { %v445_v47 = vadd.f32 %v402_v45, %v375_v44  ;;  %v422_v49 = vpop.f32.mrf.mxu3  ;;  %v3207_v44 = vld [vmem:[%s3639_s6] sm:$0x3] }
  0xc5   :  { %v465_v50 = vadd.f32 %v422_v49, %v376_v43  ;;  %v308_v53 = vpop.f32.mrf.mxu0 }
  0xc6   :  { %v2468_v54 = vmul.f32 -1.442695, %v445_v47  ;;  %v309_v59 = vadd.f32 %v308_v53, %v181_v27  ;;  %v378_v16 = vld [vmem:[#allocation2 + $0x48] sm:$0xc0] }
  0xc7   :  { %v2469_v62 = vmul.f32 -1.442695, %v465_v50 }
  0xc8   :  { %2561 = vpow2.f32 %v2468_v54  ;;  %344 = vst [vmem:[#allocation2 + $0x10] sm:$0xff] %v309_v59 }
  0xc9   :  { %2563 = vpow2.f32 %v2469_v62 }
  0xca   :  { %v328_v4 = vpop.f32.mrf.mxu1 }
  0xcb   :  { %v329_v6 = vadd.f32 %v328_v4, %v182_v1 }
  0xcc   :  { %v513_v7 = vpop.f32.mrf.mxu3  ;;  %v442_v45 = vpop.f32.mrf.mxu2 }
  0xcd   :  { %v557_v13 = vrot.slane %v513_v7, 2  ;;  %v533_v14 = vpop.f32.mrf.mxu0  ;;  %339 = vst [vmem:[#allocation2 + $0x20] sm:$0xff] %v329_v6  ;;  %v485_v59 = vadd.f32 %v442_v45, %v3207_v44 }
  0xce   :  { %v2562_v15 = vpop.eup %2561  ;;  %v580_v17 = vrot.slane %v533_v14, 2  ;;  %v3215_v14 = vld [vmem:[%s3640_s7] sm:$0x3] }
  0xcf   :  { %v2564_v18 = vpop.eup %2563  ;;  %v449_v19 = vadd.f32 1.0, %v2562_v15  ;;  %v559_v20 = vadd.f32 %v557_v13, %v378_v16  ;;  %v379_v21 = vld [vmem:[#allocation2 + $0x10] sm:$0xc0] }
  0xd0   :  { %v3198_v22 = vadd.f32 1.0, %v2564_v18  ;;  %v582_v23 = vadd.f32 %v580_v17, %v379_v21 }
  0xd1   :  { %2565 = vrcp.f32 %v449_v19  ;;  %v2473_v12 = vmul.f32 -1.442695, %v559_v20  ;;  %v461_v49 = vand.u32 2147483648, %v449_v19  ;;  %v459_v50 = vand.u32 2147483647, %v449_v19 }
  0xd2   :  { %2567 = vrcp.f32 %v3198_v22  ;;  %v331_v24 = vpop.f32.mrf.mxu1  ;;  %v2474_v25 = vmul.f32 -1.442695, %v582_v23  ;;  %vm455_vm3 = vweird.f32 %v449_v19  ;;  %v481_v7 = vand.u32 2147483648, %v3198_v22  ;;  %v377_v20 = vld [vmem:[#allocation2 + $0x58] sm:$0x3] }
  0xd3   :  { %2569 = vpow2.f32 %v2473_v12  ;;  %v332_v26 = vadd.f32 %v331_v24, %v182_v1  ;;  %v462_v62 = vor.u32 1.1754944e-38, %v461_v49  ;;  %vm460_vm5 = vcmp.eq.f32.partialorder %v459_v50, 8.507059e+37 }
  0xd4   :  { %2571 = vpow2.f32 %v2474_v25  ;;  %vm475_vm7 = vweird.f32 %v3198_v22 }
  0xd5   :  { %345 = vst [vmem:[#allocation2 + $0x40] sm:$0xff] %v332_v26  ;;  %v482_v26 = vor.u32 1.1754944e-38, %v481_v7 }
  0xd7   :  { %v2566_v27 = vpop.eup %2565 }
  0xd8   :  { %v2568_v28 = vpop.eup %2567  ;;  %v451_v30 = vmul.f32 %v2566_v27, %v449_v19  ;;  %vm456_vm2 = vweird.f32 %v2566_v27  ;;  %v479_v19 = vand.u32 2147483647, %v3198_v22 }
  0xd9   :  { %v2570_v32 = vpop.eup %2569  ;;  %v471_v33 = vmul.f32 %v2568_v28, %v3198_v22  ;;  %vm457_vm4 = vmor %vm455_vm3, %vm456_vm2  ;;  %vm476_vm6 = vweird.f32 %v2568_v28 }
  0xda   :  { %v563_v35 = vadd.f32 1.0, %v2570_v32  ;;  %v452_v37 = vsub.f32 1.0, %v451_v30  ;;  %v2572_v39 = vpop.eup %2571  ;;  %v553_v15 = vpop.f32.mrf.mxu1  ;;  %vm3219_vm8 = vmor %vm475_vm7, %vm476_vm6  ;;  %vm480_vm10 = vcmp.eq.f32.partialorder %v479_v19, 8.507059e+37 }
  0xdb   :  { %v472_v41 = vsub.f32 1.0, %v471_v33  ;;  %v3202_v43 = vadd.f32 1.0, %v2572_v39  ;;  %v602_v25 = vadd.f32 %v553_v15, %v3215_v14 }
  0xdc   :  { %2573 = vrcp.f32 %v563_v35  ;;  %v453_v47 = vmul.f32 %v2566_v27, %v452_v37  ;;  %v573_v30 = vand.u32 2147483647, %v563_v35  ;;  %v575_v32 = vand.u32 2147483648, %v563_v35 }
  0xdd   :  { %v473_v53 = vmul.f32 %v2568_v28, %v472_v41  ;;  %2575 = vrcp.f32 %v3202_v43  ;;  %vm569_vm11 = vweird.f32 %v563_v35  ;;  %v604_v45 = vrot.slane %v602_v25, 2 }
  0xde   :  { %v454_v54 = vadd.f32 %v2566_v27, %v453_v47  ;;  %v576_v47 = vor.u32 1.1754944e-38, %v575_v32  ;;  %vm592_vm13 = vweird.f32 %v3202_v43  ;;  %vm574_vm14 = vcmp.eq.f32.partialorder %v573_v30, 8.507059e+37 }
  0xdf   :  { %v474_v6 = vadd.f32 %v2568_v28, %v473_v53 }
  0xe0   :  { %v458_v1 = vsel %vm457_vm4, %v2566_v27, %v454_v54 }
  0xe1   :  { %v463_v13 = vsel %vm460_vm5, %v462_v62, %v458_v1  ;;  %v478_v27 = vsel %vm3219_vm8, %v2568_v28, %v474_v6  ;;  %v380_v6 = vld [vmem:[#allocation2 + $0x40] sm:$0xc0] }
  0xe2   :  { %v2574_v4 = vpop.eup %2573  ;;  %v486_v16 = vmul.f32 %v485_v59, %v463_v13  ;;  %v483_v39 = vsel %vm480_vm10, %v482_v26, %v478_v27  ;;  %v598_v59 = vand.u32 2147483648, %v3202_v43  ;;  %v618_v26 = vld [vmem:[#allocation2 + $0x30] sm:$0xc]  ;;  %v619_v27 = vld [vmem:[#allocation2] sm:$0xc] }
  0xe3   :  { %v565_v17 = vmul.f32 %v2574_v4, %v563_v35  ;;  %v2576_v18 = vpop.eup %2575  ;;  %vm570_vm9 = vweird.f32 %v2574_v4  ;;  %v489_v28 = vsub.f32 1.0, %v483_v39  ;;  %v596_v35 = vand.u32 2147483647, %v3202_v43 }
  0xe4   :  { %v588_v23 = vmul.f32 %v2576_v18, %v3202_v43  ;;  %v487_v12 = vadd.f32 %v486_v16, %v377_v20  ;;  %vm571_vm12 = vmor %vm569_vm11, %vm570_vm9  ;;  %vm593_vm15 = vweird.f32 %v2576_v18  ;;  %v491_v7 = vmul.f32 %v483_v39, %v3093_v56 }
  0xe5   :  { %v566_v24 = vsub.f32 1.0, %v565_v17  ;;  %vm594_vm0 = vmor %vm592_vm13, %vm593_vm15  ;;  %vm597_vm2 = vcmp.eq.f32.partialorder %v596_v35, 8.507059e+37  ;;  %v611_v56 = vrot.slane %v3128_v5, 2 }
  0xe6   :  { %v589_v33 = vsub.f32 1.0, %v588_v23  ;;  %2577 = vtanh.f32 %v487_v12 }
  0xe7   :  { %v567_v22 = vmul.f32 %v2574_v4, %v566_v24 }
  0xe8   :  { %v590_v37 = vmul.f32 %v2576_v18, %v589_v33 }
  0xe9   :  { %v568_v41 = vadd.f32 %v2574_v4, %v567_v22 }
  0xea   :  { %v591_v53 = vadd.f32 %v2576_v18, %v590_v37 }
  0xeb   :  { %v572_v49 = vsel %vm571_vm12, %v2574_v4, %v568_v41  ;;  %v599_v4 = vor.u32 1.1754944e-38, %v598_v59  ;;  %v621_v41 = vld [vmem:[#allocation2 + $0x48] sm:$0x30]  ;;  %v622_v59 = vld [vmem:[#allocation2 + $0x10] sm:$0x30] }
  0xec   :  { %v577_v50 = vsel %vm574_vm14, %v576_v47, %v572_v49  ;;  %v2578_v54 = vpop.eup %2577  ;;  %v595_v15 = vsel %vm594_vm0, %v2576_v18, %v591_v53 }
  0xed   :  { %v606_v62 = vmul.f32 %v604_v45, %v577_v50  ;;  %v490_v1 = vmul.f32 %v2578_v54, %v489_v28  ;;  %v600_v43 = vsel %vm597_vm2, %v599_v4, %v595_v15 }
  0xee   :  { %v609_v17 = vsub.f32 1.0, %v600_v43  ;;  %v613_v20 = vmul.f32 %v611_v56, %v600_v43 }
  0xef   :  { %v607_v13 = vadd.f32 %v606_v62, %v380_v6  ;;  %v3231_v16 = vadd.f32 %v491_v7, %v490_v1 }
  0xf1   :  { %2579 = vtanh.f32 %v607_v13  ;;  %615 = vst [vmem:[#allocation15] sm:$0x3] %v3231_v16  ;;  %2475 = vmatmul.msk.f32.vlgmr.msrb.gmra.mxu2 %vm381_vm1, %v3231_v16  ;;  %2476 = vmatmul.msk.f32.vlgmr.msrb.gmra.mxu3 %vm381_vm1, %v3231_v16 }
  0xf2   :  { %2477 = vmatmul.msk.f32.vlgmr.msrb.gmra.mxu0 %vm381_vm1, %v3231_v16  ;;  %935 = vmatpush.msrb.mxu2 %v3084_v51 }
  0xf3   :  { %1018 = vmatpush.msrb.mxu3 %v3081_v48  ;;  %1038 = vmatpush.msrb.mxu0 %v3097_v57 }
  0xf4   :  { %936 = vmatpush.msrb.mxu2 %v3091_v55 }
  0xf5   :  { %1019 = vmatpush.msrb.mxu3 %v3088_v52  ;;  %1039 = vmatpush.msrb.mxu0 %v3106_v60 }
  0xf6   :  { %937 = vmatpush.msrb.mxu2 %v3116_v0 }
  0xf7   :  { %v2580_v18 = vpop.eup %2579  ;;  %1020 = vmatpush.msrb.mxu3 %v3099_v58  ;;  %1040 = vmatpush.msrb.mxu0 %v3114_v63 }
  0xf8   :  { %v610_v19 = vmul.f32 %v2580_v18, %v609_v17  ;;  %938 = vmatpush.msrb.mxu2 %v3124_v3 }
  0xf9   :  { %1021 = vmatpush.msrb.mxu3 %v3110_v61  ;;  %1041 = vmatpush.msrb.mxu0 %v3122_v2 }
  0xfa   :  { %v3251_v5 = vadd.f32 %v613_v20, %v610_v19 }
  0xfc   :  { %617 = vst [vmem:[#allocation3 + $0x8] sm:$0xc0] %v3251_v5  ;;  %v747_v21 = vrot.slane %v3251_v5, 6 }
  0xfe   :  { %2480 = vmatmul.msk.f32.vlgmr.msrb.gmra.mxu1 %vm381_vm1, %v747_v21  ;;  %2481 = vmatmul.msk.f32.vlgmr.msra.gmra.mxu2 %vm381_vm1, %v747_v21 }
  0xff   :  { %2482 = vmatmul.msk.f32.vlgmr.msra.gmra.mxu3 %vm381_vm1, %v747_v21  ;;  %1058 = vmatpush.msrb.mxu1 %v3140_v8 }
 0x100   :  { %1151 = vmatpush.msra.mxu2 %v3048_v31  ;;  %1171 = vmatpush.msra.mxu3 %v3044_v29 }
 0x101   :  { %1059 = vmatpush.msrb.mxu1 %v3147_v9 }
 0x102   :  { %1152 = vmatpush.msra.mxu2 %v3057_v36  ;;  %1172 = vmatpush.msra.mxu3 %v3054_v34 }
 0x103   :  { %1060 = vmatpush.msrb.mxu1 %v3152_v10 }
 0x104   :  { %1153 = vmatpush.msra.mxu2 %v3063_v40  ;;  %1173 = vmatpush.msra.mxu3 %v3060_v38 }
 0x105   :  { %1061 = vmatpush.msrb.mxu1 %v3159_v11 }
 0x106   :  { %1154 = vmatpush.msra.mxu2 %v3073_v46  ;;  %1174 = vmatpush.msra.mxu3 %v3066_v42 }
 0x16f   :  { %v684_v4 = vpop.f32.mrf.mxu0 }
 0x170   :  { %v733_v19 = vadd.f32 %v684_v4, %v3207_v44 }
 0x174   :  { %v644_v23 = vpop.f32.mrf.mxu2  ;;  %v664_v12 = vpop.f32.mrf.mxu3 }
 0x175   :  { %v688_v24 = vrot.slane %v644_v23, 6  ;;  %v711_v25 = vrot.slane %v664_v12, 6 }
 0x177   :  { %v690_v30 = vadd.f32 %v688_v24, %v618_v26  ;;  %v713_v32 = vadd.f32 %v711_v25, %v619_v27 }
 0x179   :  { %v2478_v33 = vmul.f32 -1.442695, %v690_v30  ;;  %v2479_v22 = vmul.f32 -1.442695, %v713_v32 }
 0x17b   :  { %v767_v37 = vpop.f32.mrf.mxu1  ;;  %2581 = vpow2.f32 %v2478_v33 }
 0x17c   :  { %v811_v39 = vrot.slane %v767_v37, 4  ;;  %2583 = vpow2.f32 %v2479_v22  ;;  %v735_v22 = vrot.slane %v733_v19, 6 }
 0x17e   :  { %v813_v45 = vadd.f32 %v811_v39, %v621_v41 }
 0x180   :  { %v2483_v47 = vmul.f32 -1.442695, %v813_v45 }
 0x181   :  { %v787_v49 = vpop.f32.mrf.mxu2  ;;  %v2582_v28 = vpop.eup %2581 }
 0x182   :  { %2585 = vpow2.f32 %v2483_v47  ;;  %v834_v50 = vrot.slane %v787_v49, 4  ;;  %v2584_v53 = vpop.eup %2583  ;;  %v694_v54 = vadd.f32 1.0, %v2582_v28  ;;  %v807_v27 = vpop.f32.mrf.mxu3 }
 0x183   :  { %v717_v62 = vadd.f32 1.0, %v2584_v53  ;;  %v856_v39 = vadd.f32 %v807_v27, %v3215_v14  ;;  %v620_v53 = vld [vmem:[#allocation2 + $0x58] sm:$0xc] }
 0x184   :  { %v836_v35 = vadd.f32 %v834_v50, %v622_v59  ;;  %2587 = vrcp.f32 %v694_v54  ;;  %v706_v20 = vand.u32 2147483648, %v694_v54  ;;  %v704_v12 = vand.u32 2147483647, %v694_v54 }
 0x185   :  { %2589 = vrcp.f32 %v717_v62  ;;  %vm700_vm4 = vweird.f32 %v694_v54  ;;  %vm723_vm8 = vweird.f32 %v717_v62  ;;  %v729_v28 = vand.u32 2147483648, %v717_v62 }
 0x186   :  { %v2484_v1 = vmul.f32 -1.442695, %v836_v35  ;;  %v707_v32 = vor.u32 1.1754944e-38, %v706_v20  ;;  %vm705_vm6 = vcmp.eq.f32.partialorder %v704_v12, 8.507059e+37 }
 0x188   :  { %v2586_v6 = vpop.eup %2585  ;;  %2591 = vpow2.f32 %v2484_v1 }
 0x189   :  { %v817_v7 = vadd.f32 1.0, %v2586_v6 }
 0x18a   :  { %v2588_v13 = vpop.eup %2587 }
 0x18b   :  { %2593 = vrcp.f32 %v817_v7  ;;  %v2590_v15 = vpop.eup %2589  ;;  %v696_v43 = vmul.f32 %v2588_v13, %v694_v54  ;;  %vm701_vm3 = vweird.f32 %v2588_v13  ;;  %v829_v50 = vand.u32 2147483648, %v817_v7 }
 0x18c   :  { %v719_v56 = vmul.f32 %v2590_v15, %v717_v62  ;;  %vm702_vm5 = vmor %vm700_vm4, %vm701_vm3  ;;  %vm724_vm7 = vweird.f32 %v2590_v15  ;;  %v727_v54 = vand.u32 2147483647, %v717_v62  ;;  %v827_v35 = vand.u32 2147483647, %v817_v7 }
 0x18d   :  { %v697_v17 = vsub.f32 1.0, %v696_v43  ;;  %vm3277_vm10 = vmor %vm723_vm8, %vm724_vm7  ;;  %vm823_vm11 = vweird.f32 %v817_v7  ;;  %v830_v62 = vor.u32 1.1754944e-38, %v829_v50 }
 0x18e   :  { %v2592_v18 = vpop.eup %2591  ;;  %v720_v21 = vsub.f32 1.0, %v719_v56  ;;  %vm728_vm13 = vcmp.eq.f32.partialorder %v727_v54, 8.507059e+37  ;;  %vm828_vm14 = vcmp.eq.f32.partialorder %v827_v35, 8.507059e+37 }
 0x18f   :  { %v698_v23 = vmul.f32 %v2588_v13, %v697_v17  ;;  %v3273_v24 = vadd.f32 1.0, %v2592_v18  ;;  %v730_v17 = vor.u32 1.1754944e-38, %v729_v28  ;;  %v858_v18 = vrot.slane %v856_v39, 4 }
 0x190   :  { %v721_v26 = vmul.f32 %v2590_v15, %v720_v21 }
 0x191   :  { %v2594_v25 = vpop.eup %2593  ;;  %v699_v30 = vadd.f32 %v2588_v13, %v698_v23  ;;  %2595 = vrcp.f32 %v3273_v24  ;;  %v852_v21 = vand.u32 2147483648, %v3273_v24  ;;  %v850_v27 = vand.u32 2147483647, %v3273_v24 }
 0x192   :  { %v819_v33 = vmul.f32 %v2594_v25, %v817_v7  ;;  %v722_v45 = vadd.f32 %v2590_v15, %v721_v26  ;;  %vm824_vm9 = vweird.f32 %v2594_v25  ;;  %v742_v7 = vrot.slane %v3231_v16, 6 }
 0x193   :  { %v703_v37 = vsel %vm702_vm5, %v2588_v13, %v699_v30  ;;  %vm825_vm12 = vmor %vm823_vm11, %vm824_vm9  ;;  %v623_v30 = vld [vmem:[#allocation2 + $0x40] sm:$0x30]  ;;  %vm846_vm0 = vweird.f32 %v3273_v24  ;;  %vm851_vm3 = vcmp.eq.f32.partialorder %v850_v27, 8.507059e+37 }
 0x194   :  { %v708_v41 = vsel %vm705_vm6, %v707_v32, %v703_v37  ;;  %v820_v47 = vsub.f32 1.0, %v819_v33  ;;  %v726_v4 = vsel %vm3277_vm10, %v2590_v15, %v722_v45 }
 0x195   :  { %v737_v49 = vmul.f32 %v735_v22, %v708_v41  ;;  %v731_v12 = vsel %vm728_vm13, %v730_v17, %v726_v4 }
 0x196   :  { %v821_v59 = vmul.f32 %v2594_v25, %v820_v47  ;;  %v740_v22 = vsub.f32 1.0, %v731_v12  ;;  %v744_v45 = vmul.f32 %v742_v7, %v731_v12 }
 0x197   :  { %v2596_v1 = vpop.eup %2595  ;;  %v738_v6 = vadd.f32 %v737_v49, %v620_v53 }
 0x198   :  { %v842_v43 = vmul.f32 %v2596_v1, %v3273_v24  ;;  %v822_v56 = vadd.f32 %v2594_v25, %v821_v59  ;;  %vm847_vm15 = vweird.f32 %v2596_v1  ;;  %v865_v24 = vrot.slane %v3251_v5, 2 }
 0x199   :  { %2597 = vtanh.f32 %v738_v6  ;;  %vm848_vm2 = vmor %vm846_vm0, %vm847_vm15 }
 0x19a   :  { %v843_v19 = vsub.f32 1.0, %v842_v43  ;;  %v826_v20 = vsel %vm825_vm12, %v2594_v25, %v822_v56  ;;  %v853_v25 = vor.u32 1.1754944e-38, %v852_v21 }
 0x19b   :  { %v831_v23 = vsel %vm828_vm14, %v830_v62, %v826_v20 }
 0x19c   :  { %v844_v26 = vmul.f32 %v2596_v1, %v843_v19  ;;  %v860_v15 = vmul.f32 %v858_v18, %v831_v23 }
 0x19e   :  { %v845_v32 = vadd.f32 %v2596_v1, %v844_v26  ;;  %v861_v33 = vadd.f32 %v860_v15, %v623_v30 }
 0x19f   :  { %v2598_v37 = vpop.eup %2597 }
 0x1a0   :  { %v849_v39 = vsel %vm848_vm2, %v2596_v1, %v845_v32  ;;  %2599 = vtanh.f32 %v861_v33  ;;  %v741_v41 = vmul.f32 %v2598_v37, %v740_v22 }
 0x1a1   :  { %v854_v47 = vsel %vm851_vm3, %v853_v25, %v849_v39 }
 0x1a2   :  { %v3288_v49 = vadd.f32 %v744_v45, %v741_v41  ;;  %v863_v28 = vsub.f32 1.0, %v854_v47  ;;  %v867_v54 = vmul.f32 %v865_v24, %v854_v47  ;;  %v875_v41 = vld [vmem:[#allocation2 + $0x58] sm:$0x30] }
 0x1a4   :  { %870 = vst [vmem:[#allocation15] sm:$0xc] %v3288_v49  ;;  %v880_v16 = vrot.slane %v3288_v49, 2 }
 0x1a6   :  { %v2600_v50 = vpop.eup %2599  ;;  %2485 = vmatmul.msk.f32.vlgmr.msra.gmra.mxu0 %vm381_vm1, %v880_v16  ;;  %2486 = vmatmul.msk.f32.vlgmr.msra.gmra.mxu1 %vm381_vm1, %v880_v16 }
 0x1a7   :  { %v864_v53 = vmul.f32 %v2600_v50, %v863_v28  ;;  %2487 = vmatmul.msk.f32.vlgmr.msrb.gmra.mxu2 %vm381_vm1, %v880_v16  ;;  %1191 = vmatpush.msra.mxu0 %v3084_v51 }
 0x1a8   :  { %1274 = vmatpush.msra.mxu1 %v3081_v48  ;;  %1294 = vmatpush.msrb.mxu2 %v3097_v57 }
 0x1a9   :  { %v3299_v59 = vadd.f32 %v867_v54, %v864_v53  ;;  %1192 = vmatpush.msra.mxu0 %v3091_v55 }
 0x1aa   :  { %1275 = vmatpush.msra.mxu1 %v3088_v52  ;;  %1295 = vmatpush.msrb.mxu2 %v3106_v60  ;;  %v873_v52 = vld [vmem:[#allocation2 + $0x30] sm:$0x30] }
 0x1ab   :  { %872 = vst [vmem:[#allocation3 + $0x8] sm:$0x30] %v3299_v59  ;;  %v1003_v5 = vrot.slane %v3299_v59, 4  ;;  %1193 = vmatpush.msra.mxu0 %v3116_v0 }
 0x1ac   :  { %1276 = vmatpush.msra.mxu1 %v3099_v58  ;;  %1296 = vmatpush.msrb.mxu2 %v3114_v63 }
 0x1ad   :  { %2490 = vmatmul.msk.f32.vlgmr.msrb.gmra.mxu3 %vm381_vm1, %v1003_v5  ;;  %1194 = vmatpush.msra.mxu0 %v3124_v3 }
 0x1ae   :  { %2491 = vmatmul.msk.f32.vlgmr.msrb.gmra.mxu0 %vm381_vm1, %v1003_v5  ;;  %2492 = vmatmul.msk.f32.vlgmr.msrb.gmra.mxu1 %vm381_vm1, %v1003_v5 }
 0x1af   :  { %1314 = vmatpush.msrb.mxu3 %v3140_v8  ;;  %1277 = vmatpush.msra.mxu1 %v3110_v61  ;;  %v877_v61 = vld [vmem:[#allocation2 + $0x10] sm:$0xc] }
 0x1b0   :  { %1297 = vmatpush.msrb.mxu2 %v3122_v2  ;;  %1397 = vmatpush.msrb.mxu0 %v3048_v31 }
 0x1b1   :  { %1315 = vmatpush.msrb.mxu3 %v3147_v9  ;;  %1417 = vmatpush.msrb.mxu1 %v3044_v29  ;;  %v876_v9 = vld [vmem:[#allocation2 + $0x48] sm:$0xc] }
 0x1b2   :  { %1398 = vmatpush.msrb.mxu0 %v3057_v36  ;;  %v874_v36 = vld [vmem:[#allocation2] sm:$0x30] }
 0x1b3   :  { %1316 = vmatpush.msrb.mxu3 %v3152_v10  ;;  %1418 = vmatpush.msrb.mxu1 %v3054_v34 }
 0x1b4   :  { %1399 = vmatpush.msrb.mxu0 %v3063_v40 }
 0x1b5   :  { %1317 = vmatpush.msrb.mxu3 %v3159_v11  ;;  %1419 = vmatpush.msrb.mxu1 %v3060_v38 }
 0x1b6   :  { %1400 = vmatpush.msrb.mxu0 %v3073_v46 }
 0x1b7   :  { %1420 = vmatpush.msrb.mxu1 %v3066_v42 }
 0x223   :  { %v900_v31 = vpop.f32.mrf.mxu0  ;;  %v920_v48 = vpop.f32.mrf.mxu1 }
 0x224   :  { %v944_v51 = vrot.slane %v900_v31, 4  ;;  %v967_v29 = vrot.slane %v920_v48, 4  ;;  %v998_v48 = vrot.slane %v3288_v49, 6 }
 0x226   :  { %v946_v55 = vadd.f32 %v944_v51, %v873_v52  ;;  %v969_v57 = vadd.f32 %v967_v29, %v874_v36 }
 0x228   :  { %v2488_v58 = vmul.f32 -1.442695, %v946_v55  ;;  %v2489_v34 = vmul.f32 -1.442695, %v969_v57 }
 0x22a   :  { %2601 = vpow2.f32 %v2488_v58  ;;  %v940_v56 = vpop.f32.mrf.mxu2 }
 0x22b   :  { %2603 = vpow2.f32 %v2489_v34  ;;  %v1043_v40 = vpop.f32.mrf.mxu0  ;;  %v989_v21 = vadd.f32 %v940_v56, %v3207_v44  ;;  %v1063_v50 = vpop.f32.mrf.mxu1 }
 0x22c   :  { %v1090_v60 = vrot.slane %v1043_v40, 6  ;;  %v1112_v51 = vadd.f32 %v1063_v50, %v3215_v14  ;;  %v3435_v50 = vld [vmem:[#allocation12 + $0x8] sm:$0xff] }
 0x22d   :  { %v991_v7 = vrot.slane %v989_v21, 4 }
 0x22e   :  { %v1092_v38 = vadd.f32 %v1090_v60, %v877_v61 }
 0x230   :  { %v2602_v63 = vpop.eup %2601  ;;  %v2494_v46 = vmul.f32 -1.442695, %v1092_v38  ;;  %v1023_v0 = vpop.f32.mrf.mxu3 }
 0x231   :  { %v2604_v42 = vpop.eup %2603  ;;  %v950_v2 = vadd.f32 1.0, %v2602_v63  ;;  %v1067_v3 = vrot.slane %v1023_v0, 6  ;;  %v1114_v63 = vrot.slane %v1112_v51, 6  ;;  %v1130_v51 = vld [vmem:[#allocation2] sm:$0xc0] }
 0x232   :  { %v973_v8 = vadd.f32 1.0, %v2604_v42  ;;  %2605 = vpow2.f32 %v2494_v46 }
 0x233   :  { %2607 = vrcp.f32 %v950_v2  ;;  %v1069_v10 = vadd.f32 %v1067_v3, %v876_v9  ;;  %v962_v18 = vand.u32 2147483648, %v950_v2  ;;  %v960_v20 = vand.u32 2147483647, %v950_v2  ;;  %v878_v9 = vld [vmem:[#allocation2 + $0x40] sm:$0xc] }
 0x234   :  { %2609 = vrcp.f32 %v973_v8  ;;  %vm956_vm5 = vweird.f32 %v950_v2  ;;  %v985_v37 = vand.u32 2147483648, %v973_v8  ;;  %vm979_vm9 = vweird.f32 %v973_v8 }
 0x235   :  { %v2493_v11 = vmul.f32 -1.442695, %v1069_v10  ;;  %v963_v27 = vor.u32 1.1754944e-38, %v962_v18  ;;  %vm961_vm7 = vcmp.eq.f32.partialorder %v960_v20, 8.507059e+37  ;;  %v983_v39 = vand.u32 2147483647, %v973_v8 }
 0x236   :  { %v986_v24 = vor.u32 1.1754944e-38, %v985_v37  ;;  %v3375_v18 = vld [vmem:[#allocation12 + $0x28] sm:$0xff]  ;;  %v3381_v20 = vld [vmem:[#allocation13 + $0x20] sm:$0xff]  ;;  %v3408_v37 = vld [vmem:[#allocation12 + $0x50] sm:$0xff] }
 0x237   :  { %2611 = vpow2.f32 %v2493_v11  ;;  %vm984_vm11 = vcmp.eq.f32.partialorder %v983_v39, 8.507059e+37  ;;  %v3414_v39 = vld [vmem:[#allocation12 + $0x30] sm:$0xff] }
 0x238   :  { %v2606_v35 = vpop.eup %2605 }
 0x239   :  { %v2608_v1 = vpop.eup %2607  ;;  %v3327_v6 = vadd.f32 1.0, %v2606_v35 }
 0x23a   :  { %v2610_v13 = vpop.eup %2609  ;;  %v952_v4 = vmul.f32 %v2608_v1, %v950_v2  ;;  %vm957_vm4 = vweird.f32 %v2608_v1 }
 0x23b   :  { %v975_v43 = vmul.f32 %v2610_v13, %v973_v8  ;;  %2613 = vrcp.f32 %v3327_v6  ;;  %vm958_vm6 = vmor %vm956_vm5, %vm957_vm4  ;;  %vm980_vm8 = vweird.f32 %v2610_v13  ;;  %v1108_v42 = vand.u32 2147483648, %v3327_v6 }
 0x23c   :  { %v953_v17 = vsub.f32 1.0, %v952_v4  ;;  %vm981_vm10 = vmor %vm979_vm9, %vm980_vm8  ;;  %vm1102_vm2 = vweird.f32 %v3327_v6  ;;  %v1106_v8 = vand.u32 2147483647, %v3327_v6  ;;  %v3363_v4 = vld [vmem:[#allocation13 + $0x50] sm:$0xff] }
 0x23d   :  { %v976_v62 = vsub.f32 1.0, %v975_v43  ;;  %v2612_v23 = vpop.eup %2611  ;;  %v3366_v43 = vld [vmem:[#allocation12 + $0x40] sm:$0xff] }
 0x23e   :  { %v954_v19 = vmul.f32 %v2608_v1, %v953_v17  ;;  %v1073_v15 = vadd.f32 1.0, %v2612_v23  ;;  %vm1107_vm4 = vcmp.eq.f32.partialorder %v1106_v8, 8.507059e+37  ;;  %v3369_v17 = vld [vmem:[#allocation13 + $0x30] sm:$0xff]  ;;  %v1121_v23 = vrot.slane %v3299_v59, 2  ;;  %v3402_v59 = vld [vmem:[#allocation13 + $0x58] sm:$0xff] }
 0x23f   :  { %v977_v12 = vmul.f32 %v2610_v13, %v976_v62  ;;  %v3372_v62 = vld [vmem:[#allocation13 + $0x38] sm:$0xff] }
 0x240   :  { %v955_v26 = vadd.f32 %v2608_v1, %v954_v19  ;;  %2615 = vrcp.f32 %v1073_v15  ;;  %v1085_v29 = vand.u32 2147483648, %v1073_v15  ;;  %v1083_v55 = vand.u32 2147483647, %v1073_v15  ;;  %v3378_v19 = vld [vmem:[#allocation13 + $0x18] sm:$0xff] }
 0x241   :  { %v3331_v32 = vpop.eup %2613  ;;  %v978_v22 = vadd.f32 %v2610_v13, %v977_v12  ;;  %vm1079_vm13 = vweird.f32 %v1073_v15  ;;  %v3385_v12 = vld [vmem:[#allocation12 + $0x10] sm:$0xff] }
 0x242   :  { %v959_v30 = vsel %vm958_vm6, %v2608_v1, %v955_v26  ;;  %v1098_v47 = vmul.f32 %v3331_v32, %v3327_v6  ;;  %v1086_v61 = vor.u32 1.1754944e-38, %v1085_v29  ;;  %vm1084_vm15 = vcmp.eq.f32.partialorder %v1083_v55, 8.507059e+37  ;;  %v3357_v1 = vld [vmem:[#allocation12 + $0x58] sm:$0xff] }
 0x243   :  { %v964_v33 = vsel %vm961_vm7, %v963_v27, %v959_v30  ;;  %v982_v16 = vsel %vm981_vm10, %v2610_v13, %v978_v22  ;;  %vm1103_vm0 = vweird.f32 %v3331_v32  ;;  %v1109_v6 = vor.u32 1.1754944e-38, %v1108_v42  ;;  %v3360_v13 = vld [vmem:[#allocation13 + $0x48] sm:$0xff] }
 0x244   :  { %v993_v25 = vmul.f32 %v991_v7, %v964_v33  ;;  %v987_v54 = vsel %vm984_vm11, %v986_v24, %v982_v16  ;;  %v1099_v5 = vsub.f32 1.0, %v1098_v47  ;;  %vm3347_vm3 = vmor %vm1102_vm2, %vm1103_vm0  ;;  %v3391_v27 = vld [vmem:[#allocation13 + $0x8] sm:$0xff]  ;;  %v3423_v47 = vld [vmem:[#allocation12 + $0x18] sm:$0xff] }
 0x245   :  { %v996_v52 = vsub.f32 1.0, %v987_v54  ;;  %v1000_v40 = vmul.f32 %v998_v48, %v987_v54  ;;  %v3405_v22 = vld [vmem:[#allocation12 + $0x48] sm:$0xff]  ;;  %v3426_v16 = vld [vmem:[#allocation12 + $0x20] sm:$0xff] }
 0x246   :  { %v994_v45 = vadd.f32 %v993_v25, %v875_v41  ;;  %v2616_v28 = vpop.eup %2615  ;;  %v1100_v58 = vmul.f32 %v3331_v32, %v1099_v5  ;;  %v3411_v25 = vld [vmem:[#allocation13 + $0x40] sm:$0xff]  ;;  %v3417_v41 = vld [vmem:[#allocation12 + $0x38] sm:$0xff]  ;;  %v1129_v48 = vld [vmem:[#allocation2 + $0x30] sm:$0xc0] }
 0x247   :  { %v1075_v53 = vmul.f32 %v2616_v28, %v1073_v15  ;;  %vm1080_vm12 = vweird.f32 %v2616_v28  ;;  %v3388_v15 = vld [vmem:[#allocation13] sm:$0xff] }
 0x248   :  { %2617 = vtanh.f32 %v994_v45  ;;  %vm1081_vm14 = vmor %vm1079_vm13, %vm1080_vm12  ;;  %v1101_v46 = vadd.f32 %v3331_v32, %v1100_v58  ;;  %v3420_v45 = vld [vmem:[#allocation13 + $0x28] sm:$0xff]  ;;  %v3432_v24 = vld [vmem:[#allocation12] sm:$0xff] }
 0x249   :  { %v1076_v31 = vsub.f32 1.0, %v1075_v53 }
 0x24a   :  { %v1105_v35 = vsel %vm3347_vm3, %v3331_v32, %v1101_v46 }
 0x24b   :  { %v1077_v36 = vmul.f32 %v2616_v28, %v1076_v31  ;;  %v1110_v56 = vsel %vm1107_vm4, %v1109_v6, %v1105_v35 }
 0x24c   :  { %v1119_v21 = vsub.f32 1.0, %v1110_v56  ;;  %v1123_v7 = vmul.f32 %v1121_v23, %v1110_v56 }
 0x24d   :  { %v1078_v60 = vadd.f32 %v2616_v28, %v1077_v36 }
 0x24e   :  { %v2618_v57 = vpop.eup %2617 }
 0x24f   :  { %v997_v34 = vmul.f32 %v2618_v57, %v996_v52  ;;  %v1082_v49 = vsel %vm1081_vm14, %v2616_v28, %v1078_v60  ;;  %v3429_v28 = vld [vmem:[#allocation13 + $0x10] sm:$0xff]  ;;  %v1132_v57 = vld [vmem:[#allocation2 + $0x48] sm:$0x3] }
 0x250   :  { %v1087_v0 = vsel %vm1084_vm15, %v1086_v61, %v1082_v49 }
 0x251   :  { %v3338_v38 = vadd.f32 %v1000_v40, %v997_v34  ;;  %v1116_v2 = vmul.f32 %v1114_v63, %v1087_v0  ;;  %v1133_v0 = vld [vmem:[#allocation2 + $0x10] sm:$0x3] }
 0x253   :  { %1126 = vst [vmem:[#allocation15] sm:$0x30] %v3338_v38  ;;  %v1136_v3 = vrot.slane %v3338_v38, 4  ;;  %v1117_v11 = vadd.f32 %v1116_v2, %v878_v9 }
 0x255   :  { %2495 = vmatmul.msk.f32.vlgmr.msra.gmra.mxu2 %vm381_vm1, %v1136_v3  ;;  %2496 = vmatmul.msk.f32.vlgmr.msra.gmra.mxu3 %vm381_vm1, %v1136_v3  ;;  %2619 = vtanh.f32 %v1117_v11 }
 0x256   :  { %2497 = vmatmul.msk.f32.vlgmr.msra.gmra.mxu0 %vm381_vm1, %v1136_v3  ;;  %1437 = vmatpush.msra.mxu2 %v3357_v1 }
 0x257   :  { %1509 = vmatpush.msra.mxu3 %v3360_v13  ;;  %1529 = vmatpush.msra.mxu0 %v3363_v4 }
 0x258   :  { %1438 = vmatpush.msra.mxu2 %v3366_v43 }
 0x259   :  { %1510 = vmatpush.msra.mxu3 %v3369_v17  ;;  %1530 = vmatpush.msra.mxu0 %v3372_v62 }
 0x25a   :  { %1439 = vmatpush.msra.mxu2 %v3375_v18 }
 0x25b   :  { %1511 = vmatpush.msra.mxu3 %v3378_v19  ;;  %1531 = vmatpush.msra.mxu0 %v3381_v20  ;;  %v2620_v26 = vpop.eup %2619 }
 0x25c   :  { %1440 = vmatpush.msra.mxu2 %v3385_v12  ;;  %v1120_v30 = vmul.f32 %v2620_v26, %v1119_v21 }
 0x25d   :  { %1512 = vmatpush.msra.mxu3 %v3388_v15  ;;  %1532 = vmatpush.msra.mxu0 %v3391_v27 }
 0x25e   :  { %v1124_v32 = vadd.f32 %v1123_v7, %v1120_v30 }
 0x260   :  { %1128 = vst [vmem:[#allocation3 + $0x8] sm:$0xc] %v1124_v32  ;;  %v3394_v33 = vrot.slane %v1124_v32, 2 }
 0x262   :  { %2500 = vmatmul.msk.f32.vlgmr.msra.gmra.mxu1 %vm381_vm1, %v3394_v33  ;;  %2501 = vmatmul.msk.f32.vlgmr.msrb.gmra.mxu2 %vm381_vm1, %v3394_v33 }
 0x263   :  { %2502 = vmatmul.msk.f32.vlgmr.msrb.gmra.mxu3 %vm381_vm1, %v3394_v33  ;;  %1549 = vmatpush.msra.mxu1 %v3402_v59 }
 0x264   :  { %1641 = vmatpush.msrb.mxu2 %v3405_v22  ;;  %1661 = vmatpush.msrb.mxu3 %v3408_v37 }
 0x265   :  { %1550 = vmatpush.msra.mxu1 %v3411_v25 }
 0x266   :  { %1642 = vmatpush.msrb.mxu2 %v3414_v39  ;;  %1662 = vmatpush.msrb.mxu3 %v3417_v41 }
 0x267   :  { %1551 = vmatpush.msra.mxu1 %v3420_v45 }
 0x268   :  { %1643 = vmatpush.msrb.mxu2 %v3423_v47  ;;  %1663 = vmatpush.msrb.mxu3 %v3426_v16 }
 0x269   :  { %1552 = vmatpush.msra.mxu1 %v3429_v28 }
 0x26a   :  { %1644 = vmatpush.msrb.mxu2 %v3432_v24  ;;  %1664 = vmatpush.msrb.mxu3 %v3435_v50 }
 0x2d3   :  { %v1196_v35 = vpop.f32.mrf.mxu0 }
 0x2d4   :  { %v1245_v26 = vadd.f32 %v1196_v35, %v3207_v44 }
 0x2d8   :  { %v1156_v53 = vpop.f32.mrf.mxu2  ;;  %v1176_v54 = vpop.f32.mrf.mxu3 }
 0x2d9   :  { %v1200_v5 = vrot.slane %v1156_v53, 2  ;;  %v1223_v31 = vrot.slane %v1176_v54, 2 }
 0x2db   :  { %v1202_v29 = vadd.f32 %v1200_v5, %v1129_v48  ;;  %v1225_v52 = vadd.f32 %v1223_v31, %v1130_v51 }
 0x2dd   :  { %v2498_v36 = vmul.f32 -1.442695, %v1202_v29  ;;  %v2499_v55 = vmul.f32 -1.442695, %v1225_v52  ;;  %v1247_v29 = vrot.slane %v1245_v26, 2 }
 0x2df   :  { %2621 = vpow2.f32 %v2498_v36  ;;  %v1279_v58 = vpop.f32.mrf.mxu1 }
 0x2e0   :  { %2623 = vpow2.f32 %v2499_v55  ;;  %v1322_v34 = vadd.f32 %v1279_v58, %v1132_v57 }
 0x2e2   :  { %v2503_v40 = vmul.f32 -1.442695, %v1322_v34 }
 0x2e4   :  { %2625 = vpow2.f32 %v2503_v40 }
 0x2e5   :  { %v2622_v60 = vpop.eup %2621  ;;  %v1299_v46 = vpop.f32.mrf.mxu2 }
 0x2e6   :  { %v2624_v61 = vpop.eup %2623  ;;  %v1206_v63 = vadd.f32 1.0, %v2622_v60  ;;  %v1342_v42 = vadd.f32 %v1299_v46, %v1133_v0  ;;  %v1319_v60 = vpop.f32.mrf.mxu3  ;;  %v1131_v46 = vld [vmem:[#allocation2 + $0x58] sm:$0xc0] }
 0x2e7   :  { %v1229_v49 = vadd.f32 1.0, %v2624_v61 }
 0x2e8   :  { %2627 = vrcp.f32 %v1206_v63  ;;  %v2504_v3 = vmul.f32 -1.442695, %v1342_v42  ;;  %v1218_v21 = vand.u32 2147483648, %v1206_v63  ;;  %v1216_v7 = vand.u32 2147483647, %v1206_v63 }
 0x2e9   :  { %2629 = vrcp.f32 %v1229_v49  ;;  %vm1212_vm6 = vweird.f32 %v1206_v63  ;;  %vm1235_vm10 = vweird.f32 %v1229_v49  ;;  %v1241_v58 = vand.u32 2147483648, %v1229_v49 }
 0x2ea   :  { %v2626_v2 = vpop.eup %2625  ;;  %2631 = vpow2.f32 %v2504_v3  ;;  %v1219_v48 = vor.u32 1.1754944e-38, %v1218_v21  ;;  %vm1217_vm8 = vcmp.eq.f32.partialorder %v1216_v7, 8.507059e+37  ;;  %v1239_v40 = vand.u32 2147483647, %v1229_v49 }
 0x2eb   :  { %v1326_v8 = vadd.f32 1.0, %v2626_v2 }
 0x2ec   :  { %vm1240_vm15 = vcmp.eq.f32.partialorder %v1239_v40, 8.507059e+37 }
 0x2ed   :  { %2633 = vrcp.f32 %v1326_v8  ;;  %v1338_v34 = vand.u32 2147483648, %v1326_v8  ;;  %vm1332_vm13 = vweird.f32 %v1326_v8 }
 0x2ee   :  { %v2628_v9 = vpop.eup %2627 }
 0x2ef   :  { %v2630_v10 = vpop.eup %2629  ;;  %v1208_v11 = vmul.f32 %v2628_v9, %v1206_v63  ;;  %vm1213_vm5 = vweird.f32 %v2628_v9  ;;  %v1336_v63 = vand.u32 2147483647, %v1326_v8  ;;  %v1339_v35 = vor.u32 1.1754944e-38, %v1338_v34 }
 0x2f0   :  { %v1231_v6 = vmul.f32 %v2630_v10, %v1229_v49  ;;  %v2632_v32 = vpop.eup %2631  ;;  %vm1214_vm7 = vmor %vm1212_vm6, %vm1213_vm5  ;;  %vm1236_vm9 = vweird.f32 %v2630_v10  ;;  %v1362_v49 = vadd.f32 %v1319_v60, %v3215_v14 }
 0x2f1   :  { %v1209_v56 = vsub.f32 1.0, %v1208_v11  ;;  %v1346_v31 = vadd.f32 1.0, %v2632_v32  ;;  %vm3439_vm12 = vmor %vm1235_vm10, %vm1236_vm9  ;;  %v1242_v11 = vor.u32 1.1754944e-38, %v1241_v58  ;;  %vm1337_vm0 = vcmp.eq.f32.partialorder %v1336_v63, 8.507059e+37  ;;  %v1134_v32 = vld [vmem:[#allocation2 + $0x40] sm:$0x3] }
 0x2f2   :  { %v1232_v23 = vsub.f32 1.0, %v1231_v6 }
 0x2f3   :  { %v1210_v30 = vmul.f32 %v2628_v9, %v1209_v56  ;;  %v2634_v54 = vpop.eup %2633  ;;  %2635 = vrcp.f32 %v1346_v31  ;;  %v1356_v7 = vand.u32 2147483647, %v1346_v31  ;;  %vm1352_vm3 = vweird.f32 %v1346_v31 }
 0x2f4   :  { %v1233_v53 = vmul.f32 %v2630_v10, %v1232_v23  ;;  %v1328_v51 = vmul.f32 %v2634_v54, %v1326_v8  ;;  %vm1333_vm11 = vweird.f32 %v2634_v54  ;;  %v1358_v8 = vand.u32 2147483648, %v1346_v31 }
 0x2f5   :  { %v1211_v5 = vadd.f32 %v2628_v9, %v1210_v30  ;;  %vm1334_vm14 = vmor %vm1332_vm13, %vm1333_vm11  ;;  %vm1357_vm5 = vcmp.eq.f32.partialorder %v1356_v7, 8.507059e+37  ;;  %v1378_v7 = vld [vmem:[#allocation2 + $0x18] sm:$0xc0] }
 0x2f6   :  { %v1234_v55 = vadd.f32 %v2630_v10, %v1233_v53  ;;  %v1329_v44 = vsub.f32 1.0, %v1328_v51 }
 0x2f7   :  { %v1215_v52 = vsel %vm1214_vm7, %v2628_v9, %v1211_v5 }
 0x2f8   :  { %v1220_v36 = vsel %vm1217_vm8, %v1219_v48, %v1215_v52  ;;  %v1330_v61 = vmul.f32 %v2634_v54, %v1329_v44  ;;  %v1238_v3 = vsel %vm3439_vm12, %v2630_v10, %v1234_v55  ;;  %v1254_v10 = vrot.slane %v3338_v38, 6 }
 0x2f9   :  { %v1249_v57 = vmul.f32 %v1247_v29, %v1220_v36  ;;  %v2636_v9 = vpop.eup %2635  ;;  %v1243_v23 = vsel %vm1240_vm15, %v1242_v11, %v1238_v3  ;;  %v1359_v52 = vor.u32 1.1754944e-38, %v1358_v8  ;;  %v1379_v11 = vld [vmem:[#allocation2 + $0x50] sm:$0xc0] }
 0x2fa   :  { %v1331_v2 = vadd.f32 %v2634_v54, %v1330_v61  ;;  %v1348_v6 = vmul.f32 %v2636_v9, %v1346_v31  ;;  %vm1353_vm2 = vweird.f32 %v2636_v9  ;;  %v1252_v48 = vsub.f32 1.0, %v1243_v23  ;;  %v1376_v61 = vld [vmem:[#allocation2 + $0x38] sm:$0x3] }
 0x2fb   :  { %v1250_v42 = vadd.f32 %v1249_v57, %v1131_v46  ;;  %vm1354_vm4 = vmor %vm1352_vm3, %vm1353_vm2 }
 0x2fc   :  { %v1335_v56 = vsel %vm1334_vm14, %v2634_v54, %v1331_v2  ;;  %v1349_v26 = vsub.f32 1.0, %v1348_v6  ;;  %v1256_v54 = vmul.f32 %v1254_v10, %v1243_v23 }
 0x2fd   :  { %2637 = vtanh.f32 %v1250_v42  ;;  %v1340_v21 = vsel %vm1337_vm0, %v1339_v35, %v1335_v56 }
 0x2fe   :  { %v1363_v30 = vmul.f32 %v1362_v49, %v1340_v21  ;;  %v1350_v53 = vmul.f32 %v2636_v9, %v1349_v26 }
 0x300   :  { %v1364_v5 = vadd.f32 %v1363_v30, %v1134_v32  ;;  %v1351_v14 = vadd.f32 %v2636_v9, %v1350_v53 }
 0x302   :  { %2639 = vtanh.f32 %v1364_v5  ;;  %v1355_v36 = vsel %vm1354_vm4, %v2636_v9, %v1351_v14 }
 0x303   :  { %v2638_v51 = vpop.eup %2637  ;;  %v1360_v44 = vsel %vm1357_vm5, %v1359_v52, %v1355_v36 }
 0x304   :  { %v1253_v29 = vmul.f32 %v2638_v51, %v1252_v48  ;;  %v1366_v38 = vsub.f32 1.0, %v1360_v44  ;;  %v1369_v34 = vmul.f32 %v1360_v44, %v3394_v33  ;;  %v1375_v33 = vld [vmem:[#allocation2 + $0x8] sm:$0x3] }
 0x306   :  { %v1257_v55 = vadd.f32 %v1256_v54, %v1253_v29 }
 0x308   :  { %1372 = vst [vmem:[#allocation15] sm:$0xc0] %v1257_v55  ;;  %v3447_v57 = vrot.slane %v1257_v55, 6  ;;  %v2640_v58 = vpop.eup %2639 }
 0x309   :  { %v1367_v31 = vmul.f32 %v2640_v58, %v1366_v38 }
 0x30a   :  { %2505 = vmatmul.msk.f32.vlgmr.msrb.gmra.mxu0 %vm381_vm1, %v3447_v57  ;;  %2506 = vmatmul.msk.f32.vlgmr.msrb.gmra.mxu1 %vm381_vm1, %v3447_v57 }
 0x30b   :  { %2507 = vmatmul.msk.f32.vlgmr.msra.gmra.mxu2 %vm381_vm1, %v3447_v57  ;;  %1681 = vmatpush.msrb.mxu0 %v3357_v1  ;;  %v3459_v40 = vadd.f32 %v1369_v34, %v1367_v31 }
 0x30c   :  { %1764 = vmatpush.msrb.mxu1 %v3360_v13  ;;  %1784 = vmatpush.msra.mxu2 %v3363_v4 }
 0x30d   :  { %1682 = vmatpush.msrb.mxu0 %v3366_v43  ;;  %1374 = vst [vmem:[#allocation3 + $0x8] sm:$0x3] %v3459_v40  ;;  %2510 = vmatmul.msk.f32.vlgmr.msra.gmra.mxu3 %vm381_vm1, %v3459_v40 }
 0x30e   :  { %1765 = vmatpush.msrb.mxu1 %v3369_v17  ;;  %1785 = vmatpush.msra.mxu2 %v3372_v62 }
 0x30f   :  { %1683 = vmatpush.msrb.mxu0 %v3375_v18  ;;  %1804 = vmatpush.msra.mxu3 %v3402_v59 }
 0x310   :  { %1766 = vmatpush.msrb.mxu1 %v3378_v19  ;;  %1786 = vmatpush.msra.mxu2 %v3381_v20 }
 0x311   :  { %1684 = vmatpush.msrb.mxu0 %v3385_v12  ;;  %1805 = vmatpush.msra.mxu3 %v3411_v25 }
 0x312   :  { %2511 = vmatmul.msk.f32.vlgmr.msra.gmra.mxu0 %vm381_vm1, %v3459_v40  ;;  %2512 = vmatmul.msk.f32.vlgmr.msra.gmra.mxu1 %vm381_vm1, %v3459_v40 }
 0x313   :  { %1767 = vmatpush.msrb.mxu1 %v3388_v15  ;;  %1787 = vmatpush.msra.mxu2 %v3391_v27 }
 0x314   :  { %1897 = vmatpush.msra.mxu0 %v3405_v22  ;;  %1806 = vmatpush.msra.mxu3 %v3420_v45 }
 0x315   :  { %1917 = vmatpush.msra.mxu1 %v3408_v37 }
 0x316   :  { %1898 = vmatpush.msra.mxu0 %v3414_v39  ;;  %1807 = vmatpush.msra.mxu3 %v3429_v28 }
 0x317   :  { %1918 = vmatpush.msra.mxu1 %v3417_v41 }
 0x318   :  { %1899 = vmatpush.msra.mxu0 %v3423_v47 }
 0x319   :  { %1919 = vmatpush.msra.mxu1 %v3426_v16 }
 0x31a   :  { %1900 = vmatpush.msra.mxu0 %v3432_v24 }
 0x31b   :  { %1920 = vmatpush.msra.mxu1 %v3435_v50 }
 0x387   :  { %v1402_v60 = vpop.f32.mrf.mxu0  ;;  %v1422_v63 = vpop.f32.mrf.mxu1 }
 0x388   :  { %v1445_v46 = vadd.f32 %v1402_v60, %v1375_v33  ;;  %v1465_v0 = vadd.f32 %v1422_v63, %v1376_v61  ;;  %v3495_v61 = vld [vmem:[%s3639_s6] sm:$0x3] }
 0x38a   :  { %v2508_v42 = vmul.f32 -1.442695, %v1445_v46  ;;  %v2509_v2 = vmul.f32 -1.442695, %v1465_v0 }
 0x38c   :  { %2641 = vpow2.f32 %v2508_v42 }
 0x38d   :  { %2643 = vpow2.f32 %v2509_v2 }
 0x38e   :  { %v1442_v58 = vpop.f32.mrf.mxu2 }
 0x38f   :  { %v1534_v3 = vpop.f32.mrf.mxu0  ;;  %v1485_v63 = vadd.f32 %v3495_v61, %v1442_v58 }
 0x390   :  { %v1581_v9 = vrot.slane %v1534_v3, 2  ;;  %v1514_v49 = vpop.f32.mrf.mxu3 }
 0x391   :  { %v1558_v23 = vrot.slane %v1514_v49, 2 }
 0x392   :  { %v2642_v35 = vpop.eup %2641  ;;  %v1583_v6 = vadd.f32 %v1581_v9, %v1379_v11  ;;  %v1377_v11 = vld [vmem:[#allocation2 + $0x28] sm:$0x3] }
 0x393   :  { %v2644_v56 = vpop.eup %2643  ;;  %v1449_v21 = vadd.f32 1.0, %v2642_v35  ;;  %v1560_v8 = vadd.f32 %v1558_v23, %v1378_v7  ;;  %v1554_v23 = vpop.f32.mrf.mxu1 }
 0x394   :  { %v1469_v26 = vadd.f32 1.0, %v2644_v56  ;;  %v2514_v30 = vmul.f32 -1.442695, %v1583_v6 }
 0x395   :  { %2645 = vrcp.f32 %v1449_v21  ;;  %v2513_v32 = vmul.f32 -1.442695, %v1560_v8  ;;  %v1461_v52 = vand.u32 2147483648, %v1449_v21  ;;  %v1459_v55 = vand.u32 2147483647, %v1449_v21 }
 0x396   :  { %2647 = vrcp.f32 %v1469_v26  ;;  %vm1455_vm7 = vweird.f32 %v1449_v21  ;;  %v1481_v2 = vand.u32 2147483648, %v1469_v26  ;;  %vm1475_vm11 = vweird.f32 %v1469_v26 }
 0x397   :  { %2649 = vpow2.f32 %v2514_v30  ;;  %v1462_v33 = vor.u32 1.1754944e-38, %v1461_v52  ;;  %vm1460_vm9 = vcmp.eq.f32.partialorder %v1459_v55, 8.507059e+37  ;;  %v1479_v9 = vand.u32 2147483647, %v1469_v26 }
 0x398   :  { %2651 = vpow2.f32 %v2513_v32 }
 0x399   :  { %vm1480_vm13 = vcmp.eq.f32.partialorder %v1479_v9, 8.507059e+37 }
 0x39b   :  { %v2646_v10 = vpop.eup %2645 }
 0x39c   :  { %v2648_v53 = vpop.eup %2647  ;;  %v1451_v5 = vmul.f32 %v2646_v10, %v1449_v21  ;;  %vm1456_vm6 = vweird.f32 %v2646_v10  ;;  %v1482_v21 = vor.u32 1.1754944e-38, %v1481_v2 }
 0x39d   :  { %v2650_v48 = vpop.eup %2649  ;;  %v1471_v51 = vmul.f32 %v2648_v53, %v1469_v26  ;;  %vm1457_vm8 = vmor %vm1455_vm7, %vm1456_vm6  ;;  %vm1476_vm10 = vweird.f32 %v2648_v53  ;;  %v3505_v26 = vld [vmem:[%s3640_s7] sm:$0x3]  ;;  %s2969_s7 = smov [#allocation16]  }
 0x39e   :  { %v1452_v14 = vsub.f32 1.0, %v1451_v5  ;;  %v3489_v29 = vadd.f32 1.0, %v2650_v48  ;;  %v2652_v44 = vpop.eup %2651  ;;  %vm1477_vm12 = vmor %vm1475_vm11, %vm1476_vm10  ;;  %v1603_v5 = vadd.f32 %v3505_v26, %v1554_v23  ;;  %s2430_s27 = sshll.u32 %s2969_s7, 4  ;;  %s2431_s27 = int_to_ptr.vmem [resolvable:$true] %s2430_s27 }
 0x39f   :  { %v1472_v54 = vsub.f32 1.0, %v1471_v51  ;;  %v1564_v34 = vadd.f32 1.0, %v2652_v44 }
 0x3a0   :  { %v1453_v36 = vmul.f32 %v2646_v10, %v1452_v14  ;;  %2653 = vrcp.f32 %v3489_v29  ;;  %v1605_v58 = vrot.slane %v1603_v5, 2  ;;  %vm1593_vm4 = vweird.f32 %v3489_v29 }
 0x3a1   :  { %v1473_v38 = vmul.f32 %v2648_v53, %v1472_v54  ;;  %2655 = vrcp.f32 %v1564_v34  ;;  %vm1570_vm15 = vweird.f32 %v1564_v34 }
 0x3a2   :  { %v1454_v31 = vadd.f32 %v2646_v10, %v1453_v36 }
 0x3a3   :  { %v1474_v46 = vadd.f32 %v2648_v53, %v1473_v38 }
 0x3a4   :  { %v1458_v60 = vsel %vm1457_vm8, %v2646_v10, %v1454_v31  ;;  %v1576_v10 = vand.u32 2147483648, %v1564_v34 }
 0x3a5   :  { %v1463_v0 = vsel %vm1460_vm9, %v1462_v33, %v1458_v60  ;;  %v1478_v6 = vsel %vm1477_vm12, %v2648_v53, %v1474_v46  ;;  %v1574_v53 = vand.u32 2147483647, %v1564_v34 }
 0x3a6   :  { %v3498_v42 = vpop.eup %2653  ;;  %v1486_v3 = vmul.f32 %v1485_v63, %v1463_v0  ;;  %v1483_v7 = vsel %vm1480_vm13, %v1482_v21, %v1478_v6  ;;  %v1577_v44 = vor.u32 1.1754944e-38, %v1576_v10  ;;  %v1599_v63 = vand.u32 2147483648, %v3489_v29  ;;  %v1621_v10 = vld [vmem:[#allocation2 + $0x38] sm:$0xc] }
 0x3a7   :  { %v1589_v49 = vmul.f32 %v3498_v42, %v3489_v29  ;;  %v2656_v56 = vpop.eup %2655  ;;  %v1489_v48 = vsub.f32 1.0, %v1483_v7  ;;  %v1492_v55 = vmul.f32 %v1483_v7, %v3447_v57  ;;  %vm1575_vm2 = vcmp.eq.f32.partialorder %v1574_v53, 8.507059e+37 }
 0x3a8   :  { %v1487_v35 = vadd.f32 %v1486_v3, %v1377_v11  ;;  %v1566_v30 = vmul.f32 %v2656_v56, %v1564_v34  ;;  %vm1571_vm14 = vweird.f32 %v2656_v56  ;;  %vm1594_vm3 = vweird.f32 %v3498_v42  ;;  %v1380_v34 = vld [vmem:[#allocation2 + $0x20] sm:$0xc0]  ;;  %v2388_v11 = vld [vmem:[#allocation3 + $0x8] sm:$0x3] }
 0x3a9   :  { %v1590_v8 = vsub.f32 1.0, %v1589_v49  ;;  %vm1572_vm0 = vmor %vm1570_vm15, %vm1571_vm14  ;;  %v1597_v57 = vand.u32 2147483647, %v3489_v29  ;;  %v1600_v3 = vor.u32 1.1754944e-38, %v1599_v63  ;;  %v1612_v49 = vrot.slane %v3459_v40, 2 }
 0x3aa   :  { %2657 = vtanh.f32 %v1487_v35  ;;  %v1567_v32 = vsub.f32 1.0, %v1566_v30  ;;  %vm1595_vm5 = vmor %vm1593_vm4, %vm1594_vm3  ;;  %v2379_v40 = vld [vmem:[#allocation15 + $0x6] sm:$0x3] }
 0x3ab   :  { %v1591_v54 = vmul.f32 %v3498_v42, %v1590_v8  ;;  %vm1598_vm6 = vcmp.eq.f32.partialorder %v1597_v57, 8.507059e+37 }
 0x3ac   :  { %v1568_v51 = vmul.f32 %v2656_v56, %v1567_v32  ;;  %v1620_v32 = vld [vmem:[#allocation2 + $0x8] sm:$0xc] }
 0x3ad   :  { %v1592_v60 = vadd.f32 %v3498_v42, %v1591_v54  ;;  %v1623_v54 = vld [vmem:[#allocation2 + $0x18] sm:$0x30] }
 0x3ae   :  { %v1569_v36 = vadd.f32 %v2656_v56, %v1568_v51 }
 0x3af   :  { %v1596_v2 = vsel %vm1595_vm5, %v3498_v42, %v1592_v60 }
 0x3b0   :  { %v2658_v14 = vpop.eup %2657  ;;  %v1573_v38 = vsel %vm1572_vm0, %v2656_v56, %v1569_v36  ;;  %v1601_v29 = vsel %vm1598_vm6, %v1600_v3, %v1596_v2 }
 0x3b1   :  { %v1490_v52 = vmul.f32 %v2658_v14, %v1489_v48  ;;  %v1578_v33 = vsel %vm1575_vm2, %v1577_v44, %v1573_v38  ;;  %v1610_v35 = vsub.f32 1.0, %v1601_v29  ;;  %v1614_v21 = vmul.f32 %v1612_v49, %v1601_v29 }
 0x3b2   :  { %v1607_v46 = vmul.f32 %v1605_v58, %v1578_v33  ;;  %v1624_v58 = vld [vmem:[#allocation2 + $0x50] sm:$0x30] }
 0x3b3   :  { %v3510_v31 = vadd.f32 %v1492_v55, %v1490_v52 }
 0x3b4   :  { %v1608_v0 = vadd.f32 %v1607_v46, %v1380_v34 }
 0x3b5   :  { %1617 = vst [vmem:[#allocation15 + $0x8] sm:$0x3] %v3510_v31  ;;  %2515 = vmatmul.msk.f32.vlgmr.msrb.gmra.mxu2 %vm381_vm1, %v3510_v31  ;;  %2516 = vmatmul.msk.f32.vlgmr.msrb.gmra.mxu3 %vm381_vm1, %v3510_v31 }
 0x3b6   :  { %2517 = vmatmul.msk.f32.vlgmr.msrb.gmra.mxu0 %vm381_vm1, %v3510_v31  ;;  %1937 = vmatpush.msrb.mxu2 %v3357_v1  ;;  %2659 = vtanh.f32 %v1608_v0 }
 0x3b7   :  { %2020 = vmatpush.msrb.mxu3 %v3360_v13  ;;  %2040 = vmatpush.msrb.mxu0 %v3363_v4 }
 0x3b8   :  { %1938 = vmatpush.msrb.mxu2 %v3366_v43 }
 0x3b9   :  { %2021 = vmatpush.msrb.mxu3 %v3369_v17  ;;  %2041 = vmatpush.msrb.mxu0 %v3372_v62 }
 0x3ba   :  { %1939 = vmatpush.msrb.mxu2 %v3375_v18 }
 0x3bb   :  { %2022 = vmatpush.msrb.mxu3 %v3378_v19  ;;  %2042 = vmatpush.msrb.mxu0 %v3381_v20 }
 0x3bc   :  { %v2380_v9 = vld [vmem:[#allocation15 + $0x8] sm:$0x3]  ;;  %1940 = vmatpush.msrb.mxu2 %v3385_v12  ;;  %v2660_v6 = vpop.eup %2659 }
 0x3bd   :  { %v2396_v42 = vadd.f32 %v2388_v11, %v2380_v9  ;;  %2023 = vmatpush.msrb.mxu3 %v3388_v15  ;;  %2043 = vmatpush.msrb.mxu0 %v3391_v27  ;;  %v1611_v56 = vmul.f32 %v2660_v6, %v1610_v35 }
 0x3bf   :  { %2404 = vst [vmem:[#allocation15 + $0x8] sm:$0x3] %v2396_v42  ;;  %v3538_v23 = vadd.f32 %v1614_v21, %v1611_v56 }
 0x3c1   :  { %1619 = vst [vmem:[#allocation3] sm:$0xc0] %v3538_v23  ;;  %v1749_v30 = vrot.slane %v3538_v23, 6 }
 0x3c3   :  { %2520 = vmatmul.msk.f32.vlgmr.msrb.gmra.mxu1 %vm381_vm1, %v1749_v30  ;;  %2521 = vmatmul.msk.f32.vlgmr.msra.gmra.mxu2 %vm381_vm1, %v1749_v30 }
 0x3c4   :  { %2522 = vmatmul.msk.f32.vlgmr.msra.gmra.mxu3 %vm381_vm1, %v1749_v30  ;;  %2060 = vmatpush.msrb.mxu1 %v3402_v59 }
 0x3c5   :  { %2153 = vmatpush.msra.mxu2 %v3405_v22  ;;  %2173 = vmatpush.msra.mxu3 %v3408_v37 }
 0x3c6   :  { %2061 = vmatpush.msrb.mxu1 %v3411_v25 }
 0x3c7   :  { %2154 = vmatpush.msra.mxu2 %v3414_v39  ;;  %2174 = vmatpush.msra.mxu3 %v3417_v41 }
 0x3c8   :  { %2062 = vmatpush.msrb.mxu1 %v3420_v45  ;;  %v2387_v7 = vld [vmem:[#allocation3 + $0x6] sm:$0x3] }
 0x3c9   :  { %2155 = vmatpush.msra.mxu2 %v3423_v47  ;;  %2175 = vmatpush.msra.mxu3 %v3426_v16  ;;  %v2395_v8 = vadd.f32 %v2387_v7, %v2379_v40 }
 0x3ca   :  { %2063 = vmatpush.msrb.mxu1 %v3429_v28 }
 0x3cb   :  { %2156 = vmatpush.msra.mxu2 %v3432_v24  ;;  %2176 = vmatpush.msra.mxu3 %v3435_v50  ;;  %2403 = vst [vmem:[#allocation15 + $0x6] sm:$0x3] %v2395_v8 }
 0x433   :  { %v1686_v57 = vpop.f32.mrf.mxu0 }
 0x434   :  { %v1735_v29 = vadd.f32 %v3495_v61, %v1686_v57 }
 0x436   :  { %v1737_v40 = vrot.slane %v1735_v29, 6 }
 0x438   :  { %v1646_v22 = vpop.f32.mrf.mxu2  ;;  %v1666_v37 = vpop.f32.mrf.mxu3 }
 0x439   :  { %v1690_v39 = vrot.slane %v1646_v22, 6  ;;  %v1713_v41 = vrot.slane %v1666_v37, 6 }
 0x43b   :  { %v1692_v5 = vadd.f32 %v1690_v39, %v1620_v32  ;;  %v1715_v48 = vadd.f32 %v1713_v41, %v1621_v10  ;;  %v1622_v32 = vld [vmem:[#allocation2 + $0x28] sm:$0xc] }
 0x43d   :  { %v2518_v51 = vmul.f32 -1.442695, %v1692_v5  ;;  %v2519_v47 = vmul.f32 -1.442695, %v1715_v48 }
 0x43f   :  { %2661 = vpow2.f32 %v2518_v51 }
 0x440   :  { %2663 = vpow2.f32 %v2519_v47  ;;  %v1769_v16 = vpop.f32.mrf.mxu1 }
 0x441   :  { %v1813_v53 = vrot.slane %v1769_v16, 4 }
 0x443   :  { %v1815_v50 = vadd.f32 %v1813_v53, %v1623_v54 }
 0x445   :  { %v2662_v14 = vpop.eup %2661  ;;  %v2523_v44 = vmul.f32 -1.442695, %v1815_v50 }
 0x446   :  { %v2664_v24 = vpop.eup %2663  ;;  %v1696_v52 = vadd.f32 1.0, %v2662_v14  ;;  %v1789_v55 = vpop.f32.mrf.mxu2 }
 0x447   :  { %v1719_v36 = vadd.f32 1.0, %v2664_v24  ;;  %v1836_v38 = vrot.slane %v1789_v55, 4  ;;  %v1809_v47 = vpop.f32.mrf.mxu3 }
 0x448   :  { %2665 = vrcp.f32 %v1696_v52  ;;  %v1708_v9 = vand.u32 2147483648, %v1696_v52  ;;  %v1706_v35 = vand.u32 2147483647, %v1696_v52  ;;  %vm1702_vm8 = vweird.f32 %v1696_v52 }
 0x449   :  { %2667 = vrcp.f32 %v1719_v36  ;;  %v1838_v33 = vadd.f32 %v1836_v38, %v1624_v58  ;;  %v1731_v41 = vand.u32 2147483648, %v1719_v36  ;;  %vm1725_vm12 = vweird.f32 %v1719_v36 }
 0x44a   :  { %2669 = vpow2.f32 %v2523_v44  ;;  %v1709_v30 = vor.u32 1.1754944e-38, %v1708_v9  ;;  %vm1707_vm10 = vcmp.eq.f32.partialorder %v1706_v35, 8.507059e+37  ;;  %v1729_v10 = vand.u32 2147483647, %v1719_v36 }
 0x44b   :  { %v2524_v63 = vmul.f32 -1.442695, %v1838_v33  ;;  %v1732_v53 = vor.u32 1.1754944e-38, %v1731_v41  ;;  %v1858_v50 = vadd.f32 %v3505_v26, %v1809_v47  ;;  %v1876_v41 = vld [vmem:[#allocation2 + $0x38] sm:$0x30] }
 0x44c   :  { %vm1730_vm14 = vcmp.eq.f32.partialorder %v1729_v10, 8.507059e+37 }
 0x44d   :  { %2671 = vpow2.f32 %v2524_v63  ;;  %v1860_v57 = vrot.slane %v1858_v50, 4 }
 0x44e   :  { %v2666_v60 = vpop.eup %2665 }
 0x44f   :  { %v2668_v46 = vpop.eup %2667  ;;  %v1698_v34 = vmul.f32 %v2666_v60, %v1696_v52  ;;  %vm1703_vm7 = vweird.f32 %v2666_v60 }
 0x450   :  { %v1721_v0 = vmul.f32 %v2668_v46, %v1719_v36  ;;  %v2670_v3 = vpop.eup %2669  ;;  %vm1704_vm9 = vmor %vm1702_vm8, %vm1703_vm7  ;;  %vm1726_vm11 = vweird.f32 %v2668_v46  ;;  %v1744_v36 = vrot.slane %v3510_v31, 6 }
 0x451   :  { %v1699_v2 = vsub.f32 1.0, %v1698_v34  ;;  %v1819_v49 = vadd.f32 1.0, %v2670_v3  ;;  %vm1727_vm13 = vmor %vm1725_vm12, %vm1726_vm11 }
 0x452   :  { %v1722_v11 = vsub.f32 1.0, %v1721_v0 }
 0x453   :  { %v1700_v42 = vmul.f32 %v2666_v60, %v1699_v2  ;;  %2673 = vrcp.f32 %v1819_v49  ;;  %v2672_v21 = vpop.eup %2671  ;;  %v1829_v24 = vand.u32 2147483647, %v1819_v49  ;;  %v1831_v52 = vand.u32 2147483648, %v1819_v49 }
 0x454   :  { %v1723_v6 = vmul.f32 %v2668_v46, %v1722_v11  ;;  %v1842_v8 = vadd.f32 1.0, %v2672_v21  ;;  %vm1825_vm0 = vweird.f32 %v1819_v49 }
 0x455   :  { %v1701_v56 = vadd.f32 %v2666_v60, %v1700_v42  ;;  %vm1830_vm3 = vcmp.eq.f32.partialorder %v1829_v24, 8.507059e+37 }
 0x456   :  { %v1724_v37 = vadd.f32 %v2668_v46, %v1723_v6  ;;  %2675 = vrcp.f32 %v1842_v8  ;;  %v1854_v9 = vand.u32 2147483648, %v1842_v8  ;;  %vm1848_vm5 = vweird.f32 %v1842_v8 }
 0x457   :  { %v1705_v7 = vsel %vm1704_vm9, %v2666_v60, %v1701_v56  ;;  %v1852_v31 = vand.u32 2147483647, %v1842_v8 }
 0x458   :  { %v1710_v22 = vsel %vm1707_vm10, %v1709_v30, %v1705_v7  ;;  %v1728_v51 = vsel %vm1727_vm13, %v2668_v46, %v1724_v37  ;;  %v1832_v46 = vor.u32 1.1754944e-38, %v1831_v52  ;;  %v1855_v30 = vor.u32 1.1754944e-38, %v1854_v9  ;;  %v2389_v37 = vld [vmem:[#allocation3 + $0xa] sm:$0x3]  ;;  %v1878_v52 = vld [vmem:[#allocation2 + $0x18] sm:$0xc] }
 0x459   :  { %v1739_v39 = vmul.f32 %v1737_v40, %v1710_v22  ;;  %v2674_v5 = vpop.eup %2673  ;;  %v1733_v55 = vsel %vm1730_vm14, %v1732_v53, %v1728_v51  ;;  %vm1853_vm7 = vcmp.eq.f32.partialorder %v1852_v31, 8.507059e+37 }
 0x45a   :  { %v1821_v16 = vmul.f32 %v2674_v5, %v1819_v49  ;;  %vm1826_vm15 = vweird.f32 %v2674_v5  ;;  %v1742_v60 = vsub.f32 1.0, %v1733_v55  ;;  %v1746_v3 = vmul.f32 %v1744_v36, %v1733_v55  ;;  %v1625_v49 = vld [vmem:[#allocation2 + $0x20] sm:$0x30] }
 0x45b   :  { %v1740_v48 = vadd.f32 %v1739_v39, %v1622_v32  ;;  %vm1827_vm2 = vmor %vm1825_vm0, %vm1826_vm15 }
 0x45c   :  { %v1822_v14 = vsub.f32 1.0, %v1821_v16  ;;  %v2676_v54 = vpop.eup %2675 }
 0x45d   :  { %2677 = vtanh.f32 %v1740_v48  ;;  %v1844_v44 = vmul.f32 %v2676_v54, %v1842_v8  ;;  %vm1849_vm4 = vweird.f32 %v2676_v54  ;;  %v1867_v8 = vrot.slane %v3538_v23, 2  ;;  %v1875_v23 = vld [vmem:[#allocation2 + $0x8] sm:$0x30] }
 0x45e   :  { %v1823_v38 = vmul.f32 %v2674_v5, %v1822_v14  ;;  %vm1850_vm6 = vmor %vm1848_vm5, %vm1849_vm4 }
 0x45f   :  { %v1845_v58 = vsub.f32 1.0, %v1844_v44 }
 0x460   :  { %v1824_v33 = vadd.f32 %v2674_v5, %v1823_v38 }
 0x461   :  { %v1846_v34 = vmul.f32 %v2676_v54, %v1845_v58 }
 0x462   :  { %v1828_v0 = vsel %vm1827_vm2, %v2674_v5, %v1824_v33 }
 0x463   :  { %v2678_v63 = vpop.eup %2677  ;;  %v1833_v29 = vsel %vm1830_vm3, %v1832_v46, %v1828_v0  ;;  %v1847_v11 = vadd.f32 %v2676_v54, %v1846_v34 }
 0x464   :  { %v1743_v2 = vmul.f32 %v2678_v63, %v1742_v60  ;;  %v1862_v42 = vmul.f32 %v1860_v57, %v1833_v29 }
 0x465   :  { %v1851_v21 = vsel %vm1850_vm6, %v2676_v54, %v1847_v11 }
 0x466   :  { %v3560_v35 = vadd.f32 %v1746_v3, %v1743_v2  ;;  %v1863_v6 = vadd.f32 %v1862_v42, %v1625_v49  ;;  %v1856_v40 = vsel %vm1853_vm7, %v1855_v30, %v1851_v21 }
 0x467   :  { %v1865_v7 = vsub.f32 1.0, %v1856_v40 }
 0x468   :  { %1872 = vst [vmem:[#allocation15 + $0x8] sm:$0xc] %v3560_v35  ;;  %v1882_v56 = vrot.slane %v3560_v35, 2  ;;  %2679 = vtanh.f32 %v1863_v6 }
 0x46a   :  { %2525 = vmatmul.msk.f32.vlgmr.msra.gmra.mxu0 %vm381_vm1, %v1882_v56  ;;  %2526 = vmatmul.msk.f32.vlgmr.msra.gmra.mxu1 %vm381_vm1, %v1882_v56 }
 0x46b   :  { %2527 = vmatmul.msk.f32.vlgmr.msrb.gmra.mxu2 %vm381_vm1, %v1882_v56  ;;  %2193 = vmatpush.msra.mxu0 %v3357_v1 }
 0x46c   :  { %2276 = vmatpush.msra.mxu1 %v3360_v13  ;;  %2296 = vmatpush.msrb.mxu2 %v3363_v4  ;;  %v1869_v4 = vmul.f32 %v1867_v8, %v1856_v40  ;;  %v1877_v8 = vld [vmem:[#allocation2 + $0x28] sm:$0x30] }
 0x46d   :  { %2194 = vmatpush.msra.mxu0 %v3366_v43 }
 0x46e   :  { %2277 = vmatpush.msra.mxu1 %v3369_v17  ;;  %2297 = vmatpush.msrb.mxu2 %v3372_v62  ;;  %v2680_v39 = vpop.eup %2679  ;;  %v2378_v62 = vld [vmem:[#allocation15 + $0x4] sm:$0x3] }
 0x46f   :  { %v2381_v22 = vld [vmem:[#allocation15 + $0xa] sm:$0x3]  ;;  %2195 = vmatpush.msra.mxu0 %v3375_v18  ;;  %v1866_v13 = vmul.f32 %v2680_v39, %v1865_v7 }
 0x470   :  { %v2397_v1 = vadd.f32 %v2389_v37, %v2381_v22  ;;  %2278 = vmatpush.msra.mxu1 %v3378_v19  ;;  %2298 = vmatpush.msrb.mxu2 %v3381_v20 }
 0x471   :  { %2196 = vmatpush.msra.mxu0 %v3385_v12  ;;  %v3580_v43 = vadd.f32 %v1869_v4, %v1866_v13 }
 0x472   :  { %2405 = vst [vmem:[#allocation15 + $0xa] sm:$0x3] %v2397_v1  ;;  %2279 = vmatpush.msra.mxu1 %v3388_v15  ;;  %2299 = vmatpush.msrb.mxu2 %v3391_v27 }
 0x473   :  { %1874 = vst [vmem:[#allocation3] sm:$0x30] %v3580_v43  ;;  %v2005_v17 = vrot.slane %v3580_v43, 4 }
 0x475   :  { %2530 = vmatmul.msk.f32.vlgmr.msrb.gmra.mxu3 %vm381_vm1, %v2005_v17  ;;  %2531 = vmatmul.msk.f32.vlgmr.msrb.gmra.mxu0 %vm381_vm1, %v2005_v17 }
 0x476   :  { %2532 = vmatmul.msk.f32.vlgmr.msrb.gmra.mxu1 %vm381_vm1, %v2005_v17  ;;  %2316 = vmatpush.msrb.mxu3 %v3402_v59 }
 0x478   :  { %2317 = vmatpush.msrb.mxu3 %v3411_v25 }
 0x47a   :  { %2318 = vmatpush.msrb.mxu3 %v3420_v45  ;;  %v2386_v18 = vld [vmem:[#allocation3 + $0x4] sm:$0x3] }
 0x47b   :  { %v2394_v19 = vadd.f32 %v2386_v18, %v2378_v62  ;;  %v2000_v18 = vrot.slane %v3560_v35, 6 }
 0x47c   :  { %2319 = vmatpush.msrb.mxu3 %v3429_v28  ;;  %v1879_v28 = vld [vmem:[#allocation2 + $0x50] sm:$0xc] }
 0x47d   :  { %2402 = vst [vmem:[#allocation15 + $0x4] sm:$0x3] %v2394_v19 }
 0x4e7   :  { %v1902_v20 = vpop.f32.mrf.mxu0  ;;  %v1922_v12 = vpop.f32.mrf.mxu1 }
 0x4e8   :  { %v1946_v15 = vrot.slane %v1902_v20, 4  ;;  %v1969_v27 = vrot.slane %v1922_v12, 4 }
 0x4ea   :  { %v1948_v32 = vadd.f32 %v1946_v15, %v1875_v23  ;;  %v1971_v10 = vadd.f32 %v1969_v27, %v1876_v41 }
 0x4ec   :  { %v2528_v5 = vmul.f32 -1.442695, %v1948_v32  ;;  %v2529_v59 = vmul.f32 -1.442695, %v1971_v10 }
 0x4ee   :  { %2681 = vpow2.f32 %v2528_v5  ;;  %v1942_v58 = vpop.f32.mrf.mxu2 }
 0x4ef   :  { %2683 = vpow2.f32 %v2529_v59  ;;  %v1991_v0 = vadd.f32 %v3495_v61, %v1942_v58 }
 0x4f1   :  { %v1993_v31 = vrot.slane %v1991_v0, 4 }
 0x4f2   :  { %v2045_v45 = vpop.f32.mrf.mxu0 }
 0x4f3   :  { %v2092_v47 = vrot.slane %v2045_v45, 6  ;;  %v2065_v19 = vpop.f32.mrf.mxu1 }
 0x4f4   :  { %v2682_v25 = vpop.eup %2681  ;;  %v2114_v32 = vadd.f32 %v3505_v26, %v2065_v19 }
 0x4f5   :  { %v2684_v48 = vpop.eup %2683  ;;  %v1952_v51 = vadd.f32 1.0, %v2682_v25  ;;  %v2094_v53 = vadd.f32 %v2092_v47, %v1879_v28 }
 0x4f6   :  { %v1975_v16 = vadd.f32 1.0, %v2684_v48  ;;  %v2116_v47 = vrot.slane %v2114_v32, 6 }
 0x4f7   :  { %2685 = vrcp.f32 %v1952_v51  ;;  %v2534_v54 = vmul.f32 -1.442695, %v2094_v53  ;;  %v1964_v46 = vand.u32 2147483648, %v1952_v51  ;;  %v1962_v34 = vand.u32 2147483647, %v1952_v51 }
 0x4f8   :  { %2687 = vrcp.f32 %v1975_v16  ;;  %v2025_v14 = vpop.f32.mrf.mxu3  ;;  %vm1958_vm9 = vweird.f32 %v1952_v51  ;;  %v1987_v21 = vand.u32 2147483648, %v1975_v16  ;;  %vm1981_vm13 = vweird.f32 %v1975_v16 }
 0x4f9   :  { %v2069_v24 = vrot.slane %v2025_v14, 6  ;;  %2689 = vpow2.f32 %v2534_v54  ;;  %v1965_v11 = vor.u32 1.1754944e-38, %v1964_v46  ;;  %vm1963_vm11 = vcmp.eq.f32.partialorder %v1962_v34, 8.507059e+37 }
 0x4fa   :  { %v1985_v7 = vand.u32 2147483647, %v1975_v16  ;;  %v1988_v1 = vor.u32 1.1754944e-38, %v1987_v21 }
 0x4fb   :  { %v2071_v55 = vadd.f32 %v2069_v24, %v1878_v52  ;;  %v1880_v52 = vld [vmem:[#allocation2 + $0x20] sm:$0xc] }
 0x4fc   :  { %vm1986_vm15 = vcmp.eq.f32.partialorder %v1985_v7, 8.507059e+37 }
 0x4fd   :  { %v2686_v50 = vpop.eup %2685  ;;  %v2533_v33 = vmul.f32 -1.442695, %v2071_v55 }
 0x4fe   :  { %v2688_v44 = vpop.eup %2687  ;;  %v1954_v38 = vmul.f32 %v2686_v50, %v1952_v51  ;;  %vm1959_vm8 = vweird.f32 %v2686_v50 }
 0x4ff   :  { %v1977_v36 = vmul.f32 %v2688_v44, %v1975_v16  ;;  %2691 = vpow2.f32 %v2533_v33  ;;  %v2690_v2 = vpop.eup %2689  ;;  %vm1960_vm10 = vmor %vm1958_vm9, %vm1959_vm8  ;;  %vm1982_vm12 = vweird.f32 %v2688_v44 }
 0x500   :  { %v1955_v60 = vsub.f32 1.0, %v1954_v38  ;;  %v3592_v9 = vadd.f32 1.0, %v2690_v2  ;;  %vm1983_vm14 = vmor %vm1981_vm13, %vm1982_vm12 }
 0x501   :  { %v1978_v63 = vsub.f32 1.0, %v1977_v36 }
 0x502   :  { %v1956_v57 = vmul.f32 %v2686_v50, %v1955_v60  ;;  %2693 = vrcp.f32 %v3592_v9  ;;  %v2110_v14 = vand.u32 2147483648, %v3592_v9  ;;  %vm2104_vm6 = vweird.f32 %v3592_v9 }
 0x503   :  { %v1979_v3 = vmul.f32 %v2688_v44, %v1978_v63  ;;  %v2108_v24 = vand.u32 2147483647, %v3592_v9  ;;  %v2123_v63 = vrot.slane %v3580_v43, 2 }
 0x504   :  { %v1957_v29 = vadd.f32 %v2686_v50, %v1956_v57  ;;  %v2111_v58 = vor.u32 1.1754944e-38, %v2110_v14 }
 0x505   :  { %v2692_v49 = vpop.eup %2691  ;;  %v1980_v56 = vadd.f32 %v2688_v44, %v1979_v3  ;;  %vm2109_vm8 = vcmp.eq.f32.partialorder %v2108_v24, 8.507059e+37  ;;  %v2377_v3 = vld [vmem:[#allocation15 + $0x2] sm:$0x3] }
 0x506   :  { %v1961_v42 = vsel %vm1960_vm10, %v2686_v50, %v1957_v29  ;;  %v2075_v40 = vadd.f32 1.0, %v2692_v49  ;;  %v2131_v49 = vld [vmem:[#allocation2 + $0x8] sm:$0xc0] }
 0x507   :  { %v1966_v6 = vsel %vm1963_vm11, %v1965_v11, %v1961_v42  ;;  %v1984_v37 = vsel %vm1983_vm14, %v2688_v44, %v1980_v56  ;;  %v2390_v44 = vld [vmem:[#allocation3 + $0xc] sm:$0x3] }
 0x508   :  { %v1995_v30 = vmul.f32 %v1993_v31, %v1966_v6  ;;  %2695 = vrcp.f32 %v2075_v40  ;;  %v2694_v39 = vpop.eup %2693  ;;  %v1989_v13 = vsel %vm1986_vm15, %v1988_v1, %v1984_v37  ;;  %v2087_v10 = vand.u32 2147483648, %v2075_v40  ;;  %v2132_v6 = vld [vmem:[#allocation2 + $0x38] sm:$0xc0] }
 0x509   :  { %v2100_v4 = vmul.f32 %v2694_v39, %v3592_v9  ;;  %v1998_v62 = vsub.f32 1.0, %v1989_v13  ;;  %v2002_v23 = vmul.f32 %v2000_v18, %v1989_v13  ;;  %v2085_v25 = vand.u32 2147483647, %v2075_v40 }
 0x50a   :  { %v1996_v22 = vadd.f32 %v1995_v30, %v1877_v8  ;;  %vm2081_vm2 = vweird.f32 %v2075_v40  ;;  %v2088_v51 = vor.u32 1.1754944e-38, %v2087_v10  ;;  %vm2105_vm5 = vweird.f32 %v2694_v39  ;;  %v2134_v8 = vld [vmem:[#allocation2 + $0x18] sm:$0x3] }
 0x50b   :  { %v2101_v15 = vsub.f32 1.0, %v2100_v4  ;;  %vm2086_vm4 = vcmp.eq.f32.partialorder %v2085_v25, 8.507059e+37  ;;  %vm2106_vm7 = vmor %vm2104_vm6, %vm2105_vm5 }
 0x50c   :  { %2697 = vtanh.f32 %v1996_v22 }
 0x50d   :  { %v2102_v45 = vmul.f32 %v2694_v39, %v2101_v15 }
 0x50e   :  { %v2696_v17 = vpop.eup %2695 }
 0x50f   :  { %v2077_v20 = vmul.f32 %v2696_v17, %v2075_v40  ;;  %vm2082_vm0 = vweird.f32 %v2696_v17  ;;  %v2103_v28 = vadd.f32 %v2694_v39, %v2102_v45 }
 0x510   :  { %vm2083_vm3 = vmor %vm2081_vm2, %vm2082_vm0 }
 0x511   :  { %v2078_v41 = vsub.f32 1.0, %v2077_v20  ;;  %v2107_v38 = vsel %vm2106_vm7, %v2694_v39, %v2103_v28 }
 0x512   :  { %v2698_v12 = vpop.eup %2697  ;;  %v2112_v33 = vsel %vm2109_vm8, %v2111_v58, %v2107_v38 }
 0x513   :  { %v1999_v27 = vmul.f32 %v2698_v12, %v1998_v62  ;;  %v2079_v59 = vmul.f32 %v2696_v17, %v2078_v41  ;;  %v2121_v60 = vsub.f32 1.0, %v2112_v33  ;;  %v2125_v34 = vmul.f32 %v2123_v63, %v2112_v33 }
 0x515   :  { %v3598_v5 = vadd.f32 %v2002_v23, %v1999_v27  ;;  %v2080_v48 = vadd.f32 %v2696_v17, %v2079_v59 }
 0x517   :  { %2128 = vst [vmem:[#allocation15 + $0x8] sm:$0x30] %v3598_v5  ;;  %v2138_v35 = vrot.slane %v3598_v5, 4  ;;  %v2084_v16 = vsel %vm2083_vm3, %v2696_v17, %v2080_v48  ;;  %v2135_v17 = vld [vmem:[#allocation2 + $0x50] sm:$0x3] }
 0x518   :  { %v2089_v53 = vsel %vm2086_vm4, %v2088_v51, %v2084_v16 }
 0x519   :  { %2535 = vmatmul.msk.f32.vlgmr.msra.gmra.mxu2 %vm381_vm1, %v2138_v35  ;;  %2536 = vmatmul.msk.f32.vlgmr.msra.gmra.mxu3 %vm381_vm1, %v2138_v35  ;;  %v2118_v54 = vmul.f32 %v2116_v47, %v2089_v53 }
 0x51a   :  { %2537 = vmatmul.msk.f32.vlgmr.msra.gmra.mxu0 %vm381_vm1, %v2138_v35 }
 0x51b   :  { %v2119_v50 = vadd.f32 %v2118_v54, %v1880_v52 }
 0x51d   :  { %2699 = vtanh.f32 %v2119_v50 }
 0x51e   :  { %v2382_v55 = vld [vmem:[#allocation15 + $0xc] sm:$0x3] }
 0x51f   :  { %v2398_v36 = vadd.f32 %v2390_v44, %v2382_v55  ;;  %v2133_v55 = vld [vmem:[#allocation2 + $0x28] sm:$0xc0] }
 0x521   :  { %2406 = vst [vmem:[#allocation15 + $0xc] sm:$0x3] %v2398_v36 }
 0x523   :  { %v2700_v46 = vpop.eup %2699 }
 0x524   :  { %v2122_v57 = vmul.f32 %v2700_v46, %v2121_v60 }
 0x526   :  { %v2126_v0 = vadd.f32 %v2125_v34, %v2122_v57 }
 0x528   :  { %2130 = vst [vmem:[#allocation3] sm:$0xc] %v2126_v0  ;;  %v3609_v2 = vrot.slane %v2126_v0, 2 }
 0x52a   :  { %2540 = vmatmul.msk.f32.vlgmr.msra.gmra.mxu1 %vm381_vm1, %v3609_v2  ;;  %2541 = vmatmul.msk.f32.vlgmr.msrb.gmra.mxu2 %vm381_vm1, %v3609_v2 }
 0x52b   :  { %2542 = vmatmul.msk.f32.vlgmr.msrb.gmra.mxu3 %vm381_vm1, %v3609_v2 }
 0x52f   :  { %v2385_v29 = vld [vmem:[#allocation3 + $0x2] sm:$0x3] }
 0x530   :  { %v2393_v9 = vadd.f32 %v2385_v29, %v2377_v3 }
 0x532   :  { %2401 = vst [vmem:[#allocation15 + $0x2] sm:$0x3] %v2393_v9 }
 0x597   :  { %v2198_v15 = vpop.f32.mrf.mxu0 }
 0x598   :  { %v2247_v10 = vadd.f32 %v3495_v61, %v2198_v15 }
 0x59a   :  { %v2249_v53 = vrot.slane %v2247_v10, 2 }
 0x59c   :  { %v2158_v43 = vpop.f32.mrf.mxu2  ;;  %v2178_v11 = vpop.f32.mrf.mxu3 }
 0x59d   :  { %v2202_v42 = vrot.slane %v2158_v43, 2  ;;  %v2225_v31 = vrot.slane %v2178_v11, 2  ;;  %v2256_v43 = vrot.slane %v3598_v5, 6 }
 0x59f   :  { %v2204_v56 = vadd.f32 %v2202_v42, %v2131_v49  ;;  %v2227_v21 = vadd.f32 %v2225_v31, %v2132_v6 }
 0x5a1   :  { %v2538_v30 = vmul.f32 -1.442695, %v2204_v56  ;;  %v2539_v40 = vmul.f32 -1.442695, %v2227_v21 }
 0x5a3   :  { %2701 = vpow2.f32 %v2538_v30 }
 0x5a4   :  { %2703 = vpow2.f32 %v2539_v40 }
 0x5a7   :  { %v2281_v22 = vpop.f32.mrf.mxu1 }
 0x5a8   :  { %v2324_v1 = vadd.f32 %v2281_v22, %v2134_v8 }
 0x5a9   :  { %v2702_v7 = vpop.eup %2701 }
 0x5aa   :  { %v2704_v37 = vpop.eup %2703  ;;  %v2208_v39 = vadd.f32 1.0, %v2702_v7  ;;  %v2543_v4 = vmul.f32 -1.442695, %v2324_v1 }
 0x5ab   :  { %v2231_v13 = vadd.f32 1.0, %v2704_v37 }
 0x5ac   :  { %2705 = vrcp.f32 %v2208_v39  ;;  %v2220_v59 = vand.u32 2147483648, %v2208_v39  ;;  %v2218_v48 = vand.u32 2147483647, %v2208_v39  ;;  %vm2214_vm9 = vweird.f32 %v2208_v39 }
 0x5ad   :  { %2707 = vrcp.f32 %v2231_v13  ;;  %v2301_v62 = vpop.f32.mrf.mxu2  ;;  %v2243_v50 = vand.u32 2147483648, %v2231_v13  ;;  %vm2237_vm13 = vweird.f32 %v2231_v13  ;;  %v2241_v44 = vand.u32 2147483647, %v2231_v13 }
 0x5ae   :  { %2709 = vpow2.f32 %v2543_v4  ;;  %v2344_v18 = vadd.f32 %v2301_v62, %v2135_v17  ;;  %v2221_v28 = vor.u32 1.1754944e-38, %v2220_v59  ;;  %vm2219_vm11 = vcmp.eq.f32.partialorder %v2218_v48, 8.507059e+37  ;;  %v2321_v29 = vpop.f32.mrf.mxu3 }
 0x5af   :  { %v2244_v60 = vor.u32 1.1754944e-38, %v2243_v50  ;;  %vm2242_vm15 = vcmp.eq.f32.partialorder %v2241_v44, 8.507059e+37  ;;  %v2364_v56 = vadd.f32 %v3505_v26, %v2321_v29 }
 0x5b0   :  { %v2544_v20 = vmul.f32 -1.442695, %v2344_v18 }
 0x5b2   :  { %v2706_v19 = vpop.eup %2705  ;;  %2711 = vpow2.f32 %v2544_v20 }
 0x5b3   :  { %v2708_v12 = vpop.eup %2707  ;;  %v2210_v27 = vmul.f32 %v2706_v19, %v2208_v39  ;;  %vm2215_vm1 = vweird.f32 %v2706_v19 }
 0x5b4   :  { %v2233_v23 = vmul.f32 %v2708_v12, %v2231_v13  ;;  %v2710_v32 = vpop.eup %2709  ;;  %vm2216_vm10 = vmor %vm2214_vm9, %vm2215_vm1  ;;  %vm2238_vm12 = vweird.f32 %v2708_v12  ;;  %v2136_v13 = vld [vmem:[#allocation2 + $0x20] sm:$0x3] }
 0x5b5   :  { %v2211_v41 = vsub.f32 1.0, %v2210_v27  ;;  %v2328_v35 = vadd.f32 1.0, %v2710_v32  ;;  %vm2239_vm14 = vmor %vm2237_vm13, %vm2238_vm12 }
 0x5b6   :  { %v2234_v25 = vsub.f32 1.0, %v2233_v23 }
 0x5b7   :  { %v2212_v45 = vmul.f32 %v2706_v19, %v2211_v41  ;;  %2713 = vrcp.f32 %v2328_v35  ;;  %v2338_v34 = vand.u32 2147483647, %v2328_v35  ;;  %v2340_v0 = vand.u32 2147483648, %v2328_v35 }
 0x5b8   :  { %v2235_v51 = vmul.f32 %v2708_v12, %v2234_v25  ;;  %v2712_v16 = vpop.eup %2711  ;;  %vm2334_vm2 = vweird.f32 %v2328_v35 }
 0x5b9   :  { %v2213_v47 = vadd.f32 %v2706_v19, %v2212_v45  ;;  %v2348_v54 = vadd.f32 1.0, %v2712_v16  ;;  %vm2339_vm4 = vcmp.eq.f32.partialorder %v2338_v34, 8.507059e+37  ;;  %v2341_v6 = vor.u32 1.1754944e-38, %v2340_v0 }
 0x5ba   :  { %v2236_v52 = vadd.f32 %v2708_v12, %v2235_v51 }
 0x5bb   :  { %v2217_v14 = vsel %vm2216_vm10, %v2706_v19, %v2213_v47  ;;  %2715 = vrcp.f32 %v2348_v54  ;;  %v2360_v39 = vand.u32 2147483648, %v2348_v54  ;;  %vm2354_vm6 = vweird.f32 %v2348_v54  ;;  %v2391_v19 = vld [vmem:[#allocation3 + $0xe] sm:$0x3] }
 0x5bc   :  { %v2222_v24 = vsel %vm2219_vm11, %v2221_v28, %v2217_v14  ;;  %v2240_v58 = vsel %vm2239_vm14, %v2708_v12, %v2236_v52  ;;  %v2358_v1 = vand.u32 2147483647, %v2348_v54 }
 0x5bd   :  { %v2251_v61 = vmul.f32 %v2249_v53, %v2222_v24  ;;  %v2714_v38 = vpop.eup %2713  ;;  %v2245_v57 = vsel %vm2242_vm15, %v2244_v60, %v2240_v58  ;;  %v2361_v62 = vor.u32 1.1754944e-38, %v2360_v39 }
 0x5be   :  { %v2330_v33 = vmul.f32 %v2714_v38, %v2328_v35  ;;  %vm2335_vm0 = vweird.f32 %v2714_v38  ;;  %v2254_v11 = vsub.f32 1.0, %v2245_v57  ;;  %v2258_v30 = vmul.f32 %v2256_v43, %v2245_v57 }
 0x5bf   :  { %v2252_v36 = vadd.f32 %v2251_v61, %v2133_v55  ;;  %vm2336_vm3 = vmor %vm2334_vm2, %vm2335_vm0  ;;  %vm2359_vm8 = vcmp.eq.f32.partialorder %v2358_v1, 8.507059e+37 }
 0x5c0   :  { %v2331_v63 = vsub.f32 1.0, %v2330_v33 }
 0x5c1   :  { %2717 = vtanh.f32 %v2252_v36  ;;  %v2716_v46 = vpop.eup %2715 }
 0x5c2   :  { %v2350_v3 = vmul.f32 %v2716_v46, %v2348_v54  ;;  %v2332_v9 = vmul.f32 %v2714_v38, %v2331_v63  ;;  %vm2355_vm5 = vweird.f32 %v2716_v46 }
 0x5c3   :  { %vm2356_vm7 = vmor %vm2354_vm6, %vm2355_vm5 }
 0x5c4   :  { %v2351_v42 = vsub.f32 1.0, %v2350_v3  ;;  %v2333_v31 = vadd.f32 %v2714_v38, %v2332_v9 }
 0x5c6   :  { %v2352_v40 = vmul.f32 %v2716_v46, %v2351_v42  ;;  %v2337_v7 = vsel %vm2336_vm3, %v2714_v38, %v2333_v31 }
 0x5c7   :  { %v2718_v49 = vpop.eup %2717  ;;  %v2342_v8 = vsel %vm2339_vm4, %v2341_v6, %v2337_v7 }
 0x5c8   :  { %v2255_v21 = vmul.f32 %v2718_v49, %v2254_v11  ;;  %v2353_v37 = vadd.f32 %v2716_v46, %v2352_v40  ;;  %v2365_v5 = vmul.f32 %v2364_v56, %v2342_v8 }
 0x5ca   :  { %v2259_v22 = vadd.f32 %v2258_v30, %v2255_v21  ;;  %v2366_v4 = vadd.f32 %v2365_v5, %v2136_v13  ;;  %v2357_v17 = vsel %vm2356_vm7, %v2716_v46, %v2353_v37 }
 0x5cb   :  { %v2362_v26 = vsel %vm2359_vm8, %v2361_v62, %v2357_v17 }
 0x5cc   :  { %2374 = vst [vmem:[#allocation15 + $0x8] sm:$0xc0] %v2259_v22  ;;  %2719 = vtanh.f32 %v2259_v22  ;;  %v2368_v12 = vsub.f32 1.0, %v2362_v26  ;;  %v2371_v41 = vmul.f32 %v2362_v26, %v3609_v2  ;;  %v2376_v2 = vld [vmem:[#allocation15] sm:$0x3] }
 0x5cd   :  { %2721 = vtanh.f32 %v2366_v4 }
 0x5d2   :  { %v2720_v18 = vpop.eup %2719 }
 0x5d3   :  { %v2383_v20 = vld [vmem:[#allocation15 + $0xe] sm:$0x3]  ;;  %2409 = vst [vmem:[#allocation16 - $0x6] sm:$0xc0] %v2720_v18  ;;  %v2722_v15 = vpop.eup %2721 }
 0x5d4   :  { %v2399_v27 = vadd.f32 %v2391_v19, %v2383_v20  ;;  %v2369_v23 = vmul.f32 %v2722_v15, %v2368_v12 }
 0x5d6   :  { %2407 = vst [vmem:[#allocation15 + $0xe] sm:$0x3] %v2399_v27  ;;  %v2372_v32 = vadd.f32 %v2371_v41, %v2369_v23 }
 0x5d8   :  { %2375 = vst [vmem:[#allocation3] sm:$0x3] %v2372_v32  ;;  %2723 = vtanh.f32 %v2372_v32 }
 0x5de   :  { %v2724_v10 = vpop.eup %2723 }
 0x5df   :  { %v2384_v59 = vld [vmem:[#allocation3] sm:$0x3]  ;;  %2412 = vst [vmem:[#allocation16 + $0x2] sm:$0x3] %v2724_v10 }
 0x5e0   :  { %v2392_v25 = vadd.f32 %v2384_v59, %v2376_v2  ;;  %2438 = dma.vmem_to_hbm [thread:$0]  %s2431_s27, 64, %s2433_s30, [#allocation17], %s2956_s17, %s2956_s17, %s2957_s18  }
 0x5e2   :  { %2400 = vst [vmem:[#allocation15] sm:$0x3] %v2392_v25 }
 0x5e3   :  { %2425 = dma.vmem_to_hbm [thread:$0]  %s2418_s11, 256, %s2420_s13, [#allocation6], %s2956_s17, %s2956_s17, %s2957_s18  }
 0x5e4   :  { %2951 = dma.done.wait [#allocation6], 256  }
 0x5e5   :  { %2952 = vsyncadd [#allocation6], 4294967040 }
 0x5e6   :  { %2953 = dma.done.wait [#allocation17], 64  }
 0x5e7   :  { %2954 = vsyncadd [#allocation17], 4294967232 }
 0x5e8   :  { %2447 = vsyncpa [#allocation5], 1 }
 0x5e9   :  { %2448 = vsyncpa [#allocation8], 1 }
 0x5ea   :  { %2449 = vsyncpa [#allocation11], 1 }
 0x5eb   :  { %2450 = vsyncpa [#allocation14], 1 }
 0x5ec   :  { %2451 = vsyncpa [#allocation6], 1 }
 0x5ed   :  { %2452 = vsyncpa [#allocation17], 1 }

</bundles_post_ra>
